<compile_context>
chip_gen: v7x
topology: tpu7x:2x2x1
jax: 0.10.0
libtpu: 0.0.40
codegen_flags: <defaults>
</compile_context>

<pallas_src>
import jax
import jax.numpy as jnp
from jax.experimental import pallas as pl
from jax.experimental.pallas import tpu as pltpu


LOCS_DIM, SHOT_DIM, GAT_DIM, TCN_DIM = 2, 16, 16, 16
NN_HID = 16  # nn.Linear(32, 16) hidden width inside shot_nn / locs_nn


def _round_up(x, m):
    return ((x + m - 1) // m) * m


def _leaky(x, slope):
    return jnp.where(x >= 0, x, slope * x)


def _param_layout(Dl, Ds, Dg, Dt):
    """Row layout of the packed feature-major parameter slab (8-row aligned)."""
    Hz = 2 * NN_HID                 # stacked hidden rows of shot_nn / locs_nn (32)
    OUT = 2 + Dl + Ds               # shot_out | locs_out | recon_locs | recon_shot
    OUTP = _round_up(OUT, 8)        # padded output-feature rows (24)
    specs = [                       # (name, rows, cols) -- every block starts at col 0
        ("WgT",  Dg, Dl),           # GAT linear, transposed                  (16, 2)
        ("WgA",  Dl, 2),            # Wg @ [a_src^T | a_dst^T]                (2, 2)
        ("Wt0T", Dt, Ds),           # TCN conv tap for node i-1, transposed   (16, 16)
        ("Wt1T", Dt, Ds),           # TCN conv tap for node i                 (16, 16)
        ("Wt2T", Dt, Ds),           # TCN conv tap for node i+1               (16, 16)
        ("Wzg",  Hz, Dg),           # [w1^T; w3^T] columns that hit gat       (32, 16)
        ("Wzt",  Hz, Dt),           # [w1^T; w3^T] columns that hit tcn       (32, 16)
        ("WoT",  OUTP, Hz),         # fused heads + reconstructions           (24, 32)
        ("bg",   Dg, 1),
        ("bt",   Dt, 1),
        ("bz",   Hz, 1),
        ("bo",   OUTP, 1),
    ]
    layout, row = {}, 0
    for name, nr, nc in specs:
        layout[name] = (row, nr, nc)
        row = _round_up(row + nr, 8)
    n_rows = _round_up(row, 8)
    n_cols = max(nc for _, _, nc in specs)
    return layout, n_rows, n_cols, OUT, OUTP


def pack_params(params, Dl=LOCS_DIM, Ds=SHOT_DIM, Dg=GAT_DIM, Dt=TCN_DIM):
    """Pre-compose / transpose all tiny linears into one f32 slab."""
    layout, n_rows, n_cols, OUT, OUTP = _param_layout(Dl, Ds, Dg, Dt)
    Hz = 2 * NN_HID

    wg = params["wg"]                                                   # (Dl, Dg)
    A = jnp.concatenate([params["a_src"].T, params["a_dst"].T], axis=1)  # (Dg, 2)
    w1, b1, w2, b2 = params["w1"], params["b1"], params["w2"], params["b2"]
    w3, b3, w4, b4 = params["w3"], params["b3"], params["w4"], params["b4"]
    wrl, brl, wrs, brs = params["wrl"], params["brl"], params["wrs"], params["brs"]

    # Fused first layers (feature-major): z = [h1; h2] = [w1^T; w3^T] @ combined + [b1^T; b3^T]
    W13T = jnp.concatenate([w1.T, w3.T], axis=0)                        # (Hz, Dg+Dt)

    # Fused output head over z = [h1; h2]:
    #   row 0         : shot_out   = w2^T h1 + b2
    #   row 1         : locs_out   = w4^T h2 + b4
    #   rows 2:2+Dl   : recon_locs = (w4 @ wrl)^T h2 + (b4 @ wrl + brl)
    #   rows 2+Dl:OUT : recon_shot = (w2 @ wrs)^T h1 + (b2 @ wrs + brs)
    WoT = jnp.zeros((OUTP, Hz), jnp.float32)
    WoT = WoT.at[0, 0:NN_HID].set(w2[:, 0])
    WoT = WoT.at[1, NN_HID:Hz].set(w4[:, 0])
    WoT = WoT.at[2:2 + Dl, NN_HID:Hz].set((w4 @ wrl).T)
    WoT = WoT.at[2 + Dl:OUT, 0:NN_HID].set((w2 @ wrs).T)
    bo = jnp.concatenate([b2, b4, b4 @ wrl + brl, b2 @ wrs + brs], axis=1).T  # (OUT, 1)
    bo = jnp.pad(bo, ((0, OUTP - OUT), (0, 0)))

    vals = {
        "WgT": wg.T,
        "WgA": wg @ A,
        "Wt0T": params["wt0"].T,
        "Wt1T": params["wt1"].T,
        "Wt2T": params["wt2"].T,
        "Wzg": W13T[:, 0:Dg],
        "Wzt": W13T[:, Dg:Dg + Dt],
        "WoT": WoT,
        "bg": params["bg"].T,
        "bt": params["bt"].T,
        "bz": jnp.concatenate([b1.T, b3.T], axis=0),
        "bo": bo,
    }

    slab = jnp.zeros((n_rows, n_cols), jnp.float32)
    for name, v in vals.items():
        r, nr, nc = layout[name]
        slab = slab.at[r:r + nr, 0:nc].set(v.astype(jnp.float32))
    return slab


def _make_kernel(layout, Dl, Ds, Dg, Dt, N, Bt):
    Mt = N * Bt  # lanes per tile (node-major, example-minor)

    def sl(p_ref, name):
        r, nr, nc = layout[name]
        return p_ref[r:r + nr, 0:nc]

    def kernel(locs_ref, shot_ref, p_ref, out_ref):
        f32 = jnp.float32
        x = locs_ref[...]                       # (Dl, Mt)
        s = shot_ref[...]                       # (Ds, Mt)

        wga = sl(p_ref, "WgA")                  # (Dl, 2): col 0 = Wg@a_src^T, col 1 = Wg@a_dst^T
        wgt = sl(p_ref, "WgT")                  # (Dg, Dl)

        # ---- GATConv (heads=1), complete graph + default self-loops (VPU only) ----
        # src_j = a_src . h_j = (Wg @ a_src^T) . x_j, dst_i likewise (weights folded).
        x0, x1 = x[0:1, :], x[1:2, :]
        src = wga[0:1, 0:1] * x0 + wga[1:2, 0:1] * x1          # (1, Mt)
        dst = wga[0:1, 1:2] * x0 + wga[1:2, 1:2] * x1          # (1, Mt)

        # Online softmax over the N source offsets.  Node index is the lane-major
        # axis, so a cyclic roll by k*Bt lanes enumerates node (i+k) mod N with no
        # boundary masks.  Aggregation is accumulated on the 2-row inputs and mapped
        # through Wg afterwards (linearity of the GAT aggregation).
        e0 = _leaky(dst + src, 0.2)                             # self-loop term (j = i)
        m_run = e0
        l_run = jnp.ones_like(e0)
        acc = x                                                 # sum_j p_ij * x_j
        for k in range(1, N):
            xk = pltpu.roll(x, Mt - k * Bt, axis=1)             # x of node (i+k) mod N
            srck = wga[0:1, 0:1] * xk[0:1, :] + wga[1:2, 0:1] * xk[1:2, :]
            ek = _leaky(dst + srck, 0.2)
            m_new = jnp.maximum(m_run, ek)
            corr = jnp.exp(m_run - m_new)
            pk = jnp.exp(ek - m_new)
            l_run = corr * l_run + pk
            acc = corr * acc + pk * xk
            m_run = m_new
        accn = acc * (1.0 / l_run)                              # exact normalization
        gat = wgt[:, 0:1] * accn[0:1, :] + wgt[:, 1:2] * accn[1:2, :] + sl(p_ref, "bg")
        gat = jnp.maximum(gat, 0.0)                             # (Dg, Mt)  F.relu

        # ---- TCN: Conv1d(Ds -> Dt, kernel=3, padding=1) along the node axis + ReLU ----
        # TODO(synk): TCNLayer's definition is not provided with the module; a single
        # length-3 same-padded temporal conv + ReLU is used as the layer.
        lane = jax.lax.broadcasted_iota(jnp.int32, (1, Mt), 1)
        s_prev = jnp.where(lane < Bt, 0.0, pltpu.roll(s, Bt, axis=1))            # node i-1
        s_next = jnp.where(lane >= Mt - Bt, 0.0, pltpu.roll(s, Mt - Bt, axis=1))  # node i+1
        tcn = (jnp.dot(sl(p_ref, "Wt0T"), s_prev, preferred_element_type=f32)
               + jnp.dot(sl(p_ref, "Wt1T"), s, preferred_element_type=f32)
               + jnp.dot(sl(p_ref, "Wt2T"), s_next, preferred_element_type=f32)
               + sl(p_ref, "bt"))
        tcn = jnp.maximum(tcn, 0.0)                             # (Dt, Mt)

        # ---- fused shot_nn / locs_nn hidden layers, then fused heads + recon ----
        z = (jnp.dot(sl(p_ref, "Wzg"), gat, preferred_element_type=f32)
             + jnp.dot(sl(p_ref, "Wzt"), tcn, preferred_element_type=f32)
             + sl(p_ref, "bz"))
        z = _leaky(z, 0.01)                                     # (32, Mt)

        out_ref[...] = (jnp.dot(sl(p_ref, "WoT"), z, preferred_element_type=f32)
                        + sl(p_ref, "bo"))                      # (OUTP, Mt) lane-dense

    return kernel


def shot_type_emb_forward(locs, shot, params, *, block_b=128,
                          Dg=GAT_DIM, Dt=TCN_DIM):
    B, N, Dl = locs.shape
    _, _, Ds = shot.shape
    assert Dl == 2, "kernel unrolls the 2-wide locs feature dim on the VPU"

    layout, n_rows, n_cols, OUT, OUTP = _param_layout(Dl, Ds, Dg, Dt)
    slab = pack_params(params, Dl, Ds, Dg, Dt)

    # v5e/v6e (single TensorCore): pass block_b >= B for grid=(1,).
    # v7x: keep >= 2 tiles so both TensorCores get work.
    Bt = int(min(block_b, B))
    if Bt < B and (N * Bt) % 128 != 0:
        Bt = B                       # fall back to one full-array tile
    G = -(-B // Bt)
    Bp = G * Bt
    if Bp != B:
        locs = jnp.pad(locs, ((0, Bp - B), (0, 0), (0, 0)))
        shot = jnp.pad(shot, ((0, Bp - B), (0, 0), (0, 0)))
    Mt = N * Bt

    # Feature-major, per-tile node-major lane order: lane((g,i,b)) = (g*N + i)*Bt + b.
    locs_fm = (locs.astype(jnp.float32).reshape(G, Bt, N, Dl)
               .transpose(3, 0, 2, 1).reshape(Dl, G * Mt))
    shot_fm = (shot.astype(jnp.float32).reshape(G, Bt, N, Ds)
               .transpose(3, 0, 2, 1).reshape(Ds, G * Mt))

    kernel = _make_kernel(layout, Dl, Ds, Dg, Dt, N, Bt)

    out_fm = pl.pallas_call(
        kernel,
        out_shape=jax.ShapeDtypeStruct((OUTP, G * Mt), jnp.float32),
        grid_spec=pltpu.PrefetchScalarGridSpec(
            num_scalar_prefetch=0,
            grid=(G,),
            in_specs=[
                pl.BlockSpec((Dl, Mt), lambda g: (0, g)),
                pl.BlockSpec((Ds, Mt), lambda g: (0, g)),
                pl.BlockSpec((n_rows, n_cols), lambda g: (0, 0)),   # resident param slab
            ],
            out_specs=pl.BlockSpec((OUTP, Mt), lambda g: (0, g)),
        ),
        compiler_params=pltpu.CompilerParams(
            dimension_semantics=("parallel",),
            vmem_limit_bytes=16 * 1024 * 1024,
        ),
    )(locs_fm, shot_fm, slab)

    out = (out_fm.reshape(OUTP, G, N, Bt)
           .transpose(1, 3, 2, 0)
           .reshape(Bp, N, OUTP)[:B])
    shot_out = out[..., 0:1]
    locs_out = out[..., 1:2]
    recon_locs = out[..., 2:2 + Dl]
    recon_shot = out[..., 2 + Dl:2 + Dl + Ds]
    return shot_out, locs_out, recon_locs, recon_shot


def init_params(key, locs_dim=2, shot_dim=16, gat_dim=16, tcn_dim=16):
    """Deterministic synthetic parameters. Linear weights stored as (in, out)."""
    keys = jax.random.split(key, 20)

    def init(k, shape, scale=0.1):
        return scale * jax.random.normal(k, shape, dtype=jnp.float32)

    hidden = gat_dim + tcn_dim  # 32, matches nn.Linear(32, 16) in the module
    return dict(
        wg=init(keys[0], (locs_dim, gat_dim)),       # GAT lin_src weight^T
        a_src=init(keys[1], (1, gat_dim)),           # GAT att_src
        a_dst=init(keys[2], (1, gat_dim)),           # GAT att_dst
        bg=init(keys[3], (1, gat_dim)),              # GAT bias
        wt0=init(keys[4], (shot_dim, tcn_dim)),      # TCN conv tap k=0 (W[:,:,0]^T)
        wt1=init(keys[5], (shot_dim, tcn_dim)),      # TCN conv tap k=1
        wt2=init(keys[6], (shot_dim, tcn_dim)),      # TCN conv tap k=2
        bt=init(keys[7], (1, tcn_dim)),              # TCN conv bias
        w1=init(keys[8], (hidden, 16)),  b1=init(keys[9], (1, 16)),    # shot_nn
        w2=init(keys[10], (16, 1)),      b2=init(keys[11], (1, 1)),
        w3=init(keys[12], (hidden, 16)), b3=init(keys[13], (1, 16)),   # locs_nn
        w4=init(keys[14], (16, 1)),      b4=init(keys[15], (1, 1)),
        wrl=init(keys[16], (1, locs_dim)), brl=init(keys[17], (1, locs_dim)),  # recon_locs
        wrs=init(keys[18], (1, shot_dim)), brs=init(keys[19], (1, shot_dim)),  # recon_shot
    )


def _reference_forward(locs, shot, params):
    """Pure-JAX reference of the same forward semantics (for validation)."""
    h = locs @ params["wg"]                                        # (B, N, Dg)
    src = jnp.einsum("bnd,d->bn", h, params["a_src"][0])
    dst = jnp.einsum("bnd,d->bn", h, params["a_dst"][0])
    e = dst[:, :, None] + src[:, None, :]                          # e[b, i, j]
    e = jnp.where(e >= 0, e, 0.2 * e)
    e = e - e.max(-1, keepdims=True)
    p = jnp.exp(e)
    alpha = p / p.sum(-1, keepdims=True)
    gat = jnp.einsum("bij,bjd->bid", alpha, h) + params["bg"]
    gat = jnp.maximum(gat, 0.0)

    zpad = jnp.zeros_like(shot[:, :1, :])
    s_prev = jnp.concatenate([zpad, shot[:, :-1, :]], axis=1)
    s_next = jnp.concatenate([shot[:, 1:, :], zpad], axis=1)
    tcn = (s_prev @ params["wt0"] + shot @ params["wt1"] + s_next @ params["wt2"]
           + params["bt"])
    tcn = jnp.maximum(tcn, 0.0)

    comb = jnp.concatenate([gat, tcn], axis=-1)
    h1 = _leaky(comb @ params["w1"] + params["b1"], 0.01)
    h2 = _leaky(comb @ params["w3"] + params["b3"], 0.01)
    shot_out = h1 @ params["w2"] + params["b2"]
    locs_out = h2 @ params["w4"] + params["b4"]
    recon_locs = locs_out @ params["wrl"] + params["brl"]
    recon_shot = shot_out @ params["wrs"] + params["brs"]
    return shot_out, locs_out, recon_locs, recon_shot


if __name__ == "__main__":
    # B=256 with the default 128-example tile -> grid=(2,) (both v7x TensorCores);
    # use block_b >= B on v5e/v6e for a single grid step.
    B, N = 256, 8

    key = jax.random.PRNGKey(0)
    k_locs, k_shot, k_params = jax.random.split(key, 3)
    locs = jax.random.normal(k_locs, (B, N, LOCS_DIM), dtype=jnp.float32)
    shot = jax.random.normal(k_shot, (B, N, SHOT_DIM), dtype=jnp.float32)
    params = init_params(k_params, LOCS_DIM, SHOT_DIM, GAT_DIM, TCN_DIM)

    outs = jax.block_until_ready(shot_type_emb_forward(locs, shot, params))
    shot_out, locs_out, recon_locs, recon_shot = outs

    assert shot_out.shape == (B, N, 1)
    assert locs_out.shape == (B, N, 1)
    assert recon_locs.shape == (B, N, LOCS_DIM)
    assert recon_shot.shape == (B, N, SHOT_DIM)
    assert all(bool(jnp.isfinite(o).all()) for o in outs)

    refs = _reference_forward(locs, shot, params)
    for got, ref in zip(outs, refs):
        assert bool(jnp.allclose(got, ref, rtol=5e-2, atol=5e-3)), \
            float(jnp.max(jnp.abs(got - ref)))

    print("KERNEL_OK")
</pallas_src>

<mosaic_0001>
module attributes {stable_mosaic.version = 11 : i64} {
  func.func @kernel(%arg0: i32, %arg1: memref<2x1024xf32, #tpu.memory_space<vmem>>, %arg2: memref<16x1024xf32, #tpu.memory_space<vmem>>, %arg3: memref<248x32xf32, #tpu.memory_space<vmem>>, %arg4: memref<24x1024xf32, #tpu.memory_space<vmem>>) attributes {dimension_semantics = [#tpu.dimension_semantics<parallel>], iteration_bounds = array<i64: 2>, scalar_prefetch = 0 : i64, scratch_operands = 0 : i64, tpu.core_type = #tpu.core_type<tc>, window_params = [{transform_indices = @transform_0, window_bounds = array<i64: 2, 1024>}, {transform_indices = @transform_1, window_bounds = array<i64: 16, 1024>}, {pipeline_mode = #tpu.pipeline_mode<synchronous>, transform_indices = @transform_2, window_bounds = array<i64: 248, 32>}, {transform_indices = @transform_3, window_bounds = array<i64: 24, 1024>}]} {
    %c0 = arith.constant 0 : index
    %c0_0 = arith.constant 0 : index
    %0 = vector.load %arg1[%c0, %c0_0] : memref<2x1024xf32, #tpu.memory_space<vmem>>, vector<2x1024xf32>
    %c0_1 = arith.constant 0 : index
    %c0_2 = arith.constant 0 : index
    %1 = vector.load %arg2[%c0_1, %c0_2] : memref<16x1024xf32, #tpu.memory_space<vmem>>, vector<16x1024xf32>
    %c16 = arith.constant 16 : index
    %c0_3 = arith.constant 0 : index
    %2 = vector.load %arg3[%c16, %c0_3] : memref<248x32xf32, #tpu.memory_space<vmem>>, vector<2x2xf32>
    %c0_4 = arith.constant 0 : index
    %c0_5 = arith.constant 0 : index
    %3 = vector.load %arg3[%c0_4, %c0_5] : memref<248x32xf32, #tpu.memory_space<vmem>>, vector<16x2xf32>
    %4 = vector.extract_strided_slice %0 {offsets = [0, 0], sizes = [1, 1024], strides = [1, 1]} : vector<2x1024xf32> to vector<1x1024xf32>
    %5 = vector.extract_strided_slice %0 {offsets = [1, 0], sizes = [1, 1024], strides = [1, 1]} : vector<2x1024xf32> to vector<1x1024xf32>
    %6 = vector.extract_strided_slice %2 {offsets = [0, 0], sizes = [1, 1], strides = [1, 1]} : vector<2x2xf32> to vector<1x1xf32>
    %7 = vector.broadcast %6 : vector<1x1xf32> to vector<1x1024xf32>
    %8 = arith.mulf %7, %4 : vector<1x1024xf32>
    %9 = vector.extract_strided_slice %2 {offsets = [1, 0], sizes = [1, 1], strides = [1, 1]} : vector<2x2xf32> to vector<1x1xf32>
    %10 = vector.broadcast %9 : vector<1x1xf32> to vector<1x1024xf32>
    %11 = arith.mulf %10, %5 : vector<1x1024xf32>
    %12 = arith.addf %8, %11 : vector<1x1024xf32>
    %13 = vector.extract_strided_slice %2 {offsets = [0, 1], sizes = [1, 1], strides = [1, 1]} : vector<2x2xf32> to vector<1x1xf32>
    %14 = vector.broadcast %13 : vector<1x1xf32> to vector<1x1024xf32>
    %15 = arith.mulf %14, %4 : vector<1x1024xf32>
    %16 = vector.extract_strided_slice %2 {offsets = [1, 1], sizes = [1, 1], strides = [1, 1]} : vector<2x2xf32> to vector<1x1xf32>
    %17 = vector.broadcast %16 : vector<1x1xf32> to vector<1x1024xf32>
    %18 = arith.mulf %17, %5 : vector<1x1024xf32>
    %19 = arith.addf %15, %18 : vector<1x1024xf32>
    %20 = arith.addf %19, %12 : vector<1x1024xf32>
    %cst = arith.constant 0.000000e+00 : f32
    %21 = vector.broadcast %cst : f32 to vector<1x1024xf32>
    %22 = arith.cmpf oge, %20, %21 : vector<1x1024xf32>
    %cst_6 = arith.constant 2.000000e-01 : f32
    %23 = vector.broadcast %cst_6 : f32 to vector<1x1024xf32>
    %24 = arith.mulf %23, %20 : vector<1x1024xf32>
    %25 = arith.select %22, %20, %24 : vector<1x1024xi1>, vector<1x1024xf32>
    %cst_7 = arith.constant 1.000000e+00 : f32
    %26 = vector.broadcast %cst_7 : f32 to vector<1x1024xf32>
    %c896_i32 = arith.constant 896 : i32
    %27 = tpu.dynamic_rotate %0 by %c896_i32 dim 1 : vector<2x1024xf32>, i32 -> vector<2x1024xf32>
    %28 = vector.extract_strided_slice %2 {offsets = [0, 0], sizes = [1, 1], strides = [1, 1]} : vector<2x2xf32> to vector<1x1xf32>
    %29 = vector.extract_strided_slice %27 {offsets = [0, 0], sizes = [1, 1024], strides = [1, 1]} : vector<2x1024xf32> to vector<1x1024xf32>
    %30 = vector.broadcast %28 : vector<1x1xf32> to vector<1x1024xf32>
    %31 = arith.mulf %30, %29 : vector<1x1024xf32>
    %32 = vector.extract_strided_slice %2 {offsets = [1, 0], sizes = [1, 1], strides = [1, 1]} : vector<2x2xf32> to vector<1x1xf32>
    %33 = vector.extract_strided_slice %27 {offsets = [1, 0], sizes = [1, 1024], strides = [1, 1]} : vector<2x1024xf32> to vector<1x1024xf32>
    %34 = vector.broadcast %32 : vector<1x1xf32> to vector<1x1024xf32>
    %35 = arith.mulf %34, %33 : vector<1x1024xf32>
    %36 = arith.addf %31, %35 : vector<1x1024xf32>
    %37 = arith.addf %19, %36 : vector<1x1024xf32>
    %cst_8 = arith.constant 0.000000e+00 : f32
    %38 = vector.broadcast %cst_8 : f32 to vector<1x1024xf32>
    %39 = arith.cmpf oge, %37, %38 : vector<1x1024xf32>
    %cst_9 = arith.constant 2.000000e-01 : f32
    %40 = vector.broadcast %cst_9 : f32 to vector<1x1024xf32>
    %41 = arith.mulf %40, %37 : vector<1x1024xf32>
    %42 = arith.select %39, %37, %41 : vector<1x1024xi1>, vector<1x1024xf32>
    %43 = arith.maximumf %25, %42 : vector<1x1024xf32>
    %44 = arith.subf %25, %43 : vector<1x1024xf32>
    %45 = math.exp %44 : vector<1x1024xf32>
    %46 = arith.subf %42, %43 : vector<1x1024xf32>
    %47 = math.exp %46 : vector<1x1024xf32>
    %48 = arith.mulf %45, %26 : vector<1x1024xf32>
    %49 = arith.addf %48, %47 : vector<1x1024xf32>
    %50 = vector.broadcast %45 : vector<1x1024xf32> to vector<2x1024xf32>
    %51 = arith.mulf %50, %0 : vector<2x1024xf32>
    %52 = vector.broadcast %47 : vector<1x1024xf32> to vector<2x1024xf32>
    %53 = arith.mulf %52, %27 : vector<2x1024xf32>
    %54 = arith.addf %51, %53 : vector<2x1024xf32>
    %c768_i32 = arith.constant 768 : i32
    %55 = tpu.dynamic_rotate %0 by %c768_i32 dim 1 : vector<2x1024xf32>, i32 -> vector<2x1024xf32>
    %56 = vector.extract_strided_slice %2 {offsets = [0, 0], sizes = [1, 1], strides = [1, 1]} : vector<2x2xf32> to vector<1x1xf32>
    %57 = vector.extract_strided_slice %55 {offsets = [0, 0], sizes = [1, 1024], strides = [1, 1]} : vector<2x1024xf32> to vector<1x1024xf32>
    %58 = vector.broadcast %56 : vector<1x1xf32> to vector<1x1024xf32>
    %59 = arith.mulf %58, %57 : vector<1x1024xf32>
    %60 = vector.extract_strided_slice %2 {offsets = [1, 0], sizes = [1, 1], strides = [1, 1]} : vector<2x2xf32> to vector<1x1xf32>
    %61 = vector.extract_strided_slice %55 {offsets = [1, 0], sizes = [1, 1024], strides = [1, 1]} : vector<2x1024xf32> to vector<1x1024xf32>
    %62 = vector.broadcast %60 : vector<1x1xf32> to vector<1x1024xf32>
    %63 = arith.mulf %62, %61 : vector<1x1024xf32>
    %64 = arith.addf %59, %63 : vector<1x1024xf32>
    %65 = arith.addf %19, %64 : vector<1x1024xf32>
    %cst_10 = arith.constant 0.000000e+00 : f32
    %66 = vector.broadcast %cst_10 : f32 to vector<1x1024xf32>
    %67 = arith.cmpf oge, %65, %66 : vector<1x1024xf32>
    %cst_11 = arith.constant 2.000000e-01 : f32
    %68 = vector.broadcast %cst_11 : f32 to vector<1x1024xf32>
    %69 = arith.mulf %68, %65 : vector<1x1024xf32>
    %70 = arith.select %67, %65, %69 : vector<1x1024xi1>, vector<1x1024xf32>
    %71 = arith.maximumf %43, %70 : vector<1x1024xf32>
    %72 = arith.subf %43, %71 : vector<1x1024xf32>
    %73 = math.exp %72 : vector<1x1024xf32>
    %74 = arith.subf %70, %71 : vector<1x1024xf32>
    %75 = math.exp %74 : vector<1x1024xf32>
    %76 = arith.mulf %73, %49 : vector<1x1024xf32>
    %77 = arith.addf %76, %75 : vector<1x1024xf32>
    %78 = vector.broadcast %73 : vector<1x1024xf32> to vector<2x1024xf32>
    %79 = arith.mulf %78, %54 : vector<2x1024xf32>
    %80 = vector.broadcast %75 : vector<1x1024xf32> to vector<2x1024xf32>
    %81 = arith.mulf %80, %55 : vector<2x1024xf32>
    %82 = arith.addf %79, %81 : vector<2x1024xf32>
    %c640_i32 = arith.constant 640 : i32
    %83 = tpu.dynamic_rotate %0 by %c640_i32 dim 1 : vector<2x1024xf32>, i32 -> vector<2x1024xf32>
    %84 = vector.extract_strided_slice %2 {offsets = [0, 0], sizes = [1, 1], strides = [1, 1]} : vector<2x2xf32> to vector<1x1xf32>
    %85 = vector.extract_strided_slice %83 {offsets = [0, 0], sizes = [1, 1024], strides = [1, 1]} : vector<2x1024xf32> to vector<1x1024xf32>
    %86 = vector.broadcast %84 : vector<1x1xf32> to vector<1x1024xf32>
    %87 = arith.mulf %86, %85 : vector<1x1024xf32>
    %88 = vector.extract_strided_slice %2 {offsets = [1, 0], sizes = [1, 1], strides = [1, 1]} : vector<2x2xf32> to vector<1x1xf32>
    %89 = vector.extract_strided_slice %83 {offsets = [1, 0], sizes = [1, 1024], strides = [1, 1]} : vector<2x1024xf32> to vector<1x1024xf32>
    %90 = vector.broadcast %88 : vector<1x1xf32> to vector<1x1024xf32>
    %91 = arith.mulf %90, %89 : vector<1x1024xf32>
    %92 = arith.addf %87, %91 : vector<1x1024xf32>
    %93 = arith.addf %19, %92 : vector<1x1024xf32>
    %cst_12 = arith.constant 0.000000e+00 : f32
    %94 = vector.broadcast %cst_12 : f32 to vector<1x1024xf32>
    %95 = arith.cmpf oge, %93, %94 : vector<1x1024xf32>
    %cst_13 = arith.constant 2.000000e-01 : f32
    %96 = vector.broadcast %cst_13 : f32 to vector<1x1024xf32>
    %97 = arith.mulf %96, %93 : vector<1x1024xf32>
    %98 = arith.select %95, %93, %97 : vector<1x1024xi1>, vector<1x1024xf32>
    %99 = arith.maximumf %71, %98 : vector<1x1024xf32>
    %100 = arith.subf %71, %99 : vector<1x1024xf32>
    %101 = math.exp %100 : vector<1x1024xf32>
    %102 = arith.subf %98, %99 : vector<1x1024xf32>
    %103 = math.exp %102 : vector<1x1024xf32>
    %104 = arith.mulf %101, %77 : vector<1x1024xf32>
    %105 = arith.addf %104, %103 : vector<1x1024xf32>
    %106 = vector.broadcast %101 : vector<1x1024xf32> to vector<2x1024xf32>
    %107 = arith.mulf %106, %82 : vector<2x1024xf32>
    %108 = vector.broadcast %103 : vector<1x1024xf32> to vector<2x1024xf32>
    %109 = arith.mulf %108, %83 : vector<2x1024xf32>
    %110 = arith.addf %107, %109 : vector<2x1024xf32>
    %c512_i32 = arith.constant 512 : i32
    %111 = tpu.dynamic_rotate %0 by %c512_i32 dim 1 : vector<2x1024xf32>, i32 -> vector<2x1024xf32>
    %112 = vector.extract_strided_slice %2 {offsets = [0, 0], sizes = [1, 1], strides = [1, 1]} : vector<2x2xf32> to vector<1x1xf32>
    %113 = vector.extract_strided_slice %111 {offsets = [0, 0], sizes = [1, 1024], strides = [1, 1]} : vector<2x1024xf32> to vector<1x1024xf32>
    %114 = vector.broadcast %112 : vector<1x1xf32> to vector<1x1024xf32>
    %115 = arith.mulf %114, %113 : vector<1x1024xf32>
    %116 = vector.extract_strided_slice %2 {offsets = [1, 0], sizes = [1, 1], strides = [1, 1]} : vector<2x2xf32> to vector<1x1xf32>
    %117 = vector.extract_strided_slice %111 {offsets = [1, 0], sizes = [1, 1024], strides = [1, 1]} : vector<2x1024xf32> to vector<1x1024xf32>
    %118 = vector.broadcast %116 : vector<1x1xf32> to vector<1x1024xf32>
    %119 = arith.mulf %118, %117 : vector<1x1024xf32>
    %120 = arith.addf %115, %119 : vector<1x1024xf32>
    %121 = arith.addf %19, %120 : vector<1x1024xf32>
    %cst_14 = arith.constant 0.000000e+00 : f32
    %122 = vector.broadcast %cst_14 : f32 to vector<1x1024xf32>
    %123 = arith.cmpf oge, %121, %122 : vector<1x1024xf32>
    %cst_15 = arith.constant 2.000000e-01 : f32
    %124 = vector.broadcast %cst_15 : f32 to vector<1x1024xf32>
    %125 = arith.mulf %124, %121 : vector<1x1024xf32>
    %126 = arith.select %123, %121, %125 : vector<1x1024xi1>, vector<1x1024xf32>
    %127 = arith.maximumf %99, %126 : vector<1x1024xf32>
    %128 = arith.subf %99, %127 : vector<1x1024xf32>
    %129 = math.exp %128 : vector<1x1024xf32>
    %130 = arith.subf %126, %127 : vector<1x1024xf32>
    %131 = math.exp %130 : vector<1x1024xf32>
    %132 = arith.mulf %129, %105 : vector<1x1024xf32>
    %133 = arith.addf %132, %131 : vector<1x1024xf32>
    %134 = vector.broadcast %129 : vector<1x1024xf32> to vector<2x1024xf32>
    %135 = arith.mulf %134, %110 : vector<2x1024xf32>
    %136 = vector.broadcast %131 : vector<1x1024xf32> to vector<2x1024xf32>
    %137 = arith.mulf %136, %111 : vector<2x1024xf32>
    %138 = arith.addf %135, %137 : vector<2x1024xf32>
    %c384_i32 = arith.constant 384 : i32
    %139 = tpu.dynamic_rotate %0 by %c384_i32 dim 1 : vector<2x1024xf32>, i32 -> vector<2x1024xf32>
    %140 = vector.extract_strided_slice %2 {offsets = [0, 0], sizes = [1, 1], strides = [1, 1]} : vector<2x2xf32> to vector<1x1xf32>
    %141 = vector.extract_strided_slice %139 {offsets = [0, 0], sizes = [1, 1024], strides = [1, 1]} : vector<2x1024xf32> to vector<1x1024xf32>
    %142 = vector.broadcast %140 : vector<1x1xf32> to vector<1x1024xf32>
    %143 = arith.mulf %142, %141 : vector<1x1024xf32>
    %144 = vector.extract_strided_slice %2 {offsets = [1, 0], sizes = [1, 1], strides = [1, 1]} : vector<2x2xf32> to vector<1x1xf32>
    %145 = vector.extract_strided_slice %139 {offsets = [1, 0], sizes = [1, 1024], strides = [1, 1]} : vector<2x1024xf32> to vector<1x1024xf32>
    %146 = vector.broadcast %144 : vector<1x1xf32> to vector<1x1024xf32>
    %147 = arith.mulf %146, %145 : vector<1x1024xf32>
    %148 = arith.addf %143, %147 : vector<1x1024xf32>
    %149 = arith.addf %19, %148 : vector<1x1024xf32>
    %cst_16 = arith.constant 0.000000e+00 : f32
    %150 = vector.broadcast %cst_16 : f32 to vector<1x1024xf32>
    %151 = arith.cmpf oge, %149, %150 : vector<1x1024xf32>
    %cst_17 = arith.constant 2.000000e-01 : f32
    %152 = vector.broadcast %cst_17 : f32 to vector<1x1024xf32>
    %153 = arith.mulf %152, %149 : vector<1x1024xf32>
    %154 = arith.select %151, %149, %153 : vector<1x1024xi1>, vector<1x1024xf32>
    %155 = arith.maximumf %127, %154 : vector<1x1024xf32>
    %156 = arith.subf %127, %155 : vector<1x1024xf32>
    %157 = math.exp %156 : vector<1x1024xf32>
    %158 = arith.subf %154, %155 : vector<1x1024xf32>
    %159 = math.exp %158 : vector<1x1024xf32>
    %160 = arith.mulf %157, %133 : vector<1x1024xf32>
    %161 = arith.addf %160, %159 : vector<1x1024xf32>
    %162 = vector.broadcast %157 : vector<1x1024xf32> to vector<2x1024xf32>
    %163 = arith.mulf %162, %138 : vector<2x1024xf32>
    %164 = vector.broadcast %159 : vector<1x1024xf32> to vector<2x1024xf32>
    %165 = arith.mulf %164, %139 : vector<2x1024xf32>
    %166 = arith.addf %163, %165 : vector<2x1024xf32>
    %c256_i32 = arith.constant 256 : i32
    %167 = tpu.dynamic_rotate %0 by %c256_i32 dim 1 : vector<2x1024xf32>, i32 -> vector<2x1024xf32>
    %168 = vector.extract_strided_slice %2 {offsets = [0, 0], sizes = [1, 1], strides = [1, 1]} : vector<2x2xf32> to vector<1x1xf32>
    %169 = vector.extract_strided_slice %167 {offsets = [0, 0], sizes = [1, 1024], strides = [1, 1]} : vector<2x1024xf32> to vector<1x1024xf32>
    %170 = vector.broadcast %168 : vector<1x1xf32> to vector<1x1024xf32>
    %171 = arith.mulf %170, %169 : vector<1x1024xf32>
    %172 = vector.extract_strided_slice %2 {offsets = [1, 0], sizes = [1, 1], strides = [1, 1]} : vector<2x2xf32> to vector<1x1xf32>
    %173 = vector.extract_strided_slice %167 {offsets = [1, 0], sizes = [1, 1024], strides = [1, 1]} : vector<2x1024xf32> to vector<1x1024xf32>
    %174 = vector.broadcast %172 : vector<1x1xf32> to vector<1x1024xf32>
    %175 = arith.mulf %174, %173 : vector<1x1024xf32>
    %176 = arith.addf %171, %175 : vector<1x1024xf32>
    %177 = arith.addf %19, %176 : vector<1x1024xf32>
    %cst_18 = arith.constant 0.000000e+00 : f32
    %178 = vector.broadcast %cst_18 : f32 to vector<1x1024xf32>
    %179 = arith.cmpf oge, %177, %178 : vector<1x1024xf32>
    %cst_19 = arith.constant 2.000000e-01 : f32
    %180 = vector.broadcast %cst_19 : f32 to vector<1x1024xf32>
    %181 = arith.mulf %180, %177 : vector<1x1024xf32>
    %182 = arith.select %179, %177, %181 : vector<1x1024xi1>, vector<1x1024xf32>
    %183 = arith.maximumf %155, %182 : vector<1x1024xf32>
    %184 = arith.subf %155, %183 : vector<1x1024xf32>
    %185 = math.exp %184 : vector<1x1024xf32>
    %186 = arith.subf %182, %183 : vector<1x1024xf32>
    %187 = math.exp %186 : vector<1x1024xf32>
    %188 = arith.mulf %185, %161 : vector<1x1024xf32>
    %189 = arith.addf %188, %187 : vector<1x1024xf32>
    %190 = vector.broadcast %185 : vector<1x1024xf32> to vector<2x1024xf32>
    %191 = arith.mulf %190, %166 : vector<2x1024xf32>
    %192 = vector.broadcast %187 : vector<1x1024xf32> to vector<2x1024xf32>
    %193 = arith.mulf %192, %167 : vector<2x1024xf32>
    %194 = arith.addf %191, %193 : vector<2x1024xf32>
    %c128_i32 = arith.constant 128 : i32
    %195 = tpu.dynamic_rotate %0 by %c128_i32 dim 1 : vector<2x1024xf32>, i32 -> vector<2x1024xf32>
    %196 = vector.extract_strided_slice %2 {offsets = [0, 0], sizes = [1, 1], strides = [1, 1]} : vector<2x2xf32> to vector<1x1xf32>
    %197 = vector.extract_strided_slice %195 {offsets = [0, 0], sizes = [1, 1024], strides = [1, 1]} : vector<2x1024xf32> to vector<1x1024xf32>
    %198 = vector.broadcast %196 : vector<1x1xf32> to vector<1x1024xf32>
    %199 = arith.mulf %198, %197 : vector<1x1024xf32>
    %200 = vector.extract_strided_slice %2 {offsets = [1, 0], sizes = [1, 1], strides = [1, 1]} : vector<2x2xf32> to vector<1x1xf32>
    %201 = vector.extract_strided_slice %195 {offsets = [1, 0], sizes = [1, 1024], strides = [1, 1]} : vector<2x1024xf32> to vector<1x1024xf32>
    %202 = vector.broadcast %200 : vector<1x1xf32> to vector<1x1024xf32>
    %203 = arith.mulf %202, %201 : vector<1x1024xf32>
    %204 = arith.addf %199, %203 : vector<1x1024xf32>
    %205 = arith.addf %19, %204 : vector<1x1024xf32>
    %cst_20 = arith.constant 0.000000e+00 : f32
    %206 = vector.broadcast %cst_20 : f32 to vector<1x1024xf32>
    %207 = arith.cmpf oge, %205, %206 : vector<1x1024xf32>
    %cst_21 = arith.constant 2.000000e-01 : f32
    %208 = vector.broadcast %cst_21 : f32 to vector<1x1024xf32>
    %209 = arith.mulf %208, %205 : vector<1x1024xf32>
    %210 = arith.select %207, %205, %209 : vector<1x1024xi1>, vector<1x1024xf32>
    %211 = arith.maximumf %183, %210 : vector<1x1024xf32>
    %212 = arith.subf %183, %211 : vector<1x1024xf32>
    %213 = math.exp %212 : vector<1x1024xf32>
    %214 = arith.subf %210, %211 : vector<1x1024xf32>
    %215 = math.exp %214 : vector<1x1024xf32>
    %216 = arith.mulf %213, %189 : vector<1x1024xf32>
    %217 = arith.addf %216, %215 : vector<1x1024xf32>
    %218 = vector.broadcast %213 : vector<1x1024xf32> to vector<2x1024xf32>
    %219 = arith.mulf %218, %194 : vector<2x1024xf32>
    %220 = vector.broadcast %215 : vector<1x1024xf32> to vector<2x1024xf32>
    %221 = arith.mulf %220, %195 : vector<2x1024xf32>
    %222 = arith.addf %219, %221 : vector<2x1024xf32>
    %cst_22 = arith.constant 1.000000e+00 : f32
    %223 = vector.broadcast %cst_22 : f32 to vector<1x1024xf32>
    %224 = arith.divf %223, %217 : vector<1x1024xf32>
    %225 = vector.broadcast %224 : vector<1x1024xf32> to vector<2x1024xf32>
    %226 = arith.mulf %222, %225 : vector<2x1024xf32>
    %227 = vector.extract_strided_slice %3 {offsets = [0, 0], sizes = [16, 1], strides = [1, 1]} : vector<16x2xf32> to vector<16x1xf32>
    %228 = vector.extract_strided_slice %226 {offsets = [0, 0], sizes = [1, 1024], strides = [1, 1]} : vector<2x1024xf32> to vector<1x1024xf32>
    %229 = vector.broadcast %227 : vector<16x1xf32> to vector<16x1024xf32>
    %230 = vector.broadcast %228 : vector<1x1024xf32> to vector<16x1024xf32>
    %231 = arith.mulf %229, %230 : vector<16x1024xf32>
    %232 = vector.extract_strided_slice %3 {offsets = [0, 1], sizes = [16, 1], strides = [1, 1]} : vector<16x2xf32> to vector<16x1xf32>
    %233 = vector.extract_strided_slice %226 {offsets = [1, 0], sizes = [1, 1024], strides = [1, 1]} : vector<2x1024xf32> to vector<1x1024xf32>
    %234 = vector.broadcast %232 : vector<16x1xf32> to vector<16x1024xf32>
    %235 = vector.broadcast %233 : vector<1x1024xf32> to vector<16x1024xf32>
    %236 = arith.mulf %234, %235 : vector<16x1024xf32>
    %237 = arith.addf %231, %236 : vector<16x1024xf32>
    %c160 = arith.constant 160 : index
    %c0_23 = arith.constant 0 : index
    %238 = vector.load %arg3[%c160, %c0_23] : memref<248x32xf32, #tpu.memory_space<vmem>>, vector<16x1xf32>
    %239 = vector.broadcast %238 : vector<16x1xf32> to vector<16x1024xf32>
    %240 = arith.addf %237, %239 : vector<16x1024xf32>
    %cst_24 = arith.constant 0.000000e+00 : f32
    %241 = vector.broadcast %cst_24 : f32 to vector<16x1024xf32>
    %242 = arith.maximumf %240, %241 : vector<16x1024xf32>
    %243 = tpu.iota {dimensions = array<i32: 1>} : vector<1x1024xi32>
    %c128_i32_25 = arith.constant 128 : i32
    %244 = vector.broadcast %c128_i32_25 : i32 to vector<1x1024xi32>
    %245 = arith.cmpi slt, %243, %244 : vector<1x1024xi32>
    %c128_i32_26 = arith.constant 128 : i32
    %246 = tpu.dynamic_rotate %1 by %c128_i32_26 dim 1 : vector<16x1024xf32>, i32 -> vector<16x1024xf32>
    %cst_27 = arith.constant 0.000000e+00 : f32
    %247 = vector.shape_cast %245 : vector<1x1024xi1> to vector<1x1024xi1>
    %248 = vector.broadcast %247 : vector<1x1024xi1> to vector<16x1024xi1>
    %249 = vector.broadcast %cst_27 : f32 to vector<16x1024xf32>
    %250 = arith.select %248, %249, %246 : vector<16x1024xi1>, vector<16x1024xf32>
    %c896_i32_28 = arith.constant 896 : i32
    %251 = vector.broadcast %c896_i32_28 : i32 to vector<1x1024xi32>
    %252 = arith.cmpi sge, %243, %251 : vector<1x1024xi32>
    %c896_i32_29 = arith.constant 896 : i32
    %253 = tpu.dynamic_rotate %1 by %c896_i32_29 dim 1 : vector<16x1024xf32>, i32 -> vector<16x1024xf32>
    %cst_30 = arith.constant 0.000000e+00 : f32
    %254 = vector.shape_cast %252 : vector<1x1024xi1> to vector<1x1024xi1>
    %255 = vector.broadcast %254 : vector<1x1024xi1> to vector<16x1024xi1>
    %256 = vector.broadcast %cst_30 : f32 to vector<16x1024xf32>
    %257 = arith.select %255, %256, %253 : vector<16x1024xi1>, vector<16x1024xf32>
    %c24 = arith.constant 24 : index
    %c0_31 = arith.constant 0 : index
    %258 = vector.load %arg3[%c24, %c0_31] : memref<248x32xf32, #tpu.memory_space<vmem>>, vector<16x16xf32>
    %cst_32 = arith.constant dense<0.000000e+00> : vector<16x1024xf32>
    %259 = tpu.matmul %258, %250, %cst_32 {dimension_numbers = #tpu.dot_dimension_numbers<[1], [0], [0], [1], [0, 0, 1, 1], [], []>} : vector<16x16xf32>, vector<16x1024xf32>, vector<16x1024xf32> -> vector<16x1024xf32>
    %c40 = arith.constant 40 : index
    %c0_33 = arith.constant 0 : index
    %260 = vector.load %arg3[%c40, %c0_33] : memref<248x32xf32, #tpu.memory_space<vmem>>, vector<16x16xf32>
    %cst_34 = arith.constant dense<0.000000e+00> : vector<16x1024xf32>
    %261 = tpu.matmul %260, %1, %cst_34 {dimension_numbers = #tpu.dot_dimension_numbers<[1], [0], [0], [1], [0, 0, 1, 1], [], []>} : vector<16x16xf32>, vector<16x1024xf32>, vector<16x1024xf32> -> vector<16x1024xf32>
    %262 = arith.addf %259, %261 : vector<16x1024xf32>
    %c56 = arith.constant 56 : index
    %c0_35 = arith.constant 0 : index
    %263 = vector.load %arg3[%c56, %c0_35] : memref<248x32xf32, #tpu.memory_space<vmem>>, vector<16x16xf32>
    %cst_36 = arith.constant dense<0.000000e+00> : vector<16x1024xf32>
    %264 = tpu.matmul %263, %257, %cst_36 {dimension_numbers = #tpu.dot_dimension_numbers<[1], [0], [0], [1], [0, 0, 1, 1], [], []>} : vector<16x16xf32>, vector<16x1024xf32>, vector<16x1024xf32> -> vector<16x1024xf32>
    %265 = arith.addf %262, %264 : vector<16x1024xf32>
    %c176 = arith.constant 176 : index
    %c0_37 = arith.constant 0 : index
    %266 = vector.load %arg3[%c176, %c0_37] : memref<248x32xf32, #tpu.memory_space<vmem>>, vector<16x1xf32>
    %267 = vector.broadcast %266 : vector<16x1xf32> to vector<16x1024xf32>
    %268 = arith.addf %265, %267 : vector<16x1024xf32>
    %cst_38 = arith.constant 0.000000e+00 : f32
    %269 = vector.broadcast %cst_38 : f32 to vector<16x1024xf32>
    %270 = arith.maximumf %268, %269 : vector<16x1024xf32>
    %c72 = arith.constant 72 : index
    %c0_39 = arith.constant 0 : index
    %271 = vector.load %arg3[%c72, %c0_39] : memref<248x32xf32, #tpu.memory_space<vmem>>, vector<32x16xf32>
    %cst_40 = arith.constant dense<0.000000e+00> : vector<32x1024xf32>
    %272 = tpu.matmul %271, %242, %cst_40 {dimension_numbers = #tpu.dot_dimension_numbers<[1], [0], [0], [1], [0, 0, 1, 1], [], []>} : vector<32x16xf32>, vector<16x1024xf32>, vector<32x1024xf32> -> vector<32x1024xf32>
    %c104 = arith.constant 104 : index
    %c0_41 = arith.constant 0 : index
    %273 = vector.load %arg3[%c104, %c0_41] : memref<248x32xf32, #tpu.memory_space<vmem>>, vector<32x16xf32>
    %cst_42 = arith.constant dense<0.000000e+00> : vector<32x1024xf32>
    %274 = tpu.matmul %273, %270, %cst_42 {dimension_numbers = #tpu.dot_dimension_numbers<[1], [0], [0], [1], [0, 0, 1, 1], [], []>} : vector<32x16xf32>, vector<16x1024xf32>, vector<32x1024xf32> -> vector<32x1024xf32>
    %275 = arith.addf %272, %274 : vector<32x1024xf32>
    %c192 = arith.constant 192 : index
    %c0_43 = arith.constant 0 : index
    %276 = vector.load %arg3[%c192, %c0_43] : memref<248x32xf32, #tpu.memory_space<vmem>>, vector<32x1xf32>
    %277 = vector.broadcast %276 : vector<32x1xf32> to vector<32x1024xf32>
    %278 = arith.addf %275, %277 : vector<32x1024xf32>
    %cst_44 = arith.constant 0.000000e+00 : f32
    %279 = vector.broadcast %cst_44 : f32 to vector<32x1024xf32>
    %280 = arith.cmpf oge, %278, %279 : vector<32x1024xf32>
    %cst_45 = arith.constant 0.00999999977 : f32
    %281 = vector.broadcast %cst_45 : f32 to vector<32x1024xf32>
    %282 = arith.mulf %281, %278 : vector<32x1024xf32>
    %283 = arith.select %280, %278, %282 : vector<32x1024xi1>, vector<32x1024xf32>
    %c136 = arith.constant 136 : index
    %c0_46 = arith.constant 0 : index
    %284 = vector.load %arg3[%c136, %c0_46] : memref<248x32xf32, #tpu.memory_space<vmem>>, vector<24x32xf32>
    %cst_47 = arith.constant dense<0.000000e+00> : vector<24x1024xf32>
    %285 = tpu.matmul %284, %283, %cst_47 {dimension_numbers = #tpu.dot_dimension_numbers<[1], [0], [0], [1], [0, 0, 1, 1], [], []>} : vector<24x32xf32>, vector<32x1024xf32>, vector<24x1024xf32> -> vector<24x1024xf32>
    %c224 = arith.constant 224 : index
    %c0_48 = arith.constant 0 : index
    %286 = vector.load %arg3[%c224, %c0_48] : memref<248x32xf32, #tpu.memory_space<vmem>>, vector<24x1xf32>
    %287 = vector.broadcast %286 : vector<24x1xf32> to vector<24x1024xf32>
    %288 = arith.addf %285, %287 : vector<24x1024xf32>
    %c0_49 = arith.constant 0 : index
    %c0_50 = arith.constant 0 : index
    %289 = vector.load %arg4[%c0_49, %c0_50] : memref<24x1024xf32, #tpu.memory_space<vmem>>, vector<24x1024xf32>
    tpu.vector_store %arg4[%c0_49, %c0_50], %288 {strides = array<i32>} : memref<24x1024xf32, #tpu.memory_space<vmem>>, vector<24x1024xf32>,
    return
  }
  func.func @transform_0(%arg0: i32) -> (i32, i32) {
    %c0_i32 = arith.constant 0 : i32
    %c0_i32_0 = arith.constant 0 : i32
    return %c0_i32, %arg0 : i32, i32
  }
  func.func @transform_1(%arg0: i32) -> (i32, i32) {
    %c0_i32 = arith.constant 0 : i32
    %c0_i32_0 = arith.constant 0 : i32
    return %c0_i32, %arg0 : i32, i32
  }
  func.func @transform_2(%arg0: i32) -> (i32, i32) {
    %c0_i32 = arith.constant 0 : i32
    %c0_i32_0 = arith.constant 0 : i32
    %c0_i32_1 = arith.constant 0 : i32
    return %c0_i32, %c0_i32_0 : i32, i32
  }
  func.func @transform_3(%arg0: i32) -> (i32, i32) {
    %c0_i32 = arith.constant 0 : i32
    %c0_i32_0 = arith.constant 0 : i32
    return %c0_i32, %arg0 : i32, i32
  }
}

</mosaic_0001>

<bundles_post_ra>
// kernel: tpu_custom_call.1
= control target key start
LH: loop header
LB: loop body
LE: loop exit
PB: predicated region body
PF: predicated region fallthrough
CT: control target
= control target key end

     0   :  { %8 = vsyncpa [#allocation4], 0  ;;  %s6563_s0 = inlined_call_operand.vmem [shape: f32[2,2048], index: 0, kind: input, shape index: {}]   ;;  %s6564_s1 = inlined_call_operand.vmem [shape: f32[16,2048], index: 1, kind: input, shape index: {}]   ;;  %s6565_s2 = inlined_call_operand.vmem [shape: f32[248,32], index: 2, kind: input, shape index: {}]   ;;  %s6566_s3 = inlined_call_operand.hbm [shape: f32[24,2048], index: 3, kind: output, shape index: {}]  }
   0x1   :  { %10 = vsyncpa [#allocation4 + $0x1], 0  ;;  %s5263_s12 = smov 0   ;;  %s5265_s13 = smov 0  }
   0x2   :  { %s5267_s14 = smov 0   ;;  %s5269_s15 = smov 0  }
   0x3 LB: > { %s5284_s16 = sadd.s32 4294967295, %s5232_s15   ;;  %s4606_s17 = sadd.s32 4294967294, %s5232_s15   ;;  %s5232_s15 = sphi %s5269_s15, %s6619_s15   ;;  %s5228_s14 = sphi %s5267_s14, %s6618_s14   ;;  %s5224_s13 = sphi %s5265_s13, %s6617_s13   ;;  %s5220_s12 = sphi %s5263_s12, %s6616_s12  }
   0x4   : > { %s5288_s18 = sadd.s32 1, %s5232_s15   ;;  %s49_s19 = sadd.s32 1, %s5228_s14 }
   0x5   : > { %s46_s20 = ssub.s32 %s5232_s15, %s5288_s18  ;;  %p56_p0 = scmp.ne.s32.totalorder %s5228_s14, %s5224_s13 }
   0x6   : > { %p47_p1 = scmp.eq.s32.totalorder %s46_s20, 0  ;;  %p57_p2 = scmp.eq.s32.totalorder %s5232_s15, 0 }
   0x7   : > { %p107_p3 = scmp.eq.s32.totalorder %s5284_s16, 1  ;;  %p112_p4 = scmp.ne.s32.totalorder %s5224_s13, %s5220_s12 }
   0x8   : > { %s5300_s21 = scalar_select %p47_p1, %s5228_s14, %s49_s19  }
   0x9   : > { %p58_p5 = por %p57_p2, %p56_p0  ;;  %p5302_p6 = por %p107_p3, %p56_p0 }
   0xa   : > { %p113_p7 = scmp.eq.s32.totalorder %s4606_s17, 1  ;;  %p4608_p9 = scmp.ge.s32.totalorder %s5232_s15, 2 }
   0xc   : > { %p5306_p8 = por %p113_p7, %p112_p4  ;;  %132 = sbr.rel (%p4608_p9) target bundleno = 31 (0x1f), region = 20 }
  0x13   : > { %144 = sbr.rel (!%p58_p5) target bundleno = 31 (0x1f), region = 28  ;;  %s146_s24 = sand.u32 (%p58_p5), 1, %s5228_s14  }
  0x14   : > { %s4688_s25 = sshll.u32 (%p58_p5), %s5232_s15, 6  ;;  %s4609_s26 = sshll.u32 (%p58_p5), %s146_s24, 7 }
  0x15   : > { %s5318_s29 = scalar_lea.vmem (%p58_p5), %s6564_s1, %s4688_s25  ;;  %s148_s30 = scalar_lea.vmem (%p58_p5), [#allocation2], %s4609_s26 }
  0x16   : > { %v164_v0 = vld [vmem:[%s5318_s29] sm:$0xff] (%p58_p5)  ;;  %v166_v1 = vld [vmem:[%s5318_s29 + $0x8] sm:$0xff] (%p58_p5)  ;;  %v168_v2 = vld [vmem:[%s5318_s29 + $0x10] sm:$0xff] (%p58_p5) }
  0x17   : > { %165 = vst [vmem:[%s148_s30] sm:$0xff] (%p58_p5), %v164_v0  ;;  %167 = vst [vmem:[%s148_s30 + $0x8] sm:$0xff] (%p58_p5), %v166_v1  ;;  %v170_v3 = vld [vmem:[%s5318_s29 + $0x18] sm:$0xff] (%p58_p5)  ;;  %v172_v4 = vld [vmem:[%s5318_s29 + $0x20] sm:$0xff] (%p58_p5) }
  0x18   : > { %169 = vst [vmem:[%s148_s30 + $0x10] sm:$0xff] (%p58_p5), %v168_v2  ;;  %v174_v5 = vld [vmem:[%s5318_s29 + $0x28] sm:$0xff] (%p58_p5)  ;;  %171 = vst [vmem:[%s148_s30 + $0x18] sm:$0xff] (%p58_p5), %v170_v3  ;;  %v176_v6 = vld [vmem:[%s5318_s29 + $0x30] sm:$0xff] (%p58_p5) }
  0x19   : > { %173 = vst [vmem:[%s148_s30 + $0x20] sm:$0xff] (%p58_p5), %v172_v4  ;;  %175 = vst [vmem:[%s148_s30 + $0x28] sm:$0xff] (%p58_p5), %v174_v5  ;;  %v178_v7 = vld [vmem:[%s5318_s29 + $0x38] sm:$0xff] (%p58_p5)  ;;  %v180_v8 = vld [vmem:[%s5318_s29 + $0x80] sm:$0xff] (%p58_p5) }
  0x1a   : > { %177 = vst [vmem:[%s148_s30 + $0x30] sm:$0xff] %v176_v6  ;;  %179 = vst [vmem:[%s148_s30 + $0x38] sm:$0xff] %v178_v7  ;;  %v182_v9 = vld [vmem:[%s5318_s29 + $0x88] sm:$0xff]  ;;  %v184_v10 = vld [vmem:[%s5318_s29 + $0x90] sm:$0xff] }
  0x1b   : > { %181 = vst [vmem:[%s148_s30 + $0x40] sm:$0xff] %v180_v8  ;;  %v186_v11 = vld [vmem:[%s5318_s29 + $0x98] sm:$0xff]  ;;  %183 = vst [vmem:[%s148_s30 + $0x48] sm:$0xff] %v182_v9  ;;  %v188_v12 = vld [vmem:[%s5318_s29 + $0xa0] sm:$0xff] }
  0x1c   : > { %185 = vst [vmem:[%s148_s30 + $0x50] sm:$0xff] %v184_v10  ;;  %187 = vst [vmem:[%s148_s30 + $0x58] sm:$0xff] %v186_v11  ;;  %v190_v13 = vld [vmem:[%s5318_s29 + $0xa8] sm:$0xff]  ;;  %v192_v14 = vld [vmem:[%s5318_s29 + $0xb0] sm:$0xff] }
  0x1d   : > { %189 = vst [vmem:[%s148_s30 + $0x60] sm:$0xff] %v188_v12  ;;  %191 = vst [vmem:[%s148_s30 + $0x68] sm:$0xff] %v190_v13  ;;  %v194_v15 = vld [vmem:[%s5318_s29 + $0xb8] sm:$0xff] }
  0x1e   : > { %193 = vst [vmem:[%s148_s30 + $0x70] sm:$0xff] %v192_v14  ;;  %195 = vst [vmem:[%s148_s30 + $0x78] sm:$0xff] %v194_v15 }
  0x1f PF: > { %p4612_p10 = scmp.ge.s32.totalorder %s5232_s15, 1  ;;  %p200_p11 = scmp.lt.s32.totalorder %s5232_s15, 3 }
  0x21   : > { %p201_p12 = pnand %p4612_p10, %p200_p11 }
  0x23   : > { %204 = sbr.rel (%p201_p12) target bundleno = 1010 (0x3f2), region = 51 }
  0x2a   : > { %s5339_s4 = sand.u32 1, %s5224_s13   ;;  %v6572_v16 = vmov 0.0   ;;  %v5235_v17 = vmov 0   ;;  %v261_v18 = vld [vmem:[%s6565_s2 + $0x10] sm:$0x3]  ;;  %v2222_v30 = vld [vmem:[%s6565_s2 + $0x28] sm:$0xff]  ;;  %v271_v0 = vlaneseq }
  0x2b   : > { %s4613_s5 = sshll.u32 %s5339_s4, 7  ;;  %2295 = vmatprep.mubr.f32.mxu0 %v6572_v16  ;;  %2372 = vmatprep.mubr.f32.mxu1 %v6572_v16  ;;  %vm2224_vm0 = vcmask 130048   ;;  %v5236_v43 = vmov 1   ;;  %v2223_v45 = vld [vmem:[%s6565_s2 + $0x30] sm:$0xff]  ;;  %v5385_v47 = vld [vmem:[%s6565_s2 + $0x8] sm:$0xff]  ;;  %v5237_v48 = vmov 0.0|0.0  }
  0x2c   : > { %4920 = vset.pattern.permute.xlu0 %v5235_v17  ;;  %4922 = vset.pattern.permute.xlu1 %v5235_v17  ;;  %s209_s8 = scalar_lea.vmem [#allocation2], %s4613_s5  ;;  %v3185_v46 = vld [vmem:[%s6565_s2 + $0xb0] sm:$0xff]  ;;  %v3186_v49 = vld [vmem:[%s6565_s2 + $0xb8] sm:$0xff]  ;;  %v2087_v50 = vld [vmem:[%s6565_s2 + $0xa0] sm:$0xff]  ;;  %s4614_s19 = sshll.u32 %s5284_s16, 3  ;;  %v5491_v3 = vshrl.u32 %v271_v0, 7 }
  0x2d   : > { %v246_v19 = vld [vmem:[%s209_s8 + $0x8] sm:$0xff]  ;;  %v248_v21 = vld [vmem:[%s209_s8 + $0x18] sm:$0xff]  ;;  %266 = vperm.xlu0 %4920, %v261_v18   ;;  %v245_v24 = vld [vmem:[%s209_s8] sm:$0xff]  ;;  %3189 = vperm.xlu1 %4922, %v3185_v46   ;;  %p236_p13 = scmp.lt.s32.totalorder %s4614_s19, 15  ;;  %v5238_v1 = vmov 1983009808  }
  0x2e   : > { %v254_v20 = vld [vmem:[%s209_s8 + $0x48] sm:$0xff]  ;;  %v256_v23 = vld [vmem:[%s209_s8 + $0x58] sm:$0xff]  ;;  %v253_v25 = vld [vmem:[%s209_s8 + $0x40] sm:$0xff]  ;;  %v485_v2 = vunpack.c.l.s4 %v5238_v1  ;;  %6591 = vst [vmem:[#allocation6_spill] sm:$0xff] %v5491_v3  ;;  %v6570_v10 = vsub.s32 6, %v5491_v3  ;;  %v6568_v11 = vsub.s32 7, %v5491_v3 }
  0x2f   : > { %v5349_v22 = vpack.c.bf16 %v254_v20, %v246_v19  ;;  %v5351_v26 = vpack.c.bf16 %v256_v23, %v248_v21  ;;  %v4703_v27 = vpack.c.bf16 %v253_v25, %v245_v24  ;;  %v247_v28 = vld [vmem:[%s209_s8 + $0x10] sm:$0xff]  ;;  %v250_v31 = vld [vmem:[%s209_s8 + $0x28] sm:$0xff]  ;;  %v252_v34 = vld [vmem:[%s209_s8 + $0x38] sm:$0xff]  ;;  %s6621_s19 = smov (!%p236_p13, %s4614_s19), 15  ;;  %v6569_v15 = vsub.s32 5, %v5491_v3  ;;  %s4689_s10 = sshll.u32 %s5284_s16, 10 }
  0x30   : > { %v255_v29 = vld [vmem:[%s209_s8 + $0x50] sm:$0xff]  ;;  %v258_v33 = vld [vmem:[%s209_s8 + $0x68] sm:$0xff]  ;;  %v260_v35 = vld [vmem:[%s209_s8 + $0x78] sm:$0xff]  ;;  %s4615_s20 = sshll.u32 %s6621_s19, 1  ;;  %v486_v4 = vunpack.c.0.s8 %v485_v2  ;;  %v277_v19 = vsub.s32 2, %v5491_v3  ;;  %v6571_v20 = vsub.s32 3, %v5491_v3 }
  0x31   : > { %4702 = vmatprep.subr.bf16.mxu0 %v5349_v22  ;;  %v5357_v32 = vpack.c.bf16 %v255_v29, %v247_v28  ;;  %4706 = vmatprep.subr.bf16.mxu1 %v5351_v26  ;;  %v5360_v36 = vpack.c.bf16 %v258_v33, %v250_v31  ;;  %v5362_v37 = vpack.c.bf16 %v260_v35, %v252_v34  ;;  %v249_v38 = vld [vmem:[%s209_s8 + $0x20] sm:$0xff]  ;;  %v251_v40 = vld [vmem:[%s209_s8 + $0x30] sm:$0xff]  ;;  %v2220_v51 = vld [vmem:[%s6565_s2 + $0x18] sm:$0xff]  ;;  %s5489_s26 = scalar_lea.vmem %s6563_s0, %s4615_s20  ;;  %v6567_v33 = vsub.s32 4, %v5491_v3  ;;  %s6515_s20 = scalar_lea.hbm %s6566_s3, %s4689_s10 }
  0x32   : > { %4704 = vmatpush1.bf16.msra.mxu0 %v4703_v27  ;;  %v257_v39 = vld [vmem:[%s209_s8 + $0x60] sm:$0xff]  ;;  %v259_v42 = vld [vmem:[%s209_s8 + $0x70] sm:$0xff]  ;;  %4921 = vset.pattern.permute.xlu0 %v5236_v43  ;;  %v2853_v56 = vld [vmem:[%s6565_s2 + $0x38] sm:$0xff]  ;;  %v489_v7 = vsub.s32 %v486_v4, %v5491_v3  ;;  %s4872_s8 = smul.u32 192, %s5339_s4  ;;  %s4513_s16 = scalar_lea.sflag [#allocation4], %s5339_s4 }
  0x33   : > { %4708 = vmatpush1.bf16.msra.mxu1 %v5357_v32  ;;  %v4711_v41 = vpack.c.bf16 %v257_v39, %v249_v38  ;;  %4710 = vmatprep.subr.bf16.mxu0 %v5360_v36  ;;  %v4715_v44 = vpack.c.bf16 %v259_v42, %v251_v40  ;;  %v2221_v52 = vld [vmem:[%s6565_s2 + $0x20] sm:$0xff]  ;;  %v3975_v55 = vld [vmem:[%s6565_s2 + $0xd0] sm:$0xff]  ;;  %v2088_v59 = vld [vmem:[%s6565_s2 + $0xa8] sm:$0xff]  ;;  %s5239_s25 = smov [#allocation3]  }
  0x34   : > { %4714 = vmatprep.subr.bf16.mxu1 %v5362_v37  ;;  %400 = vperm.xlu0 %4921, %v261_v18   ;;  %v262_v53 = vld [vmem:[%s6565_s2] sm:$0xff]  ;;  %v4130_v60 = vld [vmem:[%s6565_s2 + $0xf0] sm:$0xff]  ;;  %v3974_v61 = vld [vmem:[%s6565_s2 + $0xc8] sm:$0xff]  ;;  %v5508_v18 = vsub.s32 0, %v5491_v3  ;;  %s6486_s9 = scalar_lea.vmem [#allocation3], %s4872_s8 }
  0x35   : > { %4616 = vmatmul.mubr.msk.f32.vlgmr.msra.gmra.mrb[0].mxu0 %vm2224_vm0, %v2222_v30  ;;  %3194 = vperm.xlu1 %4922, %v3186_v49   ;;  %v3973_v54 = vld [vmem:[%s6565_s2 + $0xc0] sm:$0xff]  ;;  %v3976_v62 = vld [vmem:[%s6565_s2 + $0xd8] sm:$0xff]  ;;  %v4129_v63 = vld [vmem:[%s6565_s2 + $0xe8] sm:$0xff]  ;;  %s4526_s11 = sshll.u32 %s6486_s9, 4  ;;  %s6517_s11 = int_to_ptr.vmem [resolvable:$true] %s4526_s11 }
  0x36   : > { %4618 = vmatmul.mubr.msk.f32.vlgmr.msra.gmra.mrb[0].mxu1 %vm2224_vm0, %v2222_v30  ;;  %2301 = vmatprep.mubr.f32.mxu0 %v6572_v16  ;;  %v2854_v57 = vld [vmem:[%s6565_s2 + $0x40] sm:$0xff]  ;;  %v244_v5 = vld [vmem:[%s5489_s26 + $0x8] sm:$0xff]  ;;  %s5170_s24 = scalar_lea.vmem %s6517_s11, 3072 }
  0x37   : > { %2378 = vmatprep.mubr.f32.mxu1 %v6572_v16  ;;  %4712 = vmatpush1.bf16.msra.mxu0 %v4711_v41  ;;  %v4128_v58 = vld [vmem:[%s6565_s2 + $0xe0] sm:$0xff]  ;;  %v500_v8 = vcombine.high %v244_v5, %v244_v5  ;;  %v5500_v13 = vrot.slane %v244_v5, %v489_v7  ;;  %p5171_p0 = scmp.ne.s32.totalorder %s6517_s11, %s5170_s24 }
  0x38   : > { %4716 = vmatpush1.bf16.msra.mxu1 %v4715_v44  ;;  %4718 = vmatprep.subr.bf16.mxu0 %v4703_v27  ;;  %v243_v6 = vld [vmem:[%s5489_s26] sm:$0xff]  ;;  %v5531_v27 = vsub.s32 1, %v5491_v3 }
  0x39   : > { %4617 = vmatmul.mubr.msk.f32.gmra.mrb[2].mxu0 %vm2224_vm0, %v2223_v45  ;;  %4721 = vmatprep.subr.bf16.mxu1 %v5357_v32  ;;  %v483_v9 = vcombine.high %v243_v6, %v243_v6  ;;  %v5498_v12 = vrot.slane %v243_v6, %v489_v7  ;;  %v5502_v14 = vrot.slane %v500_v8, %v489_v7  ;;  %p5172_p1 = pnand %p5171_p0, %p5302_p6 }
  0x3a   : > { %4619 = vmatmul.mubr.msk.f32.gmra.mrb[2].mxu1 %vm2224_vm0, %v2223_v45  ;;  %2449 = vmatprep.mubr.f32.mxu0 %v6572_v16  ;;  %v286_v21 = vrot.slane %v243_v6, %v6570_v10  ;;  %v5522_v24 = vcombine.high %v5500_v13, %v5500_v13  ;;  %v326_v31 = vrot.slane %v243_v6, %v6571_v20 }
  0x3b   : > { %2526 = vmatprep.mubr.f32.mxu1 %v6572_v16  ;;  %4923 = vset.pattern.permute.xlu0 %v5235_v17  ;;  %6592 = vst [vmem:[#allocation7_spill] sm:$0xff] %v5502_v14  ;;  %v5518_v23 = vcombine.high %v5498_v12, %v5498_v12  ;;  %v5526_v25 = vcombine.high %v5502_v14, %v5502_v14  ;;  %p5173_p2 = pneg %p5172_p1 }
  0x3c   : > { %1964 = vperm.xlu0 %4923, %v5385_v47   ;;  %1959 = vperm.xlu1 %4922, %v262_v53   ;;  %v322_v49 = vrot.slane %v243_v6, %v5531_v27 }
  0x3d   : > { %4620 = vmatmul.mubr.msk.f32.vlgmr.msra.gmra.mrb[4].mxu0 %vm2224_vm0, %v2222_v30 }
  0x3e   : > { %4622 = vmatmul.mubr.msk.f32.vlgmr.msra.gmra.mrb[4].mxu1 %vm2224_vm0, %v2222_v30  ;;  %2455 = vmatprep.mubr.f32.mxu0 %v6572_v16  ;;  %v278_v30 = vrot.slane %v243_v6, %v277_v19 }
  0x3f   : > { %2532 = vmatprep.mubr.f32.mxu1 %v6572_v16  ;;  %4719 = vmatpush1.bf16.msra.mxu0 %v5237_v48 }
  0x40   : > { %4723 = vmatpush1.bf16.msra.mxu1 %v5349_v22  ;;  %4725 = vmatprep.subr.bf16.mxu0 %v4711_v41 }
  0x41   : > { %4621 = vmatmul.mubr.msk.f32.gmra.mrb[6].mxu0 %vm2224_vm0, %v2223_v45  ;;  %4729 = vmatprep.subr.bf16.mxu1 %v4715_v44 }
  0x42   : > { %4623 = vmatmul.mubr.msk.f32.gmra.mrb[6].mxu1 %vm2224_vm0, %v2223_v45  ;;  %2609 = vmatprep.mubr.f32.mxu0 %v6572_v16 }
  0x43   : > { %2686 = vmatprep.mubr.f32.mxu1 %v6572_v16  ;;  %2091 = vperm.xlu0 %4923, %v2087_v50  }
  0x44   : > { %4924 = vset.pattern.permute.xlu1 %v5236_v43 }
  0x45   : > { %4624 = vmatmul.mubr.msk.f32.vlgmr.msra.gmra.mrb[0].mxu0 %vm2224_vm0, %v2220_v51  ;;  %2016 = vperm.xlu1 %4924, %v262_v53   ;;  %v5562_v53 = vrot.slane %v244_v5, %v277_v19 }
  0x46   : > { %4626 = vmatmul.mubr.msk.f32.vlgmr.msra.gmra.mrb[0].mxu1 %vm2224_vm0, %v2220_v51  ;;  %2615 = vmatprep.mubr.f32.mxu0 %v6572_v16 }
  0x47   : > { %2692 = vmatprep.mubr.f32.mxu1 %v6572_v16  ;;  %4727 = vmatpush1.bf16.msra.mxu0 %v5351_v26  ;;  %6594 = vst [vmem:[#allocation9_spill] sm:$0xff] %v5562_v53 }
  0x48   : > { %4731 = vmatpush1.bf16.msra.mxu1 %v5360_v36  ;;  %4733 = vmatprep.subr.bf16.mxu0 %v5357_v32  ;;  %v274_v32 = vrot.slane %v243_v6, %v5508_v18 }
  0x49   : > { %4625 = vmatmul.mubr.msk.f32.gmra.mrb[2].mxu0 %vm2224_vm0, %v2221_v52  ;;  %4737 = vmatprep.subr.bf16.mxu1 %v4711_v41 }
  0x4a   : > { %4627 = vmatmul.mubr.msk.f32.gmra.mrb[2].mxu1 %vm2224_vm0, %v2221_v52  ;;  %2763 = vmatprep.mubr.f32.mxu0 %v6572_v16 }
  0x4b   : > { %2840 = vmatprep.mubr.f32.mxu1 %v6572_v16  ;;  %3979 = vperm.xlu0 %4923, %v3973_v54  }
  0x4c   : > { %2020 = vperm.xlu1 %4924, %v5385_v47  }
  0x4d   : > { %4628 = vmatmul.mubr.msk.f32.vlgmr.msra.gmra.mrb[4].mxu0 %vm2224_vm0, %v2220_v51 }
  0x4e   : > { %4630 = vmatmul.mubr.msk.f32.vlgmr.msra.gmra.mrb[4].mxu1 %vm2224_vm0, %v2220_v51  ;;  %2769 = vmatprep.mubr.f32.mxu0 %v6572_v16 }
  0x4f   : > { %2846 = vmatprep.mubr.f32.mxu1 %v6572_v16  ;;  %4735 = vmatpush1.bf16.msra.mxu0 %v5349_v22  ;;  %v334_v22 = vrot.slane %v243_v6, %v6568_v11 }
  0x50   : > { %4739 = vmatpush1.bf16.msra.mxu1 %v5351_v26  ;;  %4741 = vmatprep.subr.bf16.mxu0 %v4715_v44  ;;  %v330_v26 = vrot.slane %v243_v6, %v6569_v15 }
  0x51   : > { %4629 = vmatmul.mubr.msk.f32.gmra.mrb[6].mxu0 %vm2224_vm0, %v2221_v52  ;;  %4745 = vmatprep.subr.bf16.mxu1 %v5362_v37 }
  0x52   : > { %4631 = vmatmul.mubr.msk.f32.gmra.mrb[6].mxu1 %vm2224_vm0, %v2221_v52  ;;  %2925 = vmatprep.mubr.f32.mxu0 %v6572_v16  ;;  %v282_v52 = vrot.slane %v243_v6, %v6567_v33 }
  0x53   : > { %3002 = vmatprep.mubr.f32.mxu1 %v6572_v16  ;;  %3989 = vperm.xlu0 %4923, %v3975_v55  }
  0x54   : > { %4925 = vset.pattern.permute.xlu1 %v5235_v17  ;;  %v5505_v17 = vrot.slane %v483_v9, %v489_v7 }
  0x55   : > { %4632 = vmatmul.mubr.msk.f32.vlgmr.msra.gmra.mrb[0].mxu0 %vm2224_vm0, %v2853_v56  ;;  %2096 = vperm.xlu1 %4925, %v2088_v59  }
  0x56   : > { %4634 = vmatmul.mubr.msk.f32.vlgmr.msra.gmra.mrb[0].mxu1 %vm2224_vm0, %v2853_v56  ;;  %2931 = vmatprep.mubr.f32.mxu0 %v6572_v16  ;;  %v5535_v28 = vcombine.high %v5505_v17, %v5505_v17 }
  0x57   : > { %3008 = vmatprep.mubr.f32.mxu1 %v6572_v16  ;;  %4743 = vmatpush1.bf16.msra.mxu0 %v5360_v36 }
  0x58   : > { %4747 = vmatpush3.bf16.msra.mxu1 %v5362_v37  ;;  %4133 = vperm.xlu0 %4923, %v4128_v58  }
  0x59   : > { %4633 = vmatmul.mubr.msk.f32.gmra.mrb[2].mxu0 %vm2224_vm0, %v2854_v57  ;;  %3984 = vperm.xlu1 %4925, %v3974_v61  }
  0x5a   : > { %4635 = vmatmul.mubr.msk.f32.gmra.mrb[2].mxu1 %vm2224_vm0, %v2854_v57  ;;  %3079 = vmatprep.mubr.f32.mxu0 %v6572_v16 }
  0x5b   : > { %4698 = vmatprep.mubr.msk.f32.mxu1 %vm2224_vm0, %v2853_v56 }
  0x5c   : > { %4143 = vperm.xlu0 %4923, %v4130_v60  }
  0x5d   : > { %4636 = vmatmul.mubr.msk.f32.vlgmr.msra.gmra.mrb[4].mxu0 %vm2224_vm0, %v2853_v56  ;;  %3994 = vperm.xlu1 %4925, %v3976_v62  }
  0x5e   : > { %4699 = vmatmul.mubr.msk.f32.vlgmr.msra.gmra.mrb[8].mxu1 %vm2224_vm0, %v2854_v57  ;;  %3085 = vmatprep.mubr.f32.mxu0 %v6572_v16 }
  0x5f   : > { %3313 = vmatprep.mubr.f32.mxu1 %v6572_v16 }
  0x61   : > { %4637 = vmatmul.mubr.msk.f32.gmra.mrb[6].mxu0 %vm2224_vm0, %v2854_v57  ;;  %4138 = vperm.xlu1 %4925, %v4129_v63  }
  0x62   : > { %3402 = vmatprep.mubr.f32.mxu0 %v6572_v16 }
  0xac   : > { %v5537_v29 = vpop.permute.xlu0 %266 }
  0xad   : > { %6593 = vst [vmem:[#allocation8_spill] sm:$0xff] %v5537_v29  ;;  %v314_v34 = vmul.f32 %v286_v21, %v5537_v29  ;;  %v362_v35 = vmul.f32 %v334_v22, %v5537_v29  ;;  %v525_v36 = vmul.f32 %v5518_v23, %v5537_v29  ;;  %v526_v37 = vmul.f32 %v5505_v17, %v5537_v29 }
  0xae   : > { %v528_v38 = vmul.f32 %v5500_v13, %v5537_v29  ;;  %v529_v39 = vmul.f32 %v5522_v24, %v5537_v29  ;;  %v530_v40 = vmul.f32 %v5502_v14, %v5537_v29  ;;  %v531_v41 = vmul.f32 %v5526_v25, %v5537_v29 }
  0xaf   : > { %v378_v42 = vrot.slane %v362_v35, 1  ;;  %v532_v43 = vmul.f32 %v5498_v12, %v5537_v29  ;;  %v541_v44 = vrot.slane %v525_v36, 1  ;;  %v542_v45 = vrot.slane %v526_v37, 1 }
  0xb0   : > { %v544_v46 = vrot.slane %v528_v38, 1  ;;  %v545_v47 = vrot.slane %v529_v39, 1  ;;  %v546_v48 = vrot.slane %v530_v40, 1  ;;  %v547_v51 = vrot.slane %v531_v41, 1 }
  0xb1   : > { %v394_v50 = vadd.f32 %v378_v42, %v314_v34  ;;  %v548_v54 = vrot.slane %v532_v43, 1  ;;  %v5564_v55 = vadd.f32 %v541_v44, %v525_v36  ;;  %v5566_v56 = vadd.f32 %v542_v45, %v526_v37 }
  0xb2   : > { %v5568_v57 = vadd.f32 %v544_v46, %v528_v38  ;;  %v5572_v59 = vadd.f32 %v545_v47, %v529_v39  ;;  %v312_v60 = vmul.f32 %v278_v30, %v5537_v29  ;;  %v360_v61 = vmul.f32 %v326_v31, %v5537_v29 }
  0xb3   : > { %v5570_v58 = vpop.permute.xlu0 %400  ;;  %v527_v62 = vmul.f32 %v5535_v28, %v5537_v29  ;;  %v5583_v2 = vadd.f32 %v546_v48, %v530_v40  ;;  %v5588_v19 = vadd.f32 %v547_v51, %v531_v41  ;;  %v5590_v34 = vadd.f32 %v548_v54, %v532_v43 }
  0xb4   : > { %6595 = vst [vmem:[#allocation10_spill] sm:$0xff] %v5568_v57  ;;  %6596 = vst [vmem:[#allocation11_spill] sm:$0xff] %v5570_v58  ;;  %v5579_v63 = vmul.f32 %v5570_v58, %v330_v26  ;;  %v406_v0 = vmul.f32 %v5570_v58, %v286_v21  ;;  %v414_v1 = vmul.f32 %v5570_v58, %v334_v22  ;;  %v376_v4 = vrot.slane %v360_v61, 1 }
  0xb5   : > { %6597 = vst [vmem:[#allocation12_spill] sm:$0xff] %v5572_v59  ;;  %v404_v5 = vmul.f32 %v5570_v58, %v278_v30  ;;  %v412_v6 = vmul.f32 %v5570_v58, %v326_v31  ;;  %v543_v7 = vrot.slane %v527_v62, 1  ;;  %v5593_v21 = vmul.f32 %v274_v32, %v5537_v29 }
  0xb6   : > { %v430_v9 = vrot.slane %v414_v1, 1  ;;  %v392_v35 = vadd.f32 %v376_v4, %v312_v60  ;;  %v5596_v22 = vmul.f32 %v322_v49, %v5537_v29  ;;  %v5601_v31 = vmul.f32 %v5570_v58, %v274_v32 }
  0xb7   : > { %v428_v36 = vrot.slane %v412_v6, 1  ;;  %v5598_v30 = vadd.f32 %v543_v7, %v527_v62  ;;  %v5604_v38 = vmul.f32 %v5570_v58, %v322_v49  ;;  %v5610_v41 = vmul.f32 %v282_v52, %v5537_v29 }
  0xb8   : > { %v446_v37 = vadd.f32 %v430_v9, %v406_v0  ;;  %v5613_v42 = vmul.f32 %v330_v26, %v5537_v29  ;;  %v5623_v4 = vmul.f32 %v5570_v58, %v282_v52 }
  0xb9   : > { %v5606_v39 = vadd.f32 %v428_v36, %v404_v5 }
  0xba   : > { %v454_v43 = vadd.f32 %v446_v37, %v394_v50  ;;  %v568_v44 = vadd.f32 %v5568_v57, %v446_v37  ;;  %v752_v45 = vadd.f32 %v5572_v59, %v446_v37  ;;  %v944_v32 = vadd.f32 %v5583_v2, %v446_v37 }
  0xbb   : > { %v1136_v46 = vadd.f32 %v5588_v19, %v446_v37  ;;  %v1328_v47 = vadd.f32 %v5590_v34, %v446_v37  ;;  %v1520_v48 = vadd.f32 %v5564_v55, %v446_v37  ;;  %v1712_v49 = vadd.f32 %v5566_v56, %v446_v37 }
  0xbc   : > { %vm462_vm1 = vcmp.ge.f32.partialorder %v454_v43, 0.0  ;;  %v470_v51 = vmul.f32 0.2, %v454_v43  ;;  %vm576_vm2 = vcmp.ge.f32.partialorder %v568_v44, 0.0  ;;  %v584_v26 = vmul.f32 0.2, %v568_v44 }
  0xbd   : > { %vm760_vm3 = vcmp.ge.f32.partialorder %v752_v45, 0.0  ;;  %v768_v50 = vmul.f32 0.2, %v752_v45  ;;  %vm952_vm4 = vcmp.ge.f32.partialorder %v944_v32, 0.0  ;;  %v960_v54 = vmul.f32 0.2, %v944_v32 }
  0xbe   : > { %v478_v60 = vsel %vm462_vm1, %v454_v43, %v470_v51  ;;  %v592_v61 = vsel %vm576_vm2, %v568_v44, %v584_v26  ;;  %vm1144_vm5 = vcmp.ge.f32.partialorder %v1136_v46, 0.0  ;;  %v1152_v62 = vmul.f32 0.2, %v1136_v46 }
  0xbf   : > { %v600_v0 = vmax.f32 %v478_v60, %v592_v61  ;;  %v776_v1 = vsel %vm760_vm3, %v752_v45, %v768_v50  ;;  %vm1336_vm6 = vcmp.ge.f32.partialorder %v1328_v47, 0.0  ;;  %v968_v5 = vsel %vm952_vm4, %v944_v32, %v960_v54 }
  0xc0   : > { %v1344_v6 = vmul.f32 0.2, %v1328_v47  ;;  %vm1528_vm7 = vcmp.ge.f32.partialorder %v1520_v48, 0.0  ;;  %v1536_v7 = vmul.f32 0.2, %v1520_v48  ;;  %v1160_v33 = vsel %vm1144_vm5, %v1136_v46, %v1152_v62 }
  0xc1   : > { %v608_v9 = vsub.f32 %v478_v60, %v600_v0  ;;  %v632_v36 = vsub.f32 %v592_v61, %v600_v0  ;;  %v784_v37 = vmax.f32 %v600_v0, %v776_v1  ;;  %vm1720_vm8 = vcmp.ge.f32.partialorder %v1712_v49, 0.0 }
  0xc2   : > { %v1352_v11 = vsel %vm1336_vm6, %v1328_v47, %v1344_v6  ;;  %v1544_v15 = vsel %vm1528_vm7, %v1520_v48, %v1536_v7  ;;  %v452_v43 = vadd.f32 %v5606_v39, %v392_v35  ;;  %v1728_v52 = vmul.f32 0.2, %v1712_v49 }
  0xc3   : > { %v619_v44 = vmul.f32 1.442695, %v608_v9  ;;  %v643_v51 = vmul.f32 1.442695, %v632_v36  ;;  %v792_v45 = vsub.f32 %v600_v0, %v784_v37  ;;  %v816_v26 = vsub.f32 %v776_v1, %v784_v37 }
  0xc4   : > { %v976_v50 = vmax.f32 %v784_v37, %v968_v5  ;;  %vm460_vm9 = vcmp.ge.f32.partialorder %v452_v43, 0.0  ;;  %v468_v32 = vmul.f32 0.2, %v452_v43  ;;  %v566_v60 = vadd.f32 %v5566_v56, %v5606_v39 }
  0xc5   : > { %4928 = vpow2.f32 %v619_v44  ;;  %v803_v54 = vmul.f32 1.442695, %v792_v45  ;;  %v827_v10 = vmul.f32 1.442695, %v816_v26  ;;  %v1736_v9 = vsel %vm1720_vm8, %v1712_v49, %v1728_v52 }
  0xc6   : > { %4930 = vpow2.f32 %v643_v51  ;;  %v984_v46 = vsub.f32 %v784_v37, %v976_v50  ;;  %v1008_v47 = vsub.f32 %v968_v5, %v976_v50  ;;  %v1168_v48 = vmax.f32 %v976_v50, %v1160_v33 }
  0xc7   : > { %4932 = vpow2.f32 %v803_v54  ;;  %v476_v35 = vsel %vm460_vm9, %v452_v43, %v468_v32  ;;  %vm574_vm10 = vcmp.ge.f32.partialorder %v566_v60, 0.0  ;;  %v582_v61 = vmul.f32 0.2, %v566_v60 }
  0xc8   : > { %4934 = vpow2.f32 %v827_v10  ;;  %v995_v62 = vmul.f32 1.442695, %v984_v46  ;;  %v1019_v0 = vmul.f32 1.442695, %v1008_v47  ;;  %v1176_v1 = vsub.f32 %v976_v50, %v1168_v48 }
  0xc9   : > { %v1200_v6 = vsub.f32 %v1160_v33, %v1168_v48  ;;  %v1360_v7 = vmax.f32 %v1168_v48, %v1352_v11  ;;  %v590_v36 = vsel %vm574_vm10, %v566_v60, %v582_v61  ;;  %v750_v5 = vadd.f32 %v5598_v30, %v5606_v39 }
  0xca   : > { %4936 = vpow2.f32 %v995_v62  ;;  %v1187_v44 = vmul.f32 1.442695, %v1176_v1  ;;  %v5629_v45 = vmax.f32 %v476_v35, %v590_v36  ;;  %v5637_v52 = vadd.f32 %v5568_v57, %v5606_v39 }
  0xcb   : > { %4938 = vpow2.f32 %v1019_v0  ;;  %v1211_v37 = vmul.f32 1.442695, %v1200_v6  ;;  %v1368_v43 = vsub.f32 %v1168_v48, %v1360_v7  ;;  %v1392_v51 = vsub.f32 %v1352_v11, %v1360_v7 }
  0xcc   : > { %4940 = vpow2.f32 %v1187_v44  ;;  %v1552_v10 = vmax.f32 %v1360_v7, %v1544_v15  ;;  %v606_v26 = vsub.f32 %v476_v35, %v5629_v45  ;;  %v630_v33 = vsub.f32 %v590_v36, %v5629_v45 }
  0xcd   : > { %4942 = vpow2.f32 %v1211_v37  ;;  %v1379_v49 = vmul.f32 1.442695, %v1368_v43  ;;  %v1403_v50 = vmul.f32 1.442695, %v1392_v51  ;;  %vm758_vm11 = vcmp.ge.f32.partialorder %v750_v5, 0.0 }
  0xce   : > { %v1560_v32 = vsub.f32 %v1360_v7, %v1552_v10  ;;  %v1584_v54 = vsub.f32 %v1544_v15, %v1552_v10  ;;  %v1744_v60 = vmax.f32 %v1552_v10, %v1736_v9  ;;  %v615_v11 = vmul.f32 1.442695, %v606_v26 }
  0xcf   : > { %v4929_v46 = vpop.eup %4928  ;;  %4944 = vpow2.f32 %v1379_v49  ;;  %v639_v47 = vmul.f32 1.442695, %v630_v33  ;;  %v766_v48 = vmul.f32 0.2, %v750_v5  ;;  %vm950_vm12 = vcmp.ge.f32.partialorder %v5637_v52, 0.0 }
  0xd0   : > { %v4931_v61 = vpop.eup %4930  ;;  %v676_v35 = vrot.slane %v4929_v46, %v5508_v18  ;;  %4946 = vpow2.f32 %v1403_v50  ;;  %v1571_v62 = vmul.f32 1.442695, %v1560_v32  ;;  %v1595_v0 = vmul.f32 1.442695, %v1584_v54 }
  0xd1   : > { %v4933_v1 = vpop.eup %4932  ;;  %v656_v6 = vadd.f32 %v4931_v61, %v4929_v46  ;;  %v716_v36 = vrot.slane %v4931_v61, %v5508_v18  ;;  %v1752_v44 = vsub.f32 %v1552_v10, %v1744_v60  ;;  %v1776_v7 = vsub.f32 %v1736_v9, %v1744_v60 }
  0xd2   : > { %v4935_v15 = vpop.eup %4934  ;;  %v696_v37 = vmul.f32 %v676_v35, %v5535_v28  ;;  %v868_v43 = vrot.slane %v4933_v1, %v5508_v18  ;;  %4948 = vpow2.f32 %v1571_v62  ;;  %v774_v51 = vsel %vm758_vm11, %v750_v5, %v766_v48 }
  0xd3   : > { %v736_v26 = vmul.f32 %v716_v36, %v5500_v13  ;;  %v840_v33 = vmul.f32 %v4933_v1, %v656_v6  ;;  %v908_v49 = vrot.slane %v4935_v15, %v5508_v18  ;;  %4950 = vpow2.f32 %v1595_v0 }
  0xd4   : > { %v4937_v50 = vpop.eup %4936  ;;  %v1763_v32 = vmul.f32 1.442695, %v1752_v44  ;;  %v1787_v54 = vmul.f32 1.442695, %v1776_v7  ;;  %4952 = vpow2.f32 %v615_v11  ;;  %v5647_v9 = vmax.f32 %v5629_v45, %v774_v51 }
  0xd5   : > { %v4939_v10 = vpop.eup %4938  ;;  %v744_v60 = vadd.f32 %v736_v26, %v696_v37  ;;  %v848_v46 = vadd.f32 %v4935_v15, %v840_v33  ;;  %v928_v61 = vmul.f32 %v908_v49, %v5522_v24  ;;  %v1060_v6 = vrot.slane %v4937_v50, %v5508_v18 }
  0xd6   : > { %v4941_v5 = vpop.eup %4940  ;;  %v1100_v48 = vrot.slane %v4939_v10, %v5508_v18  ;;  %4954 = vpow2.f32 %v1763_v32  ;;  %v790_v35 = vsub.f32 %v5629_v45, %v5647_v9  ;;  %v814_v62 = vsub.f32 %v774_v51, %v5647_v9 }
  0xd7   : > { %v4943_v11 = vpop.eup %4942  ;;  %v888_v0 = vmul.f32 %v868_v43, %v744_v60  ;;  %v1032_v1 = vmul.f32 %v4937_v50, %v848_v46  ;;  %4956 = vpow2.f32 %v1787_v54  ;;  %v958_v45 = vmul.f32 0.2, %v5637_v52 }
  0xd8   : > { %v1120_v36 = vmul.f32 %v1100_v48, %v5502_v14  ;;  %v1292_v44 = vrot.slane %v4943_v11, %v5508_v18  ;;  %4958 = vpow2.f32 %v639_v47  ;;  %v799_v7 = vmul.f32 1.442695, %v790_v35 }
  0xd9   : > { %v4945_v15 = vpop.eup %4944  ;;  %v936_v37 = vadd.f32 %v928_v61, %v888_v0  ;;  %v1040_v26 = vadd.f32 %v4939_v10, %v1032_v1  ;;  %v823_v33 = vmul.f32 1.442695, %v814_v62  ;;  %v1252_v51 = vrot.slane %v4941_v5, %v5508_v18 }
  0xda   : > { %v4947_v49 = vpop.eup %4946  ;;  %v1312_v43 = vmul.f32 %v1292_v44, %v5526_v25  ;;  %4960 = vpow2.f32 %v799_v7  ;;  %v1134_v50 = vadd.f32 %v5572_v59, %v5606_v39  ;;  %v966_v10 = vsel %vm950_vm12, %v5637_v52, %v958_v45 }
  0xdb   : > { %v1080_v32 = vmul.f32 %v1060_v6, %v936_v37  ;;  %v1224_v54 = vmul.f32 %v4941_v5, %v1040_v26  ;;  %v1484_v47 = vrot.slane %v4947_v49, %v5508_v18  ;;  %4962 = vpow2.f32 %v823_v33  ;;  %v5674_v37 = vpop.permute.xlu1 %3189 }
  0xdc   : > { %v4949_v60 = vpop.eup %4948  ;;  %vm1142_vm13 = vcmp.ge.f32.partialorder %v1134_v50, 0.0  ;;  %v1150_v46 = vmul.f32 0.2, %v1134_v50  ;;  %v1326_v61 = vadd.f32 %v5583_v2, %v5606_v39  ;;  %v1444_v0 = vrot.slane %v4945_v15, %v5508_v18 }
  0xdd   : > { %v4951_v48 = vpop.eup %4950  ;;  %v1128_v35 = vadd.f32 %v1120_v36, %v1080_v32  ;;  %v1232_v62 = vadd.f32 %v4943_v11, %v1224_v54  ;;  %v1504_v5 = vmul.f32 %v1484_v47, %v5498_v12  ;;  %v1636_v6 = vrot.slane %v4949_v60, %v5508_v18 }
  0xde   : > { %v4953_v1 = vpop.eup %4952  ;;  %v1676_v44 = vrot.slane %v4951_v48, %v5508_v18  ;;  %v974_v7 = vmax.f32 %v5647_v9, %v966_v10  ;;  %v1158_v52 = vsel %vm1142_vm13, %v1134_v50, %v1150_v46  ;;  %vm1334_vm14 = vcmp.ge.f32.partialorder %v1326_v61, 0.0 }
  0xdf   : > { %v1272_v26 = vmul.f32 %v1252_v51, %v1128_v35  ;;  %v1416_v33 = vmul.f32 %v4945_v15, %v1232_v62  ;;  %v668_v45 = vrot.slane %v4953_v1, %v5508_v18  ;;  %v1342_v47 = vmul.f32 0.2, %v1326_v61 }
  0xe0   : > { %v4955_v11 = vpop.eup %4954  ;;  %v982_v36 = vsub.f32 %v5647_v9, %v974_v7  ;;  %v1006_v32 = vsub.f32 %v966_v10, %v974_v7  ;;  %v1166_v54 = vmax.f32 %v974_v7, %v1158_v52  ;;  %v1696_v40 = vmul.f32 %v1676_v44, %v5518_v23 }
  0xe1   : > { %v4957_v20 = vpop.eup %4956  ;;  %v1320_v16 = vadd.f32 %v1312_v43, %v1272_v26  ;;  %v1424_v8 = vadd.f32 %v4947_v49, %v1416_v33  ;;  %v694_v50 = vmul.f32 %v668_v45, %v5518_v23  ;;  %v1828_v29 = vrot.slane %v4955_v11, %v5508_v18  ;;  %v5683_v26 = vpop.permute.xlu1 %3194 }
  0xe2   : > { %v4959_v46 = vpop.eup %4958  ;;  %v1868_v51 = vrot.slane %v4957_v20, %v5508_v18  ;;  %v991_v15 = vmul.f32 1.442695, %v982_v36  ;;  %v1015_v35 = vmul.f32 1.442695, %v1006_v32  ;;  %v1174_v62 = vsub.f32 %v974_v7, %v1166_v54 }
  0xe3   : > { %v1464_v58 = vmul.f32 %v1444_v0, %v1320_v16  ;;  %v1608_v3 = vmul.f32 %v4949_v60, %v1424_v8  ;;  %v654_v53 = vadd.f32 %v4959_v46, %v4953_v1  ;;  %v708_v9 = vrot.slane %v4959_v46, %v5508_v18 }
  0xe4   : > { %v4961_v10 = vpop.eup %4960  ;;  %4964 = vpow2.f32 %v991_v15  ;;  %v1183_v49 = vmul.f32 1.442695, %v1174_v62  ;;  %v1198_v43 = vsub.f32 %v1158_v52, %v1166_v54  ;;  %v1888_v36 = vmul.f32 %v1868_v51, %v5505_v17 }
  0xe5   : > { %v4963_v44 = vpop.eup %4962  ;;  %v1512_v33 = vadd.f32 %v1504_v5, %v1464_v58  ;;  %v1616_v45 = vadd.f32 %v4951_v48, %v1608_v3  ;;  %v734_v7 = vmul.f32 %v708_v9, %v5505_v17  ;;  %v860_v16 = vrot.slane %v4961_v10, %v5508_v18 }
  0xe6   : > { %v900_v8 = vrot.slane %v4963_v44, %v5508_v18  ;;  %4966 = vpow2.f32 %v1015_v35  ;;  %v1207_v60 = vmul.f32 1.442695, %v1198_v43  ;;  %v838_v46 = vmul.f32 %v4961_v10, %v654_v53 }
  0xe7   : > { %v1656_v0 = vmul.f32 %v1636_v6, %v1512_v33  ;;  %v1800_v1 = vmul.f32 %v4955_v11, %v1616_v45  ;;  %v742_v32 = vadd.f32 %v734_v7, %v694_v50  ;;  %4968 = vpow2.f32 %v1183_v49  ;;  %v5695_v11 = vpop.permute.xlu1 %1959 }
  0xe8   : > { %v926_v52 = vmul.f32 %v900_v8, %v5535_v28  ;;  %v1350_v58 = vsel %vm1334_vm14, %v1326_v61, %v1342_v47  ;;  %v1518_v3 = vadd.f32 %v5588_v19, %v5606_v39  ;;  %4970 = vpow2.f32 %v1207_v60 }
  0xe9   : > { %v1704_v48 = vadd.f32 %v1696_v40, %v1656_v0  ;;  %v1808_v5 = vadd.f32 %v4957_v20, %v1800_v1  ;;  %v886_v51 = vmul.f32 %v860_v16, %v742_v32  ;;  %v1358_v15 = vmax.f32 %v1166_v54, %v1350_v58 }
  0xea   : > { %vm1526_vm15 = vcmp.ge.f32.partialorder %v1518_v3, 0.0  ;;  %v1534_v35 = vmul.f32 0.2, %v1518_v3  ;;  %v1710_v6 = vadd.f32 %v5590_v34, %v5606_v39  ;;  %v846_v50 = vadd.f32 %v4963_v44, %v838_v46 }
  0xeb   : > { %v1848_v53 = vmul.f32 %v1828_v29, %v1704_v48  ;;  %4972 = vrcp.f32 %v1808_v5  ;;  %v934_v62 = vadd.f32 %v926_v52, %v886_v51  ;;  %v1366_v61 = vsub.f32 %v1166_v54, %v1358_v15 }
  0xec   : > { %v1390_v47 = vsub.f32 %v1350_v58, %v1358_v15  ;;  %v1542_v9 = vsel %vm1526_vm15, %v1518_v3, %v1534_v35  ;;  %v6598_v20 = vrot.slane %v5596_v22, 1  ;;  %vm1718_vm1 = vcmp.ge.f32.partialorder %v1710_v6, 0.0 }
  0xed   : > { %v1550_v10 = vmax.f32 %v1358_v15, %v1542_v9  ;;  %v1726_v49 = vmul.f32 0.2, %v1710_v6  ;;  %v427_v43 = vrot.slane %v5604_v38, 1  ;;  %v1896_v39 = vadd.f32 %v1888_v36, %v1848_v53  ;;  %v5711_v36 = vpop.permute.xlu1 %2016 }
  0xee   : > { %v391_v40 = vadd.f32 %v6598_v20, %v5593_v21  ;;  %v4965_v33 = vpop.eup %4964  ;;  %v1375_v45 = vmul.f32 1.442695, %v1366_v61  ;;  %v1399_v7 = vmul.f32 1.442695, %v1390_v47  ;;  %v377_v29 = vrot.slane %v5613_v42, 1 }
  0xef   : > { %v1030_v44 = vmul.f32 %v4965_v33, %v846_v50  ;;  %v1052_v54 = vrot.slane %v4965_v33, %v5508_v18  ;;  %v1558_v16 = vsub.f32 %v1358_v15, %v1550_v10  ;;  %v1582_v8 = vsub.f32 %v1542_v9, %v1550_v10 }
  0xf0   : > { %v4967_v60 = vpop.eup %4966  ;;  %4974 = vpow2.f32 %v1375_v45  ;;  %v1734_v22 = vsel %vm1718_vm1, %v1710_v6, %v1726_v49  ;;  %v5704_v21 = vadd.f32 %v427_v43, %v5601_v31  ;;  %v6599_v38 = vrot.slane %v5579_v63, 1  ;;  %v5724_v49 = vpop.permute.xlu0 %1964 }
  0xf1   : > { %v1038_v1 = vadd.f32 %v4967_v60, %v1030_v44  ;;  %v1078_v42 = vmul.f32 %v1052_v54, %v934_v62  ;;  %v1092_v32 = vrot.slane %v4967_v60, %v5508_v18  ;;  %4976 = vpow2.f32 %v1399_v7  ;;  %v4969_v46 = vpop.eup %4968 }
  0xf2   : > { %v5709_v0 = vadd.f32 %v6599_v38, %v5623_v4  ;;  %v1567_v52 = vmul.f32 1.442695, %v1558_v16  ;;  %v1591_v58 = vmul.f32 1.442695, %v1582_v8  ;;  %v1742_v3 = vmax.f32 %v1550_v10, %v1734_v22  ;;  %v4971_v31 = vpop.eup %4970 }
  0xf3   : > { %v451_v48 = vadd.f32 %v5704_v21, %v391_v40  ;;  %v1118_v5 = vmul.f32 %v1092_v32, %v5500_v13  ;;  %v1222_v51 = vmul.f32 %v4969_v46, %v1038_v1  ;;  %v1244_v63 = vrot.slane %v4969_v46, %v5508_v18  ;;  %v5722_v40 = vpop.permute.xlu1 %2020 }
  0xf4   : > { %v565_v4 = vadd.f32 %v5564_v55, %v5704_v21  ;;  %v1284_v15 = vrot.slane %v4971_v31, %v5508_v18  ;;  %4978 = vpow2.f32 %v1567_v52  ;;  %v1750_v35 = vsub.f32 %v1550_v10, %v1742_v3 }
  0xf5   : > { %v1774_v6 = vsub.f32 %v1734_v22, %v1742_v3  ;;  %v4973_v53 = vpop.eup %4972  ;;  %v1126_v50 = vadd.f32 %v1118_v5, %v1078_v42  ;;  %v1230_v62 = vadd.f32 %v4971_v31, %v1222_v51  ;;  %4980 = vpow2.f32 %v1591_v58  ;;  %v5743_v31 = vpop.permute.xlu0 %2091 }
  0xf6   : > { %vm459_vm2 = vcmp.ge.f32.partialorder %v451_v48, 0.0  ;;  %v1932_v61 = vrot.slane %v4973_v53, %v5508_v18  ;;  %v1310_v47 = vmul.f32 %v1284_v15, %v5522_v24  ;;  %v1759_v9 = vmul.f32 1.442695, %v1750_v35 }
  0xf7   : > { %v1783_v20 = vmul.f32 1.442695, %v1774_v6  ;;  %v1270_v43 = vmul.f32 %v1244_v63, %v1126_v50  ;;  %v467_v33 = vmul.f32 0.2, %v451_v48  ;;  %vm573_vm3 = vcmp.ge.f32.partialorder %v565_v4, 0.0 }
  0xf8   : > { %v581_v10 = vmul.f32 0.2, %v565_v4  ;;  %v1952_v45 = vmul.f32 %v1932_v61, %v1896_v39  ;;  %4982 = vpow2.f32 %v1759_v9  ;;  %v749_v7 = vadd.f32 %v5566_v56, %v5704_v21 }
  0xf9   : > { %v5729_v44 = vadd.f32 %v377_v29, %v5610_v41  ;;  %v1318_v54 = vadd.f32 %v1310_v47, %v1270_v43  ;;  %4984 = vpow2.f32 %v1783_v20  ;;  %v475_v16 = vsel %vm459_vm2, %v451_v48, %v467_v33  ;;  %v5741_v48 = vpop.permute.xlu1 %2096 }
  0xfa   : > { %v589_v8 = vsel %vm573_vm3, %v565_v4, %v581_v10  ;;  %v4975_v60 = vpop.eup %4974  ;;  %v1982_v22 = vrot.slane %v1952_v45, %v5508_v18  ;;  %v2038_v38 = vrot.slane %v1952_v45, %v5531_v27  ;;  %v941_v39 = vadd.f32 %v5598_v30, %v5704_v21 }
  0xfb   : > { %v597_v1 = vmax.f32 %v475_v16, %v589_v8  ;;  %v4977_v42 = vpop.eup %4976  ;;  %v1414_v32 = vmul.f32 %v4975_v60, %v1230_v62  ;;  %v1436_v46 = vrot.slane %v4975_v60, %v5508_v18  ;;  %vm757_vm4 = vcmp.ge.f32.partialorder %v749_v7, 0.0 }
  0xfc   : > { %v765_v41 = vmul.f32 0.2, %v749_v7  ;;  %v2002_v29 = vmul.f32 %v1982_v22, %v5695_v11  ;;  %v2010_v52 = vmul.f32 %v1982_v22, %v5724_v49  ;;  %v2058_v58 = vmul.f32 %v2038_v38, %v5711_v36 }
  0xfd   : > { %v2066_v3 = vmul.f32 %v2038_v38, %v5722_v40  ;;  %v1422_v5 = vadd.f32 %v4977_v42, %v1414_v32  ;;  %v1462_v51 = vmul.f32 %v1436_v46, %v1318_v54  ;;  %v1476_v63 = vrot.slane %v4977_v42, %v5508_v18 }
  0xfe   : > { %v605_v4 = vsub.f32 %v475_v16, %v597_v1  ;;  %v4979_v15 = vpop.eup %4978  ;;  %v2074_v35 = vadd.f32 %v2058_v58, %v2002_v29  ;;  %v629_v53 = vsub.f32 %v589_v8, %v597_v1  ;;  %v773_v50 = vsel %vm757_vm4, %v749_v7, %v765_v41 }
  0xff   : > { %v2082_v6 = vadd.f32 %v2066_v3, %v2010_v52  ;;  %v4981_v62 = vpop.eup %4980  ;;  %v1502_v61 = vmul.f32 %v1476_v63, %v5502_v14  ;;  %v1606_v47 = vmul.f32 %v4979_v15, %v1422_v5  ;;  %v1628_v9 = vrot.slane %v4979_v15, %v5508_v18 }
 0x100   : > { %v613_v20 = vmul.f32 1.442695, %v605_v4  ;;  %v5750_v43 = vadd.f32 %v5743_v31, %v2074_v35  ;;  %v1668_v10 = vrot.slane %v4981_v62, %v5508_v18  ;;  %v637_v45 = vmul.f32 1.442695, %v629_v53 }
 0x101   : > { %v5753_v33 = vadd.f32 %v5741_v48, %v2082_v6  ;;  %v1510_v54 = vadd.f32 %v1502_v61, %v1462_v51  ;;  %v1614_v16 = vadd.f32 %v4981_v62, %v1606_v47  ;;  %v781_v7 = vmax.f32 %v597_v1, %v773_v50 }
 0x102   : > { %4986 = vpow2.f32 %v613_v20  ;;  %v4983_v8 = vpop.eup %4982  ;;  %v2118_v60 = vmax.f32 %v5750_v43, 0.0  ;;  %v1694_v22 = vmul.f32 %v1668_v10, %v5526_v25  ;;  %vm949_vm5 = vcmp.ge.f32.partialorder %v941_v39, 0.0 }
 0x103   : > { %4988 = vpow2.f32 %v637_v45  ;;  %v4985_v38 = vpop.eup %4984  ;;  %v1654_v42 = vmul.f32 %v1628_v9, %v1510_v54  ;;  %v1798_v32 = vmul.f32 %v4983_v8, %v1614_v16  ;;  %v1820_v46 = vrot.slane %v4983_v8, %v5508_v18 }
 0x104   : > { %v789_v41 = vsub.f32 %v597_v1, %v781_v7  ;;  %v2126_v29 = vmax.f32 %v5753_v33, 0.0  ;;  %v1860_v52 = vrot.slane %v4985_v38, %v5508_v18  ;;  %v813_v58 = vsub.f32 %v773_v50, %v781_v7 }
 0x105   : > { %v957_v3 = vmul.f32 0.2, %v941_v39  ;;  %v1702_v5 = vadd.f32 %v1694_v22, %v1654_v42  ;;  %v1806_v51 = vadd.f32 %v4985_v38, %v1798_v32  ;;  %v1133_v4 = vadd.f32 %v5568_v57, %v5704_v21 }
 0x106   : > { %v797_v63 = vmul.f32 1.442695, %v789_v41  ;;  %v1886_v15 = vmul.f32 %v1860_v52, %v5498_v12  ;;  %v821_v35 = vmul.f32 1.442695, %v813_v58  ;;  %v1325_v1 = vadd.f32 %v5572_v59, %v5704_v21 }
 0x107   : > { %v965_v6 = vsel %vm949_vm5, %v941_v39, %v957_v3  ;;  %v1846_v53 = vmul.f32 %v1820_v46, %v1702_v5  ;;  %4990 = vrcp.f32 %v1806_v51  ;;  %vm1141_vm6 = vcmp.ge.f32.partialorder %v1133_v4, 0.0 }
 0x108   : > { %v973_v62 = vmax.f32 %v781_v7, %v965_v6  ;;  %4992 = vpow2.f32 %v797_v63  ;;  %v1149_v50 = vmul.f32 0.2, %v1133_v4  ;;  %vm1333_vm7 = vcmp.ge.f32.partialorder %v1325_v1, 0.0 }
 0x109   : > { %v1341_v61 = vmul.f32 0.2, %v1325_v1  ;;  %v1894_v47 = vadd.f32 %v1886_v15, %v1846_v53  ;;  %4994 = vpow2.f32 %v821_v35  ;;  %v1517_v39 = vadd.f32 %v5583_v2, %v5704_v21 }
 0x10a   : > { %v981_v9 = vsub.f32 %v781_v7, %v973_v62  ;;  %v1005_v20 = vsub.f32 %v965_v6, %v973_v62  ;;  %v1157_v33 = vsel %vm1141_vm6, %v1133_v4, %v1149_v50  ;;  %v1709_v45 = vadd.f32 %v5588_v19, %v5704_v21 }
 0x10b   : > { %v1349_v10 = vsel %vm1333_vm7, %v1325_v1, %v1341_v61  ;;  %v1165_v22 = vmax.f32 %v973_v62, %v1157_v33  ;;  %v5773_v38 = vadd.f32 %v5709_v0, %v5729_v44  ;;  %vm1525_vm8 = vcmp.ge.f32.partialorder %v1517_v39, 0.0 }
 0x10c   : > { %v4987_v54 = vpop.eup %4986  ;;  %v989_v16 = vmul.f32 1.442695, %v981_v9  ;;  %v1013_v8 = vmul.f32 1.442695, %v1005_v20  ;;  %v1533_v32 = vmul.f32 0.2, %v1517_v39  ;;  %v5781_v53 = vpack.c.bf16 %v2126_v29, %v2118_v60 }
 0x10d   : > { %v4989_v42 = vpop.eup %4988  ;;  %v664_v7 = vrot.slane %v4987_v54, %v5508_v18  ;;  %vm1717_vm9 = vcmp.ge.f32.partialorder %v1709_v45, 0.0  ;;  %v1173_v52 = vsub.f32 %v973_v62, %v1165_v22  ;;  %v1197_v58 = vsub.f32 %v1157_v33, %v1165_v22 }
 0x10e   : > { %v653_v46 = vadd.f32 %v4989_v42, %v4987_v54  ;;  %v704_v41 = vrot.slane %v4989_v42, %v5508_v18  ;;  %4996 = vpow2.f32 %v989_v16  ;;  %v1357_v3 = vmax.f32 %v1165_v22, %v1349_v10 }
 0x10f   : > { %v693_v21 = vmul.f32 %v664_v7, %v5498_v12  ;;  %4998 = vpow2.f32 %v1013_v8  ;;  %v1181_v44 = vmul.f32 1.442695, %v1173_v52  ;;  %v1541_v51 = vsel %vm1525_vm8, %v1517_v39, %v1533_v32 }
 0x110   : > { %v733_v5 = vmul.f32 %v704_v41, %v5518_v23  ;;  %v1725_v63 = vmul.f32 0.2, %v1709_v45  ;;  %v1205_v4 = vmul.f32 1.442695, %v1197_v58  ;;  %v1365_v15 = vsub.f32 %v1165_v22, %v1357_v3 }
 0x111   : > { %v1389_v35 = vsub.f32 %v1349_v10, %v1357_v3  ;;  %v1549_v6 = vmax.f32 %v1357_v3, %v1541_v51  ;;  %v4991_v1 = vpop.eup %4990  ;;  %5000 = vpow2.f32 %v1181_v44  ;;  %vm461_vm10 = vcmp.ge.f32.partialorder %v5773_v38, 0.0 }
 0x112   : > { %v741_v62 = vadd.f32 %v733_v5, %v693_v21  ;;  %v1733_v50 = vsel %vm1717_vm9, %v1709_v45, %v1725_v63  ;;  %v4993_v61 = vpop.eup %4992  ;;  %v1924_v9 = vrot.slane %v4991_v1, %v5508_v18  ;;  %5002 = vpow2.f32 %v1205_v4 }
 0x113   : > { %v1373_v20 = vmul.f32 1.442695, %v1365_v15  ;;  %v1397_v33 = vmul.f32 1.442695, %v1389_v35  ;;  %v4995_v39 = vpop.eup %4994  ;;  %v837_v54 = vmul.f32 %v4993_v61, %v653_v46  ;;  %v856_v10 = vrot.slane %v4993_v61, %v5508_v18 }
 0x114   : > { %v1557_v16 = vsub.f32 %v1357_v3, %v1549_v6  ;;  %v1581_v8 = vsub.f32 %v1541_v51, %v1549_v6  ;;  %v1950_v43 = vmul.f32 %v1924_v9, %v1894_v47  ;;  %v896_v60 = vrot.slane %v4995_v39, %v5508_v18 }
 0x115   : > { %5004 = vpow2.f32 %v1373_v20  ;;  %v1741_v29 = vmax.f32 %v1549_v6, %v1733_v50  ;;  %v845_v45 = vadd.f32 %v4995_v39, %v837_v54  ;;  %v885_v22 = vmul.f32 %v856_v10, %v741_v62 }
 0x116   : > { %5006 = vpow2.f32 %v1397_v33  ;;  %v1565_v42 = vmul.f32 1.442695, %v1557_v16  ;;  %v1974_v7 = vrot.slane %v1950_v43, %v5508_v18  ;;  %v2030_v32 = vrot.slane %v1950_v43, %v5531_v27 }
 0x117   : > { %v925_v46 = vmul.f32 %v896_v60, %v5505_v17  ;;  %v1589_v41 = vmul.f32 1.442695, %v1581_v8  ;;  %v1749_v21 = vsub.f32 %v1549_v6, %v1741_v29  ;;  %v1773_v58 = vsub.f32 %v1733_v50, %v1741_v29 }
 0x118   : > { %v4997_v52 = vpop.eup %4996  ;;  %5008 = vpow2.f32 %v1565_v42  ;;  %v469_v47 = vmul.f32 0.2, %v5773_v38  ;;  %v2000_v5 = vmul.f32 %v1974_v7, %v5695_v11  ;;  %v2008_v44 = vmul.f32 %v1974_v7, %v5724_v49 }
 0x119   : > { %v4999_v3 = vpop.eup %4998  ;;  %v2056_v51 = vmul.f32 %v2030_v32, %v5711_v36  ;;  %v2064_v63 = vmul.f32 %v2030_v32, %v5722_v40  ;;  %v933_v4 = vadd.f32 %v925_v46, %v885_v22  ;;  %v1029_v15 = vmul.f32 %v4997_v52, %v845_v45 }
 0x11a   : > { %v1048_v35 = vrot.slane %v4997_v52, %v5508_v18  ;;  %v1088_v1 = vrot.slane %v4999_v3, %v5508_v18  ;;  %5010 = vpow2.f32 %v1589_v41  ;;  %v1757_v50 = vmul.f32 1.442695, %v1749_v21 }
 0x11b   : > { %v2072_v62 = vadd.f32 %v2056_v51, %v2000_v5  ;;  %v2080_v6 = vadd.f32 %v2064_v63, %v2008_v44  ;;  %v5001_v61 = vpop.eup %5000  ;;  %v1037_v9 = vadd.f32 %v4999_v3, %v1029_v15  ;;  %v1781_v39 = vmul.f32 1.442695, %v1773_v58 }
 0x11c   : > { %v1077_v20 = vmul.f32 %v1048_v35, %v933_v4  ;;  %v1117_v33 = vmul.f32 %v1088_v1, %v5535_v28  ;;  %v5003_v54 = vpop.eup %5002  ;;  %v1240_v8 = vrot.slane %v5001_v61, %v5508_v18  ;;  %5012 = vpow2.f32 %v1757_v50 }
 0x11d   : > { %v2100_v10 = vadd.f32 %v5743_v31, %v2072_v62  ;;  %v2108_v16 = vadd.f32 %v5741_v48, %v2080_v6  ;;  %v1221_v60 = vmul.f32 %v5001_v61, %v1037_v9  ;;  %v1280_v29 = vrot.slane %v5003_v54, %v5508_v18 }
 0x11e   : > { %v1125_v43 = vadd.f32 %v1117_v33, %v1077_v20  ;;  %5014 = vpow2.f32 %v1781_v39  ;;  %v477_v7 = vsel %vm461_vm10, %v5773_v38, %v469_v47  ;;  %v567_v32 = vadd.f32 %v5598_v30, %v5709_v0 }
 0x11f   : > { %v5005_v45 = vpop.eup %5004  ;;  %v2116_v22 = vmax.f32 %v2100_v10, 0.0  ;;  %v2124_v42 = vmax.f32 %v2108_v16, 0.0  ;;  %v1229_v41 = vadd.f32 %v5003_v54, %v1221_v60  ;;  %v1309_v21 = vmul.f32 %v1280_v29, %v5500_v13 }
 0x120   : > { %v5007_v46 = vpop.eup %5006  ;;  %v1269_v52 = vmul.f32 %v1240_v8, %v1125_v43  ;;  %v1432_v58 = vrot.slane %v5005_v45, %v5508_v18  ;;  %vm575_vm11 = vcmp.ge.f32.partialorder %v567_v32, 0.0  ;;  %v583_v51 = vmul.f32 0.2, %v567_v32 }
 0x121   : > { %v5810_v3 = vpop.f32.mrb[4].mxu1  ;;  %v5812_v5 = vpack.c.bf16 %v2124_v42, %v2116_v22  ;;  %v1472_v44 = vrot.slane %v5007_v46, %v5508_v18  ;;  %v1413_v4 = vmul.f32 %v5005_v45, %v1229_v41  ;;  %v751_v15 = vadd.f32 %v5568_v57, %v5709_v0 }
 0x122   : > { %v5009_v63 = vpop.eup %5008  ;;  %v2844_v38 = vpop.f32.mrb[5].mxu1  ;;  %v1317_v47 = vadd.f32 %v1309_v21, %v1269_v52  ;;  %v5819_v35 = vadd.f32 %v5572_v59, %v5709_v0  ;;  %v591_v50 = vsel %vm575_vm11, %v567_v32, %v583_v51  ;;  %v5831_v16 = vadd.f32 %v5583_v2, %v5709_v0 }
 0x123   : > { %v3204_v1 = vadd.f32 %v5674_v37, %v2844_v38  ;;  %v1501_v62 = vmul.f32 %v1472_v44, %v5522_v24  ;;  %v1624_v6 = vrot.slane %v5009_v63, %v5508_v18  ;;  %v1421_v61 = vadd.f32 %v5007_v46, %v1413_v4 }
 0x124   : > { %v1461_v9 = vmul.f32 %v1432_v58, %v1317_v47  ;;  %v5824_v20 = vmax.f32 %v477_v7, %v591_v50  ;;  %vm759_vm12 = vcmp.ge.f32.partialorder %v751_v15, 0.0  ;;  %v5011_v33 = vpop.eup %5010  ;;  %v767_v10 = vmul.f32 0.2, %v751_v15 }
 0x125   : > { %v3220_v39 = vmax.f32 %v3204_v1, 0.0  ;;  %v5826_v54 = vpop.f32.mrb[6].mxu1  ;;  %vm951_vm13 = vcmp.ge.f32.partialorder %v5819_v35, 0.0  ;;  %v1605_v60 = vmul.f32 %v5009_v63, %v1421_v61  ;;  %v1664_v29 = vrot.slane %v5011_v33, %v5508_v18 }
 0x126   : > { %v2850_v8 = vpop.f32.mrb[7].mxu1  ;;  %v1509_v43 = vadd.f32 %v1501_v62, %v1461_v9  ;;  %v607_v45 = vsub.f32 %v477_v7, %v5824_v20  ;;  %v5013_v22 = vpop.eup %5012  ;;  %v631_v32 = vsub.f32 %v591_v50, %v5824_v20  ;;  %v5837_v46 = vsel %vm759_vm12, %v751_v15, %v767_v10 }
 0x127   : > { %v3212_v42 = vadd.f32 %v5683_v26, %v2850_v8  ;;  %v959_v41 = vmul.f32 0.2, %v5819_v35  ;;  %v1613_v58 = vadd.f32 %v5011_v33, %v1605_v60  ;;  %v1693_v51 = vmul.f32 %v1664_v29, %v5502_v14 }
 0x128   : > { %v5015_v52 = vpop.eup %5014  ;;  %v2927_v21 = vpop.f32.mrb[0].mxu0  ;;  %v1653_v44 = vmul.f32 %v1624_v6, %v1509_v43  ;;  %v1816_v63 = vrot.slane %v5013_v22, %v5508_v18  ;;  %v617_v62 = vmul.f32 1.442695, %v607_v45  ;;  %vm1143_vm14 = vcmp.ge.f32.partialorder %v5831_v16, 0.0 }
 0x129   : > { %v3228_v38 = vmax.f32 %v3212_v42, 0.0  ;;  %v3197_v7 = vadd.f32 %v5674_v37, %v2927_v21  ;;  %v3004_v47 = vpop.f32.mrb[0].mxu1  ;;  %v2929_v4 = vpop.f32.mrb[1].mxu0  ;;  %v1856_v1 = vrot.slane %v5015_v52, %v5508_v18  ;;  %v1797_v33 = vmul.f32 %v5013_v22, %v1613_v58 }
 0x12a   : > { %v3199_v15 = vadd.f32 %v5674_v37, %v3004_v47  ;;  %v3198_v50 = vadd.f32 %v5674_v37, %v2929_v4  ;;  %v3006_v61 = vpop.f32.mrb[1].mxu1  ;;  %v1701_v9 = vadd.f32 %v1693_v51, %v1653_v44  ;;  %5016 = vpow2.f32 %v617_v62 }
 0x12b   : > { %v5846_v6 = vpack.c.bf16 %v3228_v38, %v3220_v39  ;;  %v3213_v10 = vmax.f32 %v3197_v7, 0.0  ;;  %v3200_v8 = vadd.f32 %v5674_v37, %v3006_v61  ;;  %v1885_v43 = vmul.f32 %v1856_v1, %v5526_v25 }
 0x12c   : > { %v3215_v60 = vmax.f32 %v3199_v15, 0.0  ;;  %v3214_v29 = vmax.f32 %v3198_v50, 0.0  ;;  %v2933_v42 = vpop.f32.mrb[2].mxu0  ;;  %v1805_v21 = vadd.f32 %v5015_v52, %v1797_v33  ;;  %v1845_v59 = vmul.f32 %v1816_v63, %v1701_v9 }
 0x12d   : > { %v3216_v45 = vmax.f32 %v3200_v8, 0.0  ;;  %v3205_v47 = vadd.f32 %v5683_v26, %v2933_v42  ;;  %v3010_v57 = vpop.f32.mrb[2].mxu1  ;;  %v2935_v4 = vpop.f32.mrb[3].mxu0  ;;  %v641_v44 = vmul.f32 1.442695, %v631_v32  ;;  %v783_v52 = vmax.f32 %v5824_v20, %v5837_v46 }
 0x12e   : > { %v3207_v39 = vadd.f32 %v5683_v26, %v3010_v57  ;;  %v3206_v22 = vadd.f32 %v5683_v26, %v2935_v4  ;;  %v3012_v58 = vpop.f32.mrb[3].mxu1  ;;  %v5853_v51 = vadd.f32 %v1885_v43, %v1845_v59  ;;  %5018 = vrcp.f32 %v1805_v21 }
 0x12f   : > { %v3221_v38 = vmax.f32 %v3205_v47, 0.0  ;;  %v3208_v7 = vadd.f32 %v5683_v26, %v3012_v58  ;;  %5020 = vpow2.f32 %v641_v44  ;;  %v967_v57 = vsel %vm951_vm13, %v5819_v35, %v959_v41 }
 0x130   : > { %v3223_v63 = vmax.f32 %v3207_v39, 0.0  ;;  %v3222_v1 = vmax.f32 %v3206_v22, 0.0  ;;  %v3081_v15 = vpop.f32.mrb[4].mxu0  ;;  %v791_v9 = vsub.f32 %v5824_v20, %v783_v52  ;;  %v815_v22 = vsub.f32 %v5837_v46, %v783_v52 }
 0x131   : > { %v4750_v32 = vpack.c.bf16 %v3221_v38, %v3213_v10  ;;  %v3224_v59 = vmax.f32 %v3208_v7, 0.0  ;;  %v3201_v62 = vadd.f32 %v5674_v37, %v3081_v15  ;;  %v4700_v50 = vpop.f32.mrb[8].mxu1  ;;  %v3083_v61 = vpop.f32.mrb[5].mxu0  ;;  %v5869_v20 = vmax.f32 %v783_v52, %v967_v57 }
 0x132   : > { %v4754_v33 = vpack.c.bf16 %v3223_v63, %v3215_v60  ;;  %v4748_v8 = vpack.c.bf16 %v3222_v1, %v3214_v29  ;;  %v3183_v43 = vadd.f32 %v4700_v50, %v5826_v54  ;;  %v3202_v42 = vadd.f32 %v5674_v37, %v3083_v61  ;;  %v3158_v21 = vpop.f32.mrb[9].mxu1 }
 0x133   : > { %v4752_v47 = vpack.c.bf16 %v3224_v59, %v3216_v45  ;;  %v3217_v4 = vmax.f32 %v3201_v62, 0.0  ;;  %v3175_v35 = vadd.f32 %v3158_v21, %v5810_v3  ;;  %v801_v41 = vmul.f32 1.442695, %v791_v9  ;;  %v5876_v3 = vld [vmem:[%s6565_s2 + $0x68] sm:$0xff] }
 0x134   : > { %v3211_v10 = vadd.f32 %v5683_v26, %v3183_v43  ;;  %v3218_v44 = vmax.f32 %v3202_v42, 0.0  ;;  %v3087_v39 = vpop.f32.mrb[6].mxu0  ;;  %4749 = vmatprep.subr.bf16.mxu1 %v4748_v8  ;;  %v1151_v45 = vmul.f32 0.2, %v5831_v16  ;;  %v825_v38 = vmul.f32 1.442695, %v815_v22  ;;  %v5017_v7 = vpop.eup %5016 }
 0x135   : > { %v3203_v60 = vadd.f32 %v5674_v37, %v3175_v35  ;;  %v3209_v54 = vadd.f32 %v5683_v26, %v3087_v39  ;;  %4753 = vmatprep.subr.bf16.mxu0 %v4752_v47  ;;  %v3089_v29 = vpop.f32.mrb[7].mxu0  ;;  %4751 = vmatpush1.bf16.msra.mxu1 %v4750_v32  ;;  %5022 = vpow2.f32 %v801_v41  ;;  %v983_v37 = vsub.f32 %v783_v52, %v5869_v20 }
 0x136   : > { %v3227_v58 = vmax.f32 %v3211_v10, 0.0  ;;  %v3210_v46 = vadd.f32 %v5683_v26, %v3089_v29  ;;  %4755 = vmatpush1.bf16.msra.mxu0 %v4754_v33  ;;  %v1007_v15 = vsub.f32 %v967_v57, %v5869_v20  ;;  %v1159_v32 = vsel %vm1143_vm14, %v5831_v16, %v1151_v45  ;;  %v5895_v16 = vld [vmem:[%s6565_s2 + $0x70] sm:$0xff] }
 0x137   : > { %v3219_v63 = vmax.f32 %v3203_v60, 0.0  ;;  %v3225_v1 = vmax.f32 %v3209_v54, 0.0  ;;  %4761 = vmatprep.subr.bf16.mxu0 %v5846_v6  ;;  %v672_v26 = vrot.slane %v5017_v7, %v5508_v18  ;;  %5024 = vpow2.f32 %v825_v38 }
 0x138   : > { %v5019_v59 = vpop.eup %5018  ;;  %v3226_v62 = vmax.f32 %v3210_v46, 0.0  ;;  %4640 = vmatmul.mubr.msk.f32.vlgmr.msra.gmra.mrb[10].mxu1 %vm2224_vm0, %v5876_v3  ;;  %v993_v52 = vmul.f32 1.442695, %v983_v37  ;;  %v6600_v6 = vmov 0.0   ;;  %v1017_v33 = vmul.f32 1.442695, %v1007_v15 }
 0x139   : > { %v5021_v50 = vpop.eup %5020  ;;  %v4762_v61 = vpack.c.bf16 %v3227_v58, %v3219_v63  ;;  %v4758_v9 = vpack.c.bf16 %v3225_v1, %v3217_v4  ;;  %4644 = vmatmul.mubr.msk.f32.vlgmr.msra.gmra.mrb[8].mxu0 %vm2224_vm0, %v5876_v3  ;;  %3319 = vmatprep.mubr.f32.mxu1 %v6600_v6  ;;  %v1920_v57 = vrot.slane %v5019_v59, %v5508_v18 }
 0x13a   : > { %v4756_v8 = vpack.c.bf16 %v3226_v62, %v3218_v44  ;;  %3408 = vmatprep.mubr.f32.mxu0 %v6600_v6  ;;  %v655_v43 = vadd.f32 %v5021_v50, %v5017_v7  ;;  %v695_v42 = vmul.f32 %v672_v26, %v5505_v17  ;;  %v712_v21 = vrot.slane %v5021_v50, %v5508_v18 }
 0x13b   : > { %4763 = vmatpush1.bf16.msra.mxu0 %v4762_v61  ;;  %v1949_v47 = vmul.f32 %v1920_v57, %v5853_v51  ;;  %5026 = vpow2.f32 %v993_v52  ;;  %v5903_v4 = vmax.f32 %v5869_v20, %v1159_v32  ;;  %v1327_v35 = vadd.f32 %v5588_v19, %v5709_v0 }
 0x13c   : > { %4769 = vmatprep.subr.bf16.mxu0 %v5781_v53  ;;  %4641 = vmatmul.mubr.msk.f32.gmra.mrb[12].mxu1 %vm2224_vm0, %v5895_v16  ;;  %v735_v41 = vmul.f32 %v712_v21, %v5535_v28  ;;  %5028 = vpow2.f32 %v1017_v33  ;;  %v1519_v10 = vadd.f32 %v5590_v34, %v5709_v0  ;;  %v5915_v51 = vadd.f32 %v5564_v55, %v5709_v0  ;;  %v5922_v53 = vld [vmem:[%s6565_s2 + $0x78] sm:$0xff] }
 0x13d   : > { %4645 = vmatmul.mubr.msk.f32.gmra.mrb[10].mxu0 %vm2224_vm0, %v5895_v16  ;;  %4757 = vmatprep.subr.bf16.mxu1 %v4756_v8  ;;  %v1970_v44 = vrot.slane %v1949_v47, %v5508_v18  ;;  %v2026_v39 = vrot.slane %v1949_v47, %v5531_v27  ;;  %v1175_v22 = vsub.f32 %v5869_v20, %v5903_v4  ;;  %vm1335_vm15 = vcmp.ge.f32.partialorder %v1327_v35, 0.0 }
 0x13e   : > { %4759 = vmatpush1.bf16.msra.mxu1 %v4758_v9  ;;  %3325 = vmatprep.mubr.f32.mxu1 %v6600_v6  ;;  %v743_v0 = vadd.f32 %v735_v41, %v695_v42  ;;  %v1199_v60 = vsub.f32 %v1159_v32, %v5903_v4  ;;  %v1343_v54 = vmul.f32 0.2, %v1327_v35  ;;  %vm1527_vm1 = vcmp.ge.f32.partialorder %v1519_v10, 0.0 }
 0x13f   : > { %v5023_v29 = vpop.eup %5022  ;;  %4765 = vmatprep.subr.bf16.mxu1 %v5812_v5  ;;  %3414 = vmatprep.mubr.f32.mxu0 %v6600_v6  ;;  %v1999_v45 = vmul.f32 %v1970_v44, %v5695_v11  ;;  %v2007_v58 = vmul.f32 %v1970_v44, %v5724_v49  ;;  %v2055_v20 = vmul.f32 %v2026_v39, %v5711_v36  ;;  %v1185_v46 = vmul.f32 1.442695, %v1175_v22  ;;  %v5945_v5 = vld [vmem:[%s6565_s2 + $0x80] sm:$0xff] }
 0x140   : > { %4642 = vmatmul.mubr.msk.f32.gmra.mrb[14].mxu1 %vm2224_vm0, %v5922_v53  ;;  %v2063_v38 = vmul.f32 %v2026_v39, %v5722_v40  ;;  %v839_v37 = vmul.f32 %v5023_v29, %v655_v43  ;;  %v864_v7 = vrot.slane %v5023_v29, %v5508_v18  ;;  %v1209_v63 = vmul.f32 1.442695, %v1199_v60 }
 0x141   : > { %4646 = vmatmul.mubr.msk.f32.gmra.mrb[12].mxu0 %vm2224_vm0, %v5922_v53  ;;  %3331 = vmatprep.mubr.f32.mxu1 %v6600_v6  ;;  %v2071_v1 = vadd.f32 %v2055_v20, %v1999_v45  ;;  %5030 = vpow2.f32 %v1185_v46  ;;  %v1351_v15 = vsel %vm1335_vm15, %v1327_v35, %v1343_v54  ;;  %v1535_v32 = vmul.f32 0.2, %v1519_v10  ;;  %v5025_v59 = vpop.eup %5024 }
 0x142   : > { %3420 = vmatprep.mubr.f32.mxu0 %v6600_v6  ;;  %v2079_v62 = vadd.f32 %v2063_v38, %v2007_v58  ;;  %v887_v26 = vmul.f32 %v864_v7, %v743_v0  ;;  %5032 = vpow2.f32 %v1209_v63  ;;  %v1359_v52 = vmax.f32 %v5903_v4, %v1351_v15 }
 0x143   : > { %v2099_v50 = vadd.f32 %v5743_v31, %v2071_v1  ;;  %v847_v61 = vadd.f32 %v5025_v59, %v839_v37  ;;  %v904_v9 = vrot.slane %v5025_v59, %v5508_v18  ;;  %v1543_v57 = vsel %vm1527_vm1, %v1519_v10, %v1535_v32  ;;  %v6601_v1 = vld [vmem:[#allocation8_spill] sm:$0xff]  ;;  %v5978_v59 = vld [vmem:[%s5489_s26 + $0x8] sm:$0xff]  ;;  %s5174_s26 = sshll.u32 %s5239_s25, 4  ;;  %s5175_s26 = int_to_ptr.vmem [resolvable:$false] %s5174_s26 }
 0x144   : > { %4643 = vmatmul.mubr.msk.f32.gmra.mrb[16].mxu1 %vm2224_vm0, %v5945_v5  ;;  %v2107_v33 = vadd.f32 %v5741_v48, %v2079_v62  ;;  %v1367_v8 = vsub.f32 %v5903_v4, %v1359_v52  ;;  %v1391_v43 = vsub.f32 %v1351_v15, %v1359_v52  ;;  %v1551_v42 = vmax.f32 %v1359_v52, %v1543_v57  ;;  %v6602_v15 = vld [vmem:[#allocation9_spill] sm:$0xff]  ;;  %v6604_v62 = vld [vmem:[#allocation6_spill] sm:$0xff]  ;;  %s5176_s27 = scalar_lea.vmem %s5175_s26, 6144  ;;  %p5177_p3 = scmp.lt.s32.totalorder %s6517_s11, %s5175_s26 }
 0x145   : > { %v5027_v21 = vpop.eup %5026  ;;  %4647 = vmatmul.mubr.msk.f32.gmra.mrb[14].mxu0 %vm2224_vm0, %v5945_v5  ;;  %3491 = vmatprep.mubr.f32.mxu1 %v6600_v6  ;;  %v2115_v47 = vmax.f32 %v2099_v50, 0.0  ;;  %v927_v35 = vmul.f32 %v904_v9, %v5500_v13  ;;  %vm1719_vm2 = vcmp.ge.f32.partialorder %v5915_v51, 0.0  ;;  %v1727_v41 = vmul.f32 0.2, %v5915_v51  ;;  %6603 = vst [vmem:[#allocation9_spill] sm:$0xff] %v5978_v59  ;;  %v6606_v9 = vld [vmem:[#allocation11_spill] sm:$0xff]  ;;  %p5178_p4 = scmp.lt.s32.totalorder %s5176_s27, %s5170_s24 }
 0x146   : > { %v5029_v10 = vpop.eup %5028  ;;  %3580 = vmatprep.mubr.f32.mxu0 %v6600_v6  ;;  %v2123_v44 = vmax.f32 %v2107_v33, 0.0  ;;  %v1031_v4 = vmul.f32 %v5027_v21, %v847_v61  ;;  %v1056_v39 = vrot.slane %v5027_v21, %v5508_v18  ;;  %v1377_v22 = vmul.f32 1.442695, %v1367_v8 }
 0x147   : > { %v935_v0 = vadd.f32 %v927_v35, %v887_v26  ;;  %v1096_v60 = vrot.slane %v5029_v10, %v5508_v18  ;;  %v1401_v54 = vmul.f32 1.442695, %v1391_v43  ;;  %v1559_v29 = vsub.f32 %v1359_v52, %v1551_v42  ;;  %p5179_p5 = por %p5178_p4, %p5177_p3 }
 0x148   : > { %4648 = vmatmul.mubr.msk.f32.vlgmr.msra.gmra.mrb[18].mxu1 %vm2224_vm0, %v5876_v3  ;;  %v4766_v45 = vpack.c.bf16 %v2123_v44, %v2115_v47  ;;  %v1039_v58 = vadd.f32 %v5029_v10, %v1031_v4  ;;  %5034 = vpow2.f32 %v1377_v22  ;;  %v1583_v20 = vsub.f32 %v1543_v57, %v1551_v42 }
 0x149   : > { %4652 = vmatmul.mubr.msk.f32.vlgmr.msra.gmra.mrb[16].mxu0 %vm2224_vm0, %v5876_v3  ;;  %v1079_v46 = vmul.f32 %v1056_v39, %v935_v0  ;;  %v1119_v38 = vmul.f32 %v1096_v60, %v5522_v24  ;;  %5036 = vpow2.f32 %v1401_v54  ;;  %v1569_v37 = vmul.f32 1.442695, %v1559_v29  ;;  %3497 = vmatprep.mubr.f32.mxu1 %v6600_v6  ;;  %p5180_p7 = pnand %p5179_p5, %p5173_p2 }
 0x14a   : > { %4767 = vmatpush1.bf16.msra.mxu1 %v4766_v45  ;;  %v1593_v7 = vmul.f32 1.442695, %v1583_v20  ;;  %v1735_v63 = vsel %vm1719_vm2, %v5915_v51, %v1727_v41  ;;  %v316_v32 = vmul.f32 %v6602_v15, %v6601_v1  ;;  %v6605_v3 = vsub.s32 3, %v6604_v62  ;;  %3586 = vmatprep.mubr.f32.mxu0 %v6600_v6 }
 0x14b   : > { %v5031_v52 = vpop.eup %5030  ;;  %v1127_v50 = vadd.f32 %v1119_v38, %v1079_v46  ;;  %5038 = vpow2.f32 %v1569_v37  ;;  %v1743_v61 = vmax.f32 %v1551_v42, %v1735_v63  ;;  %v408_v57 = vmul.f32 %v6606_v9, %v6602_v15 }
 0x14c   : > { %v342_v26 = vrot.slane %v5978_v59, %v6605_v3  ;;  %v5033_v33 = vpop.eup %5032  ;;  %v1223_v51 = vmul.f32 %v5031_v52, %v1039_v58  ;;  %v1248_v8 = vrot.slane %v5031_v52, %v5508_v18  ;;  %5040 = vpow2.f32 %v1593_v7  ;;  %4649 = vmatmul.mubr.msk.f32.gmra.mrb[20].mxu1 %vm2224_vm0, %v5895_v16 }
 0x14d   : > { %v1288_v21 = vrot.slane %v5033_v33, %v5508_v18  ;;  %v1751_v47 = vsub.f32 %v1551_v42, %v1743_v61  ;;  %v1775_v35 = vsub.f32 %v1735_v63, %v1743_v61  ;;  %4653 = vmatmul.mubr.msk.f32.gmra.mrb[18].mxu0 %vm2224_vm0, %v5895_v16  ;;  %v6607_v39 = vsub.s32 6, %v6604_v62  ;;  %3503 = vmatprep.mubr.f32.mxu1 %v6600_v6 }
 0x14e   : > { %v364_v43 = vmul.f32 %v342_v26, %v6601_v1  ;;  %v416_v41 = vmul.f32 %v6606_v9, %v342_v26  ;;  %v1231_v10 = vadd.f32 %v5033_v33, %v1223_v51  ;;  %v1271_v44 = vmul.f32 %v1248_v8, %v1127_v50  ;;  %3592 = vmatprep.mubr.f32.mxu0 %v6600_v6 }
 0x14f   : > { %v302_v22 = vrot.slane %v5978_v59, %v6607_v39  ;;  %v1311_v0 = vmul.f32 %v1288_v21, %v5502_v14  ;;  %v1761_v42 = vmul.f32 1.442695, %v1751_v47  ;;  %v1785_v60 = vmul.f32 1.442695, %v1775_v35 }
 0x150   : > { %v380_v4 = vrot.slane %v364_v43, 1  ;;  %v432_v54 = vrot.slane %v416_v41, 1  ;;  %v6608_v29 = vsub.s32 5, %v6604_v62  ;;  %v6609_v20 = vsub.s32 7, %v6604_v62  ;;  %4650 = vmatmul.mubr.msk.f32.gmra.mrb[22].mxu1 %vm2224_vm0, %v5922_v53  ;;  %v6051_v41 = vld [vmem:[%s6565_s2 + $0x48] sm:$0xff] }
 0x151   : > { %v6006_v58 = vmul.f32 %v302_v22, %v6601_v1  ;;  %v1319_v38 = vadd.f32 %v1311_v0, %v1271_v44  ;;  %5042 = vpow2.f32 %v1761_v42  ;;  %v6016_v7 = vmul.f32 %v6606_v9, %v302_v22  ;;  %4654 = vmatmul.mubr.msk.f32.gmra.mrb[20].mxu0 %vm2224_vm0, %v5922_v53  ;;  %3509 = vmatprep.mubr.f32.mxu1 %v6600_v6 }
 0x152   : > { %v6003_v16 = vrot.slane %v5978_v59, %v6608_v29  ;;  %v396_v45 = vadd.f32 %v380_v4, %v316_v32  ;;  %v350_v46 = vrot.slane %v5978_v59, %v6609_v20  ;;  %v6013_v37 = vadd.f32 %v432_v54, %v408_v57  ;;  %v5035_v63 = vpop.eup %5034  ;;  %3598 = vmatprep.mubr.f32.mxu0 %v6600_v6 }
 0x153   : > { %5044 = vpow2.f32 %v1785_v60  ;;  %v6030_v3 = vrot.slane %v5978_v59, %v5508_v18  ;;  %v5037_v26 = vpop.eup %5036  ;;  %v1415_v52 = vmul.f32 %v5035_v63, %v1231_v10  ;;  %v1440_v53 = vrot.slane %v5035_v63, %v5508_v18 }
 0x154   : > { %v6022_v15 = vmul.f32 %v350_v46, %v6601_v1  ;;  %v6025_v32 = vmul.f32 %v6606_v9, %v350_v46  ;;  %v456_v50 = vadd.f32 %v6013_v37, %v396_v45  ;;  %v570_v61 = vadd.f32 %v5583_v2, %v6013_v37  ;;  %4651 = vmatmul.mubr.msk.f32.gmra.mrb[24].mxu1 %vm2224_vm0, %v5945_v5 }
 0x155   : > { %v1480_v57 = vrot.slane %v5037_v26, %v5508_v18  ;;  %v754_v33 = vadd.f32 %v5588_v19, %v6013_v37  ;;  %v946_v51 = vadd.f32 %v5590_v34, %v6013_v37  ;;  %v1138_v8 = vadd.f32 %v5564_v55, %v6013_v37  ;;  %v5039_v43 = vpop.eup %5038  ;;  %4655 = vmatmul.mubr.msk.f32.gmra.mrb[22].mxu0 %vm2224_vm0, %v5945_v5 }
 0x156   : > { %v1423_v21 = vadd.f32 %v5037_v26, %v1415_v52  ;;  %v1463_v47 = vmul.f32 %v1440_v53, %v1319_v38  ;;  %vm464_vm3 = vcmp.ge.f32.partialorder %v456_v50, 0.0  ;;  %v472_v35 = vmul.f32 0.2, %v456_v50  ;;  %3681 = vmatprep.mubr.f32.mxu1 %v6600_v6  ;;  %v5041_v10 = vpop.eup %5040  ;;  %3770 = vmatprep.mubr.f32.mxu0 %v6600_v6 }
 0x157   : > { %v1503_v44 = vmul.f32 %v1480_v57, %v5526_v25  ;;  %v1632_v4 = vrot.slane %v5039_v43, %v5508_v18  ;;  %vm578_vm4 = vcmp.ge.f32.partialorder %v570_v61, 0.0  ;;  %v586_v39 = vmul.f32 0.2, %v570_v61 }
 0x158   : > { %v1607_v22 = vmul.f32 %v5039_v43, %v1423_v21  ;;  %v1672_v0 = vrot.slane %v5041_v10, %v5508_v18  ;;  %v480_v5 = vsel %vm464_vm3, %v456_v50, %v472_v35  ;;  %vm762_vm5 = vcmp.ge.f32.partialorder %v754_v33, 0.0  ;;  %4656 = vmatmul.mubr.msk.f32.vlgmr.msra.gmra.mrb[10].mxu1 %vm2224_vm0, %v6051_v41 }
 0x159   : > { %v1511_v42 = vadd.f32 %v1503_v44, %v1463_v47  ;;  %v594_v60 = vsel %vm578_vm4, %v570_v61, %v586_v39  ;;  %v770_v54 = vmul.f32 0.2, %v754_v33  ;;  %vm954_vm6 = vcmp.ge.f32.partialorder %v946_v51, 0.0  ;;  %3687 = vmatprep.mubr.f32.mxu1 %v6600_v6 }
 0x15a   : > { %v1615_v29 = vadd.f32 %v5041_v10, %v1607_v22  ;;  %v1695_v45 = vmul.f32 %v1672_v0, %v5498_v12  ;;  %v602_v20 = vmax.f32 %v480_v5, %v594_v60  ;;  %v962_v46 = vmul.f32 0.2, %v946_v51 }
 0x15b   : > { %v1655_v38 = vmul.f32 %v1632_v4, %v1511_v42  ;;  %v778_v63 = vsel %vm762_vm5, %v754_v33, %v770_v54  ;;  %vm1146_vm7 = vcmp.ge.f32.partialorder %v1138_v8, 0.0  ;;  %v1154_v26 = vmul.f32 0.2, %v1138_v8  ;;  %v5043_v52 = vpop.eup %5042 }
 0x15c   : > { %v610_v53 = vsub.f32 %v480_v5, %v602_v20  ;;  %v634_v50 = vsub.f32 %v594_v60, %v602_v20  ;;  %v786_v61 = vmax.f32 %v602_v20, %v778_v63  ;;  %v970_v57 = vsel %vm954_vm6, %v946_v51, %v962_v46 }
 0x15d   : > { %v5045_v43 = vpop.eup %5044  ;;  %v1703_v21 = vadd.f32 %v1695_v45, %v1655_v38  ;;  %v1799_v47 = vmul.f32 %v5043_v52, %v1615_v29  ;;  %v1824_v35 = vrot.slane %v5043_v52, %v5508_v18  ;;  %v6064_v10 = vrot.slane %v5978_v59, %v5531_v27 }
 0x15e   : > { %v1864_v44 = vrot.slane %v5045_v43, %v5508_v18  ;;  %v623_v4 = vmul.f32 1.442695, %v610_v53  ;;  %v647_v33 = vmul.f32 1.442695, %v634_v50  ;;  %v794_v39 = vsub.f32 %v602_v20, %v786_v61 }
 0x15f   : > { %v1807_v22 = vadd.f32 %v5045_v43, %v1799_v47  ;;  %v818_v0 = vsub.f32 %v778_v63, %v786_v61  ;;  %v978_v5 = vmax.f32 %v786_v61, %v970_v57  ;;  %v1162_v42 = vsel %vm1146_vm7, %v1138_v8, %v1154_v26 }
 0x160   : > { %v1847_v51 = vmul.f32 %v1824_v35, %v1703_v21  ;;  %5046 = vpow2.f32 %v623_v4  ;;  %v807_v60 = vmul.f32 1.442695, %v794_v39  ;;  %v1330_v54 = vadd.f32 %v5566_v56, %v6013_v37 }
 0x161   : > { %5048 = vrcp.f32 %v1807_v22  ;;  %v831_v29 = vmul.f32 1.442695, %v818_v0  ;;  %v986_v45 = vsub.f32 %v786_v61, %v978_v5  ;;  %v1010_v46 = vsub.f32 %v970_v57, %v978_v5  ;;  %v6610_v61 = vld [vmem:[#allocation10_spill] sm:$0xff] }
 0x162   : > { %v1887_v38 = vmul.f32 %v1864_v44, %v5518_v23  ;;  %5050 = vpow2.f32 %v647_v33  ;;  %v1170_v52 = vmax.f32 %v978_v5, %v1162_v42  ;;  %vm1338_vm8 = vcmp.ge.f32.partialorder %v1330_v54, 0.0 }
 0x163   : > { %5052 = vpow2.f32 %v807_v60  ;;  %v999_v20 = vmul.f32 1.442695, %v986_v45  ;;  %v1023_v63 = vmul.f32 1.442695, %v1010_v46  ;;  %v1346_v53 = vmul.f32 0.2, %v1330_v54 }
 0x164   : > { %5054 = vpow2.f32 %v831_v29  ;;  %v1178_v8 = vsub.f32 %v978_v5, %v1170_v52  ;;  %v1202_v26 = vsub.f32 %v1162_v42, %v1170_v52  ;;  %v1522_v50 = vadd.f32 %v5598_v30, %v6013_v37 }
 0x165   : > { %5056 = vpow2.f32 %v999_v20  ;;  %v1354_v43 = vsel %vm1338_vm8, %v1330_v54, %v1346_v53  ;;  %v1714_v57 = vadd.f32 %v6610_v61, %v6013_v37  ;;  %v382_v21 = vrot.slane %v6022_v15, 1 }
 0x166   : > { %5058 = vpow2.f32 %v1023_v63  ;;  %v1191_v47 = vmul.f32 1.442695, %v1178_v8  ;;  %v1215_v35 = vmul.f32 1.442695, %v1202_v26  ;;  %v1362_v44 = vmax.f32 %v1170_v52, %v1354_v43 }
 0x167   : > { %vm1530_vm9 = vcmp.ge.f32.partialorder %v1522_v50, 0.0  ;;  %v1538_v4 = vmul.f32 0.2, %v1522_v50  ;;  %vm1722_vm10 = vcmp.ge.f32.partialorder %v1714_v57, 0.0  ;;  %v1730_v33 = vmul.f32 0.2, %v1714_v57 }
 0x168   : > { %v1895_v39 = vadd.f32 %v1887_v38, %v1847_v51  ;;  %5060 = vpow2.f32 %v1191_v47  ;;  %v1370_v22 = vsub.f32 %v1170_v52, %v1362_v44  ;;  %v1394_v0 = vsub.f32 %v1354_v43, %v1362_v44 }
 0x169   : > { %5062 = vpow2.f32 %v1215_v35  ;;  %v1546_v5 = vsel %vm1530_vm9, %v1522_v50, %v1538_v4  ;;  %v6077_v42 = vadd.f32 %v382_v21, %v6006_v58  ;;  %v434_v37 = vrot.slane %v6025_v32, 1 }
 0x16a   : > { %v5047_v15 = vpop.eup %5046  ;;  %v1383_v60 = vmul.f32 1.442695, %v1370_v22  ;;  %v1407_v54 = vmul.f32 1.442695, %v1394_v0  ;;  %v6080_v29 = vmax.f32 %v1362_v44, %v1546_v5  ;;  %v6082_v45 = vsel %vm1722_vm10, %v1714_v57, %v1730_v33 }
 0x16b   : > { %v5049_v46 = vpop.eup %5048  ;;  %v684_v51 = vrot.slane %v5047_v15, %v5508_v18  ;;  %v6086_v38 = vadd.f32 %v434_v37, %v6016_v7  ;;  %v6090_v52 = vmul.f32 %v6030_v3, %v6601_v1  ;;  %v6094_v58 = vmul.f32 %v6064_v10, %v6601_v1 }
 0x16c   : > { %v5051_v32 = vpop.eup %5050  ;;  %v1928_v20 = vrot.slane %v5049_v46, %v5508_v18  ;;  %5064 = vpow2.f32 %v1383_v60  ;;  %v1562_v63 = vsub.f32 %v1362_v44, %v6080_v29  ;;  %v1586_v53 = vsub.f32 %v1546_v5, %v6080_v29 }
 0x16d   : > { %v5053_v8 = vpop.eup %5052  ;;  %v658_v26 = vadd.f32 %v5051_v32, %v5047_v15  ;;  %v698_v7 = vmul.f32 %v684_v51, %v5522_v24  ;;  %v724_v50 = vrot.slane %v5051_v32, %v5508_v18  ;;  %5066 = vpow2.f32 %v1407_v54 }
 0x16e   : > { %v5055_v43 = vpop.eup %5054  ;;  %v1951_v57 = vmul.f32 %v1928_v20, %v1895_v39  ;;  %v876_v21 = vrot.slane %v5053_v8, %v5508_v18  ;;  %v1575_v47 = vmul.f32 1.442695, %v1562_v63  ;;  %v1599_v35 = vmul.f32 1.442695, %v1586_v53 }
 0x16f   : > { %v5057_v4 = vpop.eup %5056  ;;  %v738_v33 = vmul.f32 %v724_v50, %v5502_v14  ;;  %v842_v22 = vmul.f32 %v5053_v8, %v658_v26  ;;  %v916_v44 = vrot.slane %v5055_v43, %v5508_v18  ;;  %v1746_v0 = vmax.f32 %v6080_v29, %v6082_v45 }
 0x170   : > { %v5059_v5 = vpop.eup %5058  ;;  %v1978_v37 = vrot.slane %v1951_v57, %v5508_v18  ;;  %v2034_v15 = vrot.slane %v1951_v57, %v5531_v27  ;;  %v1068_v39 = vrot.slane %v5057_v4, %v5508_v18  ;;  %5068 = vpow2.f32 %v1575_v47 }
 0x171   : > { %v746_v60 = vadd.f32 %v738_v33, %v698_v7  ;;  %v850_v54 = vadd.f32 %v5055_v43, %v842_v22  ;;  %v930_v46 = vmul.f32 %v916_v44, %v5526_v25  ;;  %v1108_v51 = vrot.slane %v5059_v5, %v5508_v18 }
 0x172   : > { %v5061_v32 = vpop.eup %5060  ;;  %v2001_v20 = vmul.f32 %v1978_v37, %v5695_v11  ;;  %v2009_v63 = vmul.f32 %v1978_v37, %v5724_v49  ;;  %v2057_v53 = vmul.f32 %v2034_v15, %v5711_v36  ;;  %v2065_v8 = vmul.f32 %v2034_v15, %v5722_v40 }
 0x173   : > { %v5063_v26 = vpop.eup %5062  ;;  %v890_v50 = vmul.f32 %v876_v21, %v746_v60  ;;  %v1034_v57 = vmul.f32 %v5057_v4, %v850_v54  ;;  %v1122_v47 = vmul.f32 %v1108_v51, %v5498_v12  ;;  %v1260_v7 = vrot.slane %v5061_v32, %v5508_v18 }
 0x174   : > { %v2073_v43 = vadd.f32 %v2057_v53, %v2001_v20  ;;  %v2081_v33 = vadd.f32 %v2065_v8, %v2009_v63  ;;  %v1300_v22 = vrot.slane %v5063_v26, %v5508_v18  ;;  %5070 = vpow2.f32 %v1599_v35 }
 0x175   : > { %v938_v44 = vadd.f32 %v930_v46, %v890_v50  ;;  %v1042_v1 = vadd.f32 %v5059_v5, %v1034_v57  ;;  %v1754_v37 = vsub.f32 %v6080_v29, %v1746_v0  ;;  %v1778_v14 = vsub.f32 %v6082_v45, %v1746_v0 }
 0x176   : > { %v5065_v59 = vpop.eup %5064  ;;  %v2101_v15 = vadd.f32 %v5743_v31, %v2073_v43  ;;  %v2109_v21 = vadd.f32 %v5741_v48, %v2081_v33  ;;  %v1314_v4 = vmul.f32 %v1300_v22, %v5518_v23  ;;  %v458_v60 = vadd.f32 %v6086_v38, %v6077_v42 }
 0x177   : > { %v5067_v54 = vpop.eup %5066  ;;  %v1082_v51 = vmul.f32 %v1068_v39, %v938_v44  ;;  %v1226_v20 = vmul.f32 %v5061_v32, %v1042_v1  ;;  %v1452_v35 = vrot.slane %v5065_v59, %v5508_v18  ;;  %v1767_v5 = vmul.f32 1.442695, %v1754_v37 }
 0x178   : > { %v2117_v46 = vmax.f32 %v2101_v15, 0.0  ;;  %v2125_v29 = vmax.f32 %v2109_v21, 0.0  ;;  %v1492_v45 = vrot.slane %v5067_v54, %v5508_v18  ;;  %v1791_v0 = vmul.f32 1.442695, %v1778_v14 }
 0x179   : > { %v1130_v63 = vadd.f32 %v1122_v47, %v1082_v51  ;;  %v1234_v53 = vadd.f32 %v5063_v26, %v1226_v20  ;;  %5072 = vpow2.f32 %v1767_v5  ;;  %vm466_vm11 = vcmp.ge.f32.partialorder %v458_v60, 0.0 }
 0x17a   : > { %v5069_v8 = vpop.eup %5068  ;;  %v4770_v50 = vpack.c.bf16 %v2125_v29, %v2117_v46  ;;  %v1506_v57 = vmul.f32 %v1492_v45, %v5505_v17  ;;  %5074 = vpow2.f32 %v1791_v0  ;;  %v474_v42 = vmul.f32 0.2, %v458_v60 }
 0x17b   : > { %v1274_v39 = vmul.f32 %v1260_v7, %v1130_v63  ;;  %v1418_v1 = vmul.f32 %v5065_v59, %v1234_v53  ;;  %v1644_v32 = vrot.slane %v5069_v8, %v5508_v18  ;;  %v572_v43 = vadd.f32 %v5590_v34, %v6086_v38 }
 0x17c   : > { %4771 = vmatpush1.bf16.msra.mxu0 %v4770_v50  ;;  %v482_v33 = vsel %vm466_vm11, %v458_v60, %v474_v42  ;;  %v756_v14 = vadd.f32 %v5564_v55, %v6086_v38  ;;  %v948_v26 = vadd.f32 %v5566_v56, %v6086_v38  ;;  %v1140_v47 = vadd.f32 %v5598_v30, %v6086_v38 }
 0x17d   : > { %v1322_v22 = vadd.f32 %v1314_v4, %v1274_v39  ;;  %v1426_v44 = vadd.f32 %v5067_v54, %v1418_v1  ;;  %vm580_vm12 = vcmp.ge.f32.partialorder %v572_v43, 0.0  ;;  %v588_v59 = vmul.f32 0.2, %v572_v43 }
 0x17e   : > { %v5071_v7 = vpop.eup %5070  ;;  %vm764_vm13 = vcmp.ge.f32.partialorder %v756_v14, 0.0  ;;  %v772_v37 = vmul.f32 0.2, %v756_v14  ;;  %vm956_vm14 = vcmp.ge.f32.partialorder %v948_v26, 0.0  ;;  %v964_v15 = vmul.f32 0.2, %v948_v26 }
 0x17f   : > { %v1466_v21 = vmul.f32 %v1452_v35, %v1322_v22  ;;  %v1610_v60 = vmul.f32 %v5069_v8, %v1426_v44  ;;  %v1684_v51 = vrot.slane %v5071_v7, %v5508_v18  ;;  %v596_v20 = vsel %vm580_vm12, %v572_v43, %v588_v59  ;;  %4660 = vmatmul.mubr.msk.f32.vlgmr.msra.gmra.mrb[8].mxu0 %vm2224_vm0, %v6051_v41 }
 0x180   : > { %v604_v5 = vmax.f32 %v482_v33, %v596_v20  ;;  %v780_v46 = vsel %vm764_vm13, %v756_v14, %v772_v37  ;;  %vm1148_vm15 = vcmp.ge.f32.partialorder %v1140_v47, 0.0  ;;  %v6142_v4 = vmul.f32 %v6606_v9, %v6030_v3  ;;  %3776 = vmatprep.mubr.f32.mxu0 %v6600_v6  ;;  %v6611_v3 = vld [vmem:[#allocation12_spill] sm:$0xff] }
 0x181   : > { %v1514_v54 = vadd.f32 %v1506_v57, %v1466_v21  ;;  %v1618_v29 = vadd.f32 %v5071_v7, %v1610_v60  ;;  %v1698_v35 = vmul.f32 %v1684_v51, %v5535_v28  ;;  %v1156_v45 = vmul.f32 0.2, %v1140_v47 }
 0x182   : > { %v612_v0 = vsub.f32 %v482_v33, %v604_v5  ;;  %v636_v63 = vsub.f32 %v596_v20, %v604_v5  ;;  %v788_v53 = vmax.f32 %v604_v5, %v780_v46  ;;  %v972_v8 = vsel %vm956_vm14, %v948_v26, %v964_v15 }
 0x183   : > { %v5073_v41 = vpop.eup %5072  ;;  %v1658_v50 = vmul.f32 %v1644_v32, %v1514_v54  ;;  %v1164_v42 = vsel %vm1148_vm15, %v1140_v47, %v1156_v45  ;;  %v1332_v39 = vadd.f32 %v6610_v61, %v6086_v38  ;;  %v1524_v1 = vadd.f32 %v6611_v3, %v6086_v38 }
 0x184   : > { %v5075_v43 = vpop.eup %5074  ;;  %v1802_v57 = vmul.f32 %v5073_v41, %v1618_v29  ;;  %v1836_v14 = vrot.slane %v5073_v41, %v5508_v18  ;;  %v627_v22 = vmul.f32 1.442695, %v612_v0  ;;  %v651_v44 = vmul.f32 1.442695, %v636_v63 }
 0x185   : > { %v1706_v33 = vadd.f32 %v1698_v35, %v1658_v50  ;;  %v1876_v59 = vrot.slane %v5075_v43, %v5508_v18  ;;  %v796_v7 = vsub.f32 %v604_v5, %v788_v53  ;;  %v820_v26 = vsub.f32 %v780_v46, %v788_v53 }
 0x186   : > { %v1810_v37 = vadd.f32 %v5075_v43, %v1802_v57  ;;  %5076 = vpow2.f32 %v627_v22  ;;  %v980_v32 = vmax.f32 %v788_v53, %v972_v8  ;;  %v1716_v47 = vadd.f32 %v5583_v2, %v6086_v38 }
 0x187   : > { %v1850_v15 = vmul.f32 %v1836_v14, %v1706_v33  ;;  %5078 = vpow2.f32 %v651_v44  ;;  %v811_v21 = vmul.f32 1.442695, %v796_v7  ;;  %vm1340_vm1 = vcmp.ge.f32.partialorder %v1332_v39, 0.0 }
 0x188   : > { %5080 = vrcp.f32 %v1810_v37  ;;  %v835_v60 = vmul.f32 1.442695, %v820_v26  ;;  %v988_v51 = vsub.f32 %v788_v53, %v980_v32  ;;  %v1012_v20 = vsub.f32 %v972_v8, %v980_v32 }
 0x189   : > { %v1890_v54 = vmul.f32 %v1876_v59, %v5500_v13  ;;  %5082 = vpow2.f32 %v811_v21  ;;  %v1172_v29 = vmax.f32 %v980_v32, %v1164_v42  ;;  %v1348_v5 = vmul.f32 0.2, %v1332_v39 }
 0x18a   : > { %5084 = vpow2.f32 %v835_v60  ;;  %v1003_v46 = vmul.f32 1.442695, %v988_v51  ;;  %v1027_v35 = vmul.f32 1.442695, %v1012_v20  ;;  %vm1532_vm2 = vcmp.ge.f32.partialorder %v1524_v1, 0.0 }
 0x18b   : > { %v1180_v45 = vsub.f32 %v980_v32, %v1172_v29  ;;  %v1204_v0 = vsub.f32 %v1164_v42, %v1172_v29  ;;  %v1356_v38 = vsel %vm1340_vm1, %v1332_v39, %v1348_v5  ;;  %v1540_v63 = vmul.f32 0.2, %v1524_v1 }
 0x18c   : > { %5086 = vpow2.f32 %v1003_v46  ;;  %v1364_v41 = vmax.f32 %v1172_v29, %v1356_v38  ;;  %vm1724_vm3 = vcmp.ge.f32.partialorder %v1716_v47, 0.0  ;;  %v1732_v50 = vmul.f32 0.2, %v1716_v47  ;;  %v6176_v46 = vld [vmem:[%s6565_s2 + $0x50] sm:$0xff] }
 0x18d   : > { %5088 = vpow2.f32 %v1027_v35  ;;  %v1195_v53 = vmul.f32 1.442695, %v1180_v45  ;;  %v1219_v8 = vmul.f32 1.442695, %v1204_v0  ;;  %v1548_v43 = vsel %vm1532_vm2, %v1524_v1, %v1540_v63  ;;  %4657 = vmatmul.mubr.msk.f32.gmra.mrb[12].mxu1 %vm2224_vm0, %v6176_v46  ;;  %4661 = vmatmul.mubr.msk.f32.gmra.mrb[10].mxu0 %vm2224_vm0, %v6176_v46 }
 0x18e   : > { %v1372_v57 = vsub.f32 %v1172_v29, %v1364_v41  ;;  %v1396_v14 = vsub.f32 %v1356_v38, %v1364_v41  ;;  %v1556_v22 = vmax.f32 %v1364_v41, %v1548_v43  ;;  %v6156_v44 = vsel %vm1724_vm3, %v1716_v47, %v1732_v50  ;;  %3693 = vmatprep.mubr.f32.mxu1 %v6600_v6  ;;  %v6191_v50 = vld [vmem:[%s6565_s2 + $0x58] sm:$0xff] }
 0x18f   : > { %v1898_v33 = vadd.f32 %v1890_v54, %v1850_v15  ;;  %5090 = vpow2.f32 %v1195_v53  ;;  %v379_v59 = vrot.slane %v6094_v58, 1  ;;  %v6161_v42 = vmul.f32 %v6606_v9, %v6064_v10  ;;  %3782 = vmatprep.mubr.f32.mxu0 %v6600_v6 }
 0x190   : > { %v5077_v39 = vpop.eup %5076  ;;  %5092 = vpow2.f32 %v1219_v8  ;;  %v1387_v7 = vmul.f32 1.442695, %v1372_v57  ;;  %v1411_v26 = vmul.f32 1.442695, %v1396_v14  ;;  %v1564_v37 = vsub.f32 %v1364_v41, %v1556_v22 }
 0x191   : > { %v5079_v32 = vpop.eup %5078  ;;  %v692_v1 = vrot.slane %v5077_v39, %v5508_v18  ;;  %v1588_v21 = vsub.f32 %v1548_v43, %v1556_v22  ;;  %v6165_v47 = vmax.f32 %v1556_v22, %v6156_v44  ;;  %v6168_v15 = vadd.f32 %v379_v59, %v6090_v52  ;;  %4658 = vmatmul.mubr.msk.f32.gmra.mrb[14].mxu1 %vm2224_vm0, %v6191_v50 }
 0x192   : > { %v5081_v58 = vpop.eup %5080  ;;  %v660_v60 = vadd.f32 %v5079_v32, %v5077_v39  ;;  %v732_v10 = vrot.slane %v5079_v32, %v5508_v18  ;;  %5094 = vpow2.f32 %v1387_v7  ;;  %v1579_v51 = vmul.f32 1.442695, %v1564_v37  ;;  %4662 = vmatmul.mubr.msk.f32.gmra.mrb[12].mxu0 %vm2224_vm0, %v6191_v50  ;;  %3699 = vmatprep.mubr.f32.mxu1 %v6600_v6 }
 0x193   : > { %v5083_v20 = vpop.eup %5082  ;;  %v1940_v54 = vrot.slane %v5081_v58, %v5508_v18  ;;  %v700_v29 = vmul.f32 %v692_v1, %v5526_v25  ;;  %5096 = vpow2.f32 %v1411_v26  ;;  %v1603_v5 = vmul.f32 1.442695, %v1588_v21  ;;  %3788 = vmatprep.mubr.f32.mxu0 %v6600_v6 }
 0x194   : > { %v5085_v52 = vpop.eup %5084  ;;  %v740_v35 = vmul.f32 %v732_v10, %v5498_v12  ;;  %v844_v45 = vmul.f32 %v5083_v20, %v660_v60  ;;  %v884_v0 = vrot.slane %v5083_v20, %v5508_v18  ;;  %5098 = vpow2.f32 %v1579_v51  ;;  %v6213_v60 = vld [vmem:[%s6565_s2 + $0x60] sm:$0xff] }
 0x195   : > { %v1954_v38 = vmul.f32 %v1940_v54, %v1898_v33  ;;  %v924_v63 = vrot.slane %v5085_v52, %v5508_v18  ;;  %5100 = vpow2.f32 %v1603_v5  ;;  %v1756_v41 = vsub.f32 %v1556_v22, %v6165_v47  ;;  %4659 = vmatmul.mubr.msk.f32.gmra.mrb[16].mxu1 %vm2224_vm0, %v6213_v60 }
 0x196   : > { %v5087_v53 = vpop.eup %5086  ;;  %v748_v8 = vadd.f32 %v740_v35, %v700_v29  ;;  %v852_v43 = vadd.f32 %v5085_v52, %v844_v45  ;;  %v1780_v57 = vsub.f32 %v6156_v44, %v6165_v47  ;;  %v431_v14 = vrot.slane %v6161_v42, 1  ;;  %4663 = vmatmul.mubr.msk.f32.gmra.mrb[14].mxu0 %vm2224_vm0, %v6213_v60  ;;  %3859 = vmatprep.mubr.f32.mxu1 %v6600_v6 }
 0x197   : > { %v5089_v33 = vpop.eup %5088  ;;  %v1990_v22 = vrot.slane %v1954_v38, %v5508_v18  ;;  %v2046_v59 = vrot.slane %v1954_v38, %v5531_v27  ;;  %v932_v39 = vmul.f32 %v924_v63, %v5518_v23  ;;  %v1076_v7 = vrot.slane %v5087_v53, %v5508_v18  ;;  %3948 = vmatprep.mubr.f32.mxu0 %v6600_v6 }
 0x198   : > { %v892_v26 = vmul.f32 %v884_v0, %v748_v8  ;;  %v1036_v37 = vmul.f32 %v5087_v53, %v852_v43  ;;  %v1116_v32 = vrot.slane %v5089_v33, %v5508_v18  ;;  %v1771_v1 = vmul.f32 1.442695, %v1756_v41 }
 0x199   : > { %v5091_v44 = vpop.eup %5090  ;;  %v2004_v42 = vmul.f32 %v1990_v22, %v5695_v11  ;;  %v2012_v21 = vmul.f32 %v1990_v22, %v5724_v49  ;;  %v2060_v47 = vmul.f32 %v2046_v59, %v5711_v36  ;;  %v2068_v58 = vmul.f32 %v2046_v59, %v5722_v40 }
 0x19a   : > { %v5093_v10 = vpop.eup %5092  ;;  %v940_v51 = vadd.f32 %v932_v39, %v892_v26  ;;  %v1044_v20 = vadd.f32 %v5089_v33, %v1036_v37  ;;  %v1124_v54 = vmul.f32 %v1116_v32, %v5505_v17  ;;  %v1268_v29 = vrot.slane %v5091_v44, %v5508_v18 }
 0x19b   : > { %v2076_v5 = vadd.f32 %v2060_v47, %v2004_v42  ;;  %v2084_v52 = vadd.f32 %v2068_v58, %v2012_v21  ;;  %v1308_v35 = vrot.slane %v5093_v10, %v5508_v18  ;;  %5102 = vpow2.f32 %v1771_v1 }
 0x19c   : > { %v5095_v45 = vpop.eup %5094  ;;  %v1084_v0 = vmul.f32 %v1076_v7, %v940_v51  ;;  %v1228_v38 = vmul.f32 %v5091_v44, %v1044_v20  ;;  %v1795_v63 = vmul.f32 1.442695, %v1780_v57  ;;  %v6220_v41 = vadd.f32 %v431_v14, %v6142_v4 }
 0x19d   : > { %v5097_v53 = vpop.eup %5096  ;;  %v6228_v8 = vmul.f32 %v6606_v9, %v6003_v16  ;;  %v2104_v43 = vadd.f32 %v5743_v31, %v2076_v5  ;;  %v2112_v33 = vadd.f32 %v5741_v48, %v2084_v52  ;;  %v1316_v57 = vmul.f32 %v1308_v35, %v5535_v28 }
 0x19e   : > { %v5099_v4 = vpop.eup %5098  ;;  %v1132_v14 = vadd.f32 %v1124_v54, %v1084_v0  ;;  %v1236_v22 = vadd.f32 %v5093_v10, %v1228_v38  ;;  %v1500_v59 = vrot.slane %v5097_v53, %v5508_v18  ;;  %5104 = vpow2.f32 %v1795_v63 }
 0x19f   : > { %v5101_v39 = vpop.eup %5100  ;;  %v2120_v7 = vmax.f32 %v2104_v43, 0.0  ;;  %v2128_v26 = vmax.f32 %v2112_v33, 0.0  ;;  %v1460_v37 = vrot.slane %v5095_v45, %v5508_v18  ;;  %v455_v32 = vadd.f32 %v6220_v41, %v6168_v15 }
 0x1a0   : > { %v1276_v1 = vmul.f32 %v1268_v29, %v1132_v14  ;;  %v1420_v44 = vmul.f32 %v5095_v45, %v1236_v22  ;;  %v1508_v42 = vmul.f32 %v1500_v59, %v5500_v13  ;;  %v1652_v21 = vrot.slane %v5099_v4, %v5508_v18 }
 0x1a1   : > { %v4772_v47 = vpack.c.bf16 %v2128_v26, %v2120_v7  ;;  %vm463_vm4 = vcmp.ge.f32.partialorder %v455_v32, 0.0  ;;  %v471_v58 = vmul.f32 0.2, %v455_v32  ;;  %v569_v10 = vadd.f32 %v6611_v3, %v6220_v41 }
 0x1a2   : > { %v1324_v51 = vadd.f32 %v1316_v57, %v1276_v1  ;;  %v1428_v20 = vadd.f32 %v5097_v53, %v1420_v44  ;;  %v1692_v54 = vrot.slane %v5101_v39, %v5508_v18  ;;  %v753_v5 = vadd.f32 %v5583_v2, %v6220_v41 }
 0x1a3   : > { %4773 = vmatprep.subr.bf16.mxu1 %v4772_v47  ;;  %v479_v15 = vsel %vm463_vm4, %v455_v32, %v471_v58  ;;  %vm577_vm5 = vcmp.ge.f32.partialorder %v569_v10, 0.0  ;;  %v585_v29 = vmul.f32 0.2, %v569_v10  ;;  %v945_v52 = vadd.f32 %v5588_v19, %v6220_v41 }
 0x1a4   : > { %v1468_v35 = vmul.f32 %v1460_v37, %v1324_v51  ;;  %v1612_v45 = vmul.f32 %v5099_v4, %v1428_v20  ;;  %vm761_vm6 = vcmp.ge.f32.partialorder %v753_v5, 0.0  ;;  %v769_v0 = vmul.f32 0.2, %v753_v5 }
 0x1a5   : > { %v5103_v38 = vpop.eup %5102  ;;  %v593_v63 = vsel %vm577_vm5, %v569_v10, %v585_v29  ;;  %vm953_vm7 = vcmp.ge.f32.partialorder %v945_v52, 0.0  ;;  %v961_v53 = vmul.f32 0.2, %v945_v52  ;;  %v1137_v43 = vadd.f32 %v5590_v34, %v6220_v41 }
 0x1a6   : > { %v1516_v33 = vadd.f32 %v1508_v42, %v1468_v35  ;;  %v1620_v2 = vadd.f32 %v5101_v39, %v1612_v45  ;;  %v1700_v57 = vmul.f32 %v1692_v54, %v5522_v24  ;;  %v601_v14 = vmax.f32 %v479_v15, %v593_v63  ;;  %v6613_v42 = vld [vmem:[#allocation9_spill] sm:$0xff] }
 0x1a7   : > { %v777_v22 = vsel %vm761_vm6, %v753_v5, %v769_v0  ;;  %v969_v59 = vsel %vm953_vm7, %v945_v52, %v961_v53  ;;  %vm1145_vm8 = vcmp.ge.f32.partialorder %v1137_v43, 0.0  ;;  %v1153_v7 = vmul.f32 0.2, %v1137_v43 }
 0x1a8   : > { %v5105_v26 = vpop.eup %5104  ;;  %v1660_v4 = vmul.f32 %v1652_v21, %v1516_v33  ;;  %v1804_v37 = vmul.f32 %v5103_v38, %v1620_v2  ;;  %v609_v32 = vsub.f32 %v479_v15, %v601_v14  ;;  %v633_v1 = vsub.f32 %v593_v63, %v601_v14  ;;  %v6614_v63 = vld [vmem:[#allocation7_spill] sm:$0xff] }
 0x1a9   : > { %v1844_v44 = vrot.slane %v5103_v38, %v5508_v18  ;;  %v785_v47 = vmax.f32 %v601_v14, %v777_v22  ;;  %v1329_v58 = vadd.f32 %v5564_v55, %v6220_v41  ;;  %v6612_v39 = vsub.s32 4, %v6604_v62 }
 0x1aa   : > { %v1812_v51 = vadd.f32 %v5105_v26, %v1804_v37  ;;  %v1884_v20 = vrot.slane %v5105_v26, %v5508_v18  ;;  %v621_v54 = vmul.f32 1.442695, %v609_v32  ;;  %v645_v5 = vmul.f32 1.442695, %v633_v1 }
 0x1ab   : > { %v6257_v10 = vrot.slane %v6613_v42, %v6612_v39  ;;  %v793_v21 = vsub.f32 %v601_v14, %v785_v47  ;;  %v817_v29 = vsub.f32 %v777_v22, %v785_v47  ;;  %v977_v15 = vmax.f32 %v785_v47, %v969_v59 }
 0x1ac   : > { %v1161_v52 = vsel %vm1145_vm8, %v1137_v43, %v1153_v7  ;;  %v1708_v35 = vadd.f32 %v1700_v57, %v1660_v4  ;;  %5106 = vrcp.f32 %v1812_v51  ;;  %vm1337_vm9 = vcmp.ge.f32.partialorder %v1329_v58, 0.0 }
 0x1ad   : > { %v1345_v45 = vmul.f32 0.2, %v1329_v58  ;;  %5108 = vpow2.f32 %v621_v54  ;;  %v805_v0 = vmul.f32 1.442695, %v793_v21  ;;  %v829_v62 = vmul.f32 1.442695, %v817_v29 }
 0x1ae   : > { %v985_v38 = vsub.f32 %v785_v47, %v977_v15  ;;  %v1892_v53 = vmul.f32 %v1884_v20, %v6614_v63  ;;  %5110 = vpow2.f32 %v645_v5  ;;  %v1009_v33 = vsub.f32 %v969_v59, %v977_v15 }
 0x1af   : > { %v1169_v2 = vmax.f32 %v977_v15, %v1161_v52  ;;  %5112 = vpow2.f32 %v805_v0  ;;  %v1353_v14 = vsel %vm1337_vm9, %v1329_v58, %v1345_v45  ;;  %v1521_v22 = vadd.f32 %v5566_v56, %v6220_v41 }
 0x1b0   : > { %v997_v26 = vmul.f32 1.442695, %v985_v38  ;;  %v1852_v43 = vmul.f32 %v1844_v44, %v1708_v35  ;;  %v1021_v57 = vmul.f32 1.442695, %v1009_v33  ;;  %5114 = vpow2.f32 %v829_v62  ;;  %v6615_v35 = vld [vmem:[#allocation8_spill] sm:$0xff] }
 0x1b1   : > { %v1177_v7 = vsub.f32 %v977_v15, %v1169_v2  ;;  %v1201_v4 = vsub.f32 %v1161_v52, %v1169_v2  ;;  %v1361_v37 = vmax.f32 %v1169_v2, %v1353_v14  ;;  %vm1529_vm10 = vcmp.ge.f32.partialorder %v1521_v22, 0.0 }
 0x1b2   : > { %v1537_v32 = vmul.f32 0.2, %v1521_v22  ;;  %5116 = vpow2.f32 %v997_v26  ;;  %v1713_v59 = vadd.f32 %v5598_v30, %v6220_v41  ;;  %v1900_v20 = vadd.f32 %v1892_v53, %v1852_v43 }
 0x1b3   : > { %v1189_v1 = vmul.f32 1.442695, %v1177_v7  ;;  %v1213_v47 = vmul.f32 1.442695, %v1201_v4  ;;  %5118 = vpow2.f32 %v1021_v57  ;;  %v1369_v39 = vsub.f32 %v1169_v2, %v1361_v37 }
 0x1b4   : > { %v1393_v58 = vsub.f32 %v1353_v14, %v1361_v37  ;;  %v1545_v42 = vsel %vm1529_vm10, %v1521_v22, %v1537_v32  ;;  %vm1721_vm11 = vcmp.ge.f32.partialorder %v1713_v59, 0.0  ;;  %v1729_v44 = vmul.f32 0.2, %v1713_v59 }
 0x1b5   : > { %5120 = vpow2.f32 %v1189_v1  ;;  %v1553_v51 = vmax.f32 %v1361_v37, %v1545_v42  ;;  %v1381_v54 = vmul.f32 1.442695, %v1369_v39  ;;  %v365_v45 = vmul.f32 %v6003_v16, %v6615_v35 }
 0x1b6   : > { %5122 = vpow2.f32 %v1213_v47  ;;  %v1405_v5 = vmul.f32 1.442695, %v1393_v58  ;;  %v5107_v21 = vpop.eup %5106  ;;  %v1737_v52 = vsel %vm1721_vm11, %v1713_v59, %v1729_v44  ;;  %v317_v38 = vmul.f32 %v6257_v10, %v6615_v35 }
 0x1b7   : > { %v1561_v29 = vsub.f32 %v1361_v37, %v1553_v51  ;;  %v1585_v15 = vsub.f32 %v1545_v42, %v1553_v51  ;;  %v5109_v41 = vpop.eup %5108  ;;  %v1948_v0 = vrot.slane %v5107_v21, %v5508_v18  ;;  %5124 = vpow2.f32 %v1381_v54 }
 0x1b8   : > { %v1745_v62 = vmax.f32 %v1553_v51, %v1737_v52  ;;  %v5111_v33 = vpop.eup %5110  ;;  %v680_v53 = vrot.slane %v5109_v41, %v5508_v18  ;;  %5126 = vpow2.f32 %v1405_v5  ;;  %v381_v37 = vrot.slane %v365_v45, 1 }
 0x1b9   : > { %v1573_v2 = vmul.f32 1.442695, %v1561_v29  ;;  %v1597_v26 = vmul.f32 1.442695, %v1585_v15  ;;  %v5113_v14 = vpop.eup %5112  ;;  %v1956_v22 = vmul.f32 %v1948_v0, %v1900_v20  ;;  %v657_v43 = vadd.f32 %v5111_v33, %v5109_v41 }
 0x1ba   : > { %v720_v57 = vrot.slane %v5111_v33, %v5508_v18  ;;  %v1753_v16 = vsub.f32 %v1553_v51, %v1745_v62  ;;  %v697_v7 = vmul.f32 %v680_v53, %v5500_v13  ;;  %v872_v4 = vrot.slane %v5113_v14, %v5508_v18  ;;  %v5115_v32 = vpop.eup %5114 }
 0x1bb   : > { %5128 = vpow2.f32 %v1573_v2  ;;  %v1998_v1 = vrot.slane %v1956_v22, %v5508_v18  ;;  %v2054_v47 = vrot.slane %v1956_v22, %v5531_v27  ;;  %v841_v39 = vmul.f32 %v5113_v14, %v657_v43 }
 0x1bc   : > { %v737_v59 = vmul.f32 %v720_v57, %v5522_v24  ;;  %v5117_v58 = vpop.eup %5116  ;;  %v912_v42 = vrot.slane %v5115_v32, %v5508_v18  ;;  %5130 = vpow2.f32 %v1597_v26  ;;  %v1765_v44 = vmul.f32 1.442695, %v1753_v16 }
 0x1bd   : > { %v1777_v51 = vsub.f32 %v1737_v52, %v1745_v62  ;;  %v5119_v20 = vpop.eup %5118  ;;  %v2006_v54 = vmul.f32 %v1998_v1, %v5695_v11  ;;  %v2014_v5 = vmul.f32 %v1998_v1, %v5724_v49  ;;  %v2062_v21 = vmul.f32 %v2054_v47, %v5711_v36 }
 0x1be   : > { %v2070_v29 = vmul.f32 %v2054_v47, %v5722_v40  ;;  %v745_v35 = vadd.f32 %v737_v59, %v697_v7  ;;  %v849_v45 = vadd.f32 %v5115_v32, %v841_v39  ;;  %v929_v41 = vmul.f32 %v912_v42, %v6614_v63 }
 0x1bf   : > { %v5121_v15 = vpop.eup %5120  ;;  %v1104_v0 = vrot.slane %v5119_v20, %v5508_v18  ;;  %v433_v53 = vrot.slane %v6228_v8, 1  ;;  %v2078_v52 = vadd.f32 %v2062_v21, %v2006_v54  ;;  %v409_v2 = vmul.f32 %v6606_v9, %v6257_v10 }
 0x1c0   : > { %v5123_v33 = vpop.eup %5122  ;;  %v2086_v62 = vadd.f32 %v2070_v29, %v2014_v5  ;;  %v889_v26 = vmul.f32 %v872_v4, %v745_v35  ;;  %v1033_v14 = vmul.f32 %v5117_v58, %v849_v45  ;;  %v1064_v22 = vrot.slane %v5117_v58, %v5508_v18 }
 0x1c1   : > { %5132 = vpow2.f32 %v1765_v44  ;;  %v5125_v43 = vpop.eup %5124  ;;  %v2106_v57 = vadd.f32 %v5743_v31, %v2078_v52  ;;  %v1296_v7 = vrot.slane %v5123_v33, %v5508_v18  ;;  %v1789_v32 = vmul.f32 1.442695, %v1777_v51 }
 0x1c2   : > { %v2114_v16 = vadd.f32 %v5741_v48, %v2086_v62  ;;  %v5127_v1 = vpop.eup %5126  ;;  %v937_v8 = vadd.f32 %v929_v41, %v889_v26  ;;  %v1041_v47 = vadd.f32 %v5119_v20, %v1033_v14  ;;  %v1121_v59 = vmul.f32 %v1104_v0, %v5526_v25 }
 0x1c3   : > { %v397_v39 = vadd.f32 %v381_v37, %v317_v38  ;;  %v2122_v9 = vmax.f32 %v2106_v57, 0.0  ;;  %v1256_v4 = vrot.slane %v5121_v15, %v5508_v18  ;;  %v1488_v58 = vrot.slane %v5127_v1, %v5508_v18 }
 0x1c4   : > { %v2130_v10 = vmax.f32 %v2114_v16, 0.0  ;;  %v1081_v44 = vmul.f32 %v1064_v22, %v937_v8  ;;  %v1225_v54 = vmul.f32 %v5121_v15, %v1041_v47  ;;  %5134 = vpow2.f32 %v1789_v32 }
 0x1c5   : > { %v5129_v42 = vpop.eup %5128  ;;  %v6295_v5 = vadd.f32 %v433_v53, %v409_v2  ;;  %v1313_v51 = vmul.f32 %v1296_v7, %v5498_v12  ;;  %v1448_v20 = vrot.slane %v5125_v43, %v5508_v18  ;;  %v1505_v29 = vmul.f32 %v1488_v58, %v5518_v23 }
 0x1c6   : > { %v4776_v21 = vpack.c.bf16 %v2130_v10, %v2122_v9  ;;  %v5131_v38 = vpop.eup %5130  ;;  %v1129_v37 = vadd.f32 %v1121_v59, %v1081_v44  ;;  %v1233_v35 = vadd.f32 %v5123_v33, %v1225_v54  ;;  %v1640_v26 = vrot.slane %v5129_v42, %v5508_v18 }
 0x1c7   : > { %v457_v45 = vadd.f32 %v6295_v5, %v397_v39  ;;  %v571_v41 = vadd.f32 %v5588_v19, %v6295_v5  ;;  %v1680_v15 = vrot.slane %v5131_v38, %v5508_v18  ;;  %v755_v0 = vadd.f32 %v5590_v34, %v6295_v5 }
 0x1c8   : > { %4777 = vmatprep.subr.bf16.mxu0 %v4776_v21  ;;  %v947_v53 = vadd.f32 %v5564_v55, %v6295_v5  ;;  %v1139_v52 = vadd.f32 %v5566_v56, %v6295_v5  ;;  %v1273_v62 = vmul.f32 %v1256_v4, %v1129_v37  ;;  %v1417_v2 = vmul.f32 %v5125_v43, %v1233_v35 }
 0x1c9   : > { %vm465_vm12 = vcmp.ge.f32.partialorder %v457_v45, 0.0  ;;  %v473_v33 = vmul.f32 0.2, %v457_v45  ;;  %v1697_v19 = vmul.f32 %v1680_v15, %v5505_v17  ;;  %vm579_vm13 = vcmp.ge.f32.partialorder %v571_v41, 0.0 }
 0x1ca   : > { %v587_v14 = vmul.f32 0.2, %v571_v41  ;;  %v1321_v57 = vadd.f32 %v1313_v51, %v1273_v62  ;;  %v1425_v16 = vadd.f32 %v5127_v1, %v1417_v2  ;;  %vm763_vm14 = vcmp.ge.f32.partialorder %v755_v0, 0.0 }
 0x1cb   : > { %v5133_v22 = vpop.eup %5132  ;;  %v481_v34 = vsel %vm465_vm12, %v457_v45, %v473_v33  ;;  %v771_v55 = vmul.f32 0.2, %v755_v0  ;;  %vm955_vm15 = vcmp.ge.f32.partialorder %v947_v53, 0.0  ;;  %v963_v32 = vmul.f32 0.2, %v947_v53 }
 0x1cc   : > { %v595_v7 = vsel %vm579_vm13, %v571_v41, %v587_v14  ;;  %v1465_v56 = vmul.f32 %v1448_v20, %v1321_v57  ;;  %v1609_v8 = vmul.f32 %v5129_v42, %v1425_v16  ;;  %vm1147_vm1 = vcmp.ge.f32.partialorder %v1139_v52, 0.0 }
 0x1cd   : > { %v603_v43 = vmax.f32 %v481_v34, %v595_v7  ;;  %v1832_v47 = vrot.slane %v5133_v22, %v5508_v18  ;;  %v779_v59 = vsel %vm763_vm14, %v755_v0, %v771_v55  ;;  %v1155_v39 = vmul.f32 0.2, %v1139_v52 }
 0x1ce   : > { %v1331_v9 = vadd.f32 %v5598_v30, %v6295_v5  ;;  %v5135_v10 = vpop.eup %5134  ;;  %v1513_v4 = vadd.f32 %v1505_v29, %v1465_v56  ;;  %v1617_v1 = vadd.f32 %v5131_v38, %v1609_v8  ;;  %v971_v44 = vsel %vm955_vm15, %v947_v53, %v963_v32 }
 0x1cf   : > { %v611_v58 = vsub.f32 %v481_v34, %v603_v43  ;;  %v1872_v54 = vrot.slane %v5135_v10, %v5508_v18  ;;  %v635_v21 = vsub.f32 %v595_v7, %v603_v43  ;;  %v787_v51 = vmax.f32 %v603_v43, %v779_v59 }
 0x1d0   : > { %v1163_v20 = vsel %vm1147_vm1, %v1139_v52, %v1155_v39  ;;  %v1657_v42 = vmul.f32 %v1640_v26, %v1513_v4  ;;  %v1801_v37 = vmul.f32 %v5133_v22, %v1617_v1  ;;  %vm1339_vm2 = vcmp.ge.f32.partialorder %v1331_v9, 0.0 }
 0x1d1   : > { %v625_v35 = vmul.f32 1.442695, %v611_v58  ;;  %v649_v45 = vmul.f32 1.442695, %v635_v21  ;;  %v795_v41 = vsub.f32 %v603_v43, %v787_v51  ;;  %v819_v15 = vsub.f32 %v779_v59, %v787_v51 }
 0x1d2   : > { %v979_v0 = vmax.f32 %v787_v51, %v971_v44  ;;  %v1705_v62 = vadd.f32 %v1697_v19, %v1657_v42  ;;  %v1809_v30 = vadd.f32 %v5135_v10, %v1801_v37  ;;  %v1347_v29 = vmul.f32 0.2, %v1331_v9 }
 0x1d3   : > { %5136 = vpow2.f32 %v625_v35  ;;  %v809_v38 = vmul.f32 1.442695, %v795_v41  ;;  %v833_v53 = vmul.f32 1.442695, %v819_v15  ;;  %v1889_v33 = vmul.f32 %v1872_v54, %v5535_v28 }
 0x1d4   : > { %5138 = vpow2.f32 %v649_v45  ;;  %v987_v2 = vsub.f32 %v787_v51, %v979_v0  ;;  %v1011_v52 = vsub.f32 %v971_v44, %v979_v0  ;;  %v1171_v26 = vmax.f32 %v979_v0, %v1163_v20 }
 0x1d5   : > { %5140 = vrcp.f32 %v1809_v30  ;;  %v1355_v22 = vsel %vm1339_vm2, %v1331_v9, %v1347_v29  ;;  %v1523_v57 = vadd.f32 %v6610_v61, %v6295_v5  ;;  %v1849_v19 = vmul.f32 %v1832_v47, %v1705_v62 }
 0x1d6   : > { %5142 = vpow2.f32 %v809_v38  ;;  %v1001_v14 = vmul.f32 1.442695, %v987_v2  ;;  %v1025_v16 = vmul.f32 1.442695, %v1011_v52  ;;  %v1179_v34 = vsub.f32 %v979_v0, %v1171_v26 }
 0x1d7   : > { %5144 = vpow2.f32 %v833_v53  ;;  %v1203_v7 = vsub.f32 %v1163_v20, %v1171_v26  ;;  %v1363_v55 = vmax.f32 %v1171_v26, %v1355_v22  ;;  %vm1531_vm3 = vcmp.ge.f32.partialorder %v1523_v57, 0.0 }
 0x1d8   : > { %5146 = vpow2.f32 %v1001_v14  ;;  %v1193_v32 = vmul.f32 1.442695, %v1179_v34  ;;  %v1539_v56 = vmul.f32 0.2, %v1523_v57  ;;  %v1715_v8 = vadd.f32 %v6611_v3, %v6295_v5 }
 0x1d9   : > { %5148 = vpow2.f32 %v1025_v16  ;;  %v1217_v43 = vmul.f32 1.442695, %v1203_v7  ;;  %v1371_v59 = vsub.f32 %v1171_v26, %v1363_v55  ;;  %v1395_v39 = vsub.f32 %v1355_v22, %v1363_v55 }
 0x1da   : > { %v1547_v9 = vsel %vm1531_vm3, %v1523_v57, %v1539_v56  ;;  %vm1723_vm4 = vcmp.ge.f32.partialorder %v1715_v8, 0.0  ;;  %v1731_v61 = vmul.f32 0.2, %v1715_v8  ;;  %5150 = vpow2.f32 %v1193_v32 }
 0x1db   : > { %v1385_v47 = vmul.f32 1.442695, %v1371_v59  ;;  %v1409_v10 = vmul.f32 1.442695, %v1395_v39  ;;  %v1555_v4 = vmax.f32 %v1363_v55, %v1547_v9  ;;  %v1897_v58 = vadd.f32 %v1889_v33, %v1849_v19 }
 0x1dc   : > { %5152 = vpow2.f32 %v1217_v43  ;;  %v1739_v44 = vsel %vm1723_vm4, %v1715_v8, %v1731_v61 }
 0x1dd   : > { %v5137_v1 = vpop.eup %5136  ;;  %5154 = vpow2.f32 %v1385_v47  ;;  %v1563_v51 = vsub.f32 %v1363_v55, %v1555_v4  ;;  %v1587_v3 = vsub.f32 %v1547_v9, %v1555_v4  ;;  %v1747_v37 = vmax.f32 %v1555_v4, %v1739_v44 }
 0x1de   : > { %v5139_v54 = vpop.eup %5138  ;;  %v688_v21 = vrot.slane %v5137_v1, %v5508_v18  ;;  %5156 = vpow2.f32 %v1409_v10 }
 0x1df   : > { %v5141_v5 = vpop.eup %5140  ;;  %v659_v20 = vadd.f32 %v5139_v54, %v5137_v1  ;;  %v728_v42 = vrot.slane %v5139_v54, %v5508_v18  ;;  %v1577_v15 = vmul.f32 1.442695, %v1563_v51  ;;  %v1601_v0 = vmul.f32 1.442695, %v1587_v3 }
 0x1e0   : > { %v5143_v35 = vpop.eup %5142  ;;  %v1936_v45 = vrot.slane %v5141_v5, %v5508_v18  ;;  %v699_v41 = vmul.f32 %v688_v21, %v6614_v63  ;;  %v1755_v53 = vsub.f32 %v1555_v4, %v1747_v37  ;;  %v1779_v26 = vsub.f32 %v1739_v44, %v1747_v37 }
 0x1e1   : > { %v5145_v62 = vpop.eup %5144  ;;  %v739_v30 = vmul.f32 %v728_v42, %v5526_v25  ;;  %v843_v29 = vmul.f32 %v5143_v35, %v659_v20  ;;  %v880_v38 = vrot.slane %v5143_v35, %v5508_v18  ;;  %5158 = vpow2.f32 %v1577_v15 }
 0x1e2   : > { %v5147_v2 = vpop.eup %5146  ;;  %v1953_v33 = vmul.f32 %v1936_v45, %v1897_v58  ;;  %v920_v52 = vrot.slane %v5145_v62, %v5508_v18  ;;  %5160 = vpow2.f32 %v1601_v0  ;;  %v1769_v32 = vmul.f32 1.442695, %v1755_v53 }
 0x1e3   : > { %v5149_v14 = vpop.eup %5148  ;;  %v747_v22 = vadd.f32 %v739_v30, %v699_v41  ;;  %v851_v57 = vadd.f32 %v5145_v62, %v843_v29  ;;  %v1072_v63 = vrot.slane %v5147_v2, %v5508_v18  ;;  %v1793_v56 = vmul.f32 1.442695, %v1779_v26 }
 0x1e4   : > { %v1986_v19 = vrot.slane %v1953_v33, %v5508_v18  ;;  %v2042_v25 = vrot.slane %v1953_v33, %v5531_v27  ;;  %v931_v16 = vmul.f32 %v920_v52, %v5498_v12  ;;  %v1112_v34 = vrot.slane %v5149_v14, %v5508_v18  ;;  %v5151_v8 = vpop.eup %5150 }
 0x1e5   : > { %v891_v7 = vmul.f32 %v880_v38, %v747_v22  ;;  %v1035_v55 = vmul.f32 %v5147_v2, %v851_v57  ;;  %5162 = vpow2.f32 %v1769_v32  ;;  %v1264_v3 = vrot.slane %v5151_v8, %v5508_v18 }
 0x1e6   : > { %v2003_v43 = vmul.f32 %v1986_v19, %v5695_v11  ;;  %v2011_v59 = vmul.f32 %v1986_v19, %v5724_v49  ;;  %v2059_v39 = vmul.f32 %v2042_v25, %v5711_v36  ;;  %v2067_v9 = vmul.f32 %v2042_v25, %v5722_v40  ;;  %v5153_v61 = vpop.eup %5152  ;;  %v5169_v19 = vld [vmem:[%s6565_s2 + $0x48] sm:$0xff] }
 0x1e7   : > { %v939_v47 = vadd.f32 %v931_v16, %v891_v7  ;;  %v1043_v10 = vadd.f32 %v5149_v14, %v1035_v55  ;;  %v1123_v12 = vmul.f32 %v1112_v34, %v5518_v23  ;;  %v5155_v4 = vpop.eup %5154  ;;  %v1304_v44 = vrot.slane %v5153_v61, %v5508_v18 }
 0x1e8   : > { %v2075_v1 = vadd.f32 %v2059_v39, %v2003_v43  ;;  %v2083_v58 = vadd.f32 %v2067_v9, %v2011_v59  ;;  %v5157_v54 = vpop.eup %5156  ;;  %5164 = vpow2.f32 %v1793_v56  ;;  %v1456_v29 = vrot.slane %v5155_v4, %v5508_v18 }
 0x1e9   : > { %v1083_v21 = vmul.f32 %v1072_v63, %v939_v47  ;;  %v1227_v51 = vmul.f32 %v5151_v8, %v1043_v10  ;;  %v1315_v23 = vmul.f32 %v1304_v44, %v5505_v17  ;;  %v1496_v35 = vrot.slane %v5157_v54, %v5508_v18 }
 0x1ea   : > { %v2103_v5 = vadd.f32 %v5743_v31, %v2075_v1  ;;  %v2111_v20 = vadd.f32 %v5741_v48, %v2083_v58 }
 0x1eb   : > { %v1131_v42 = vadd.f32 %v1123_v12, %v1083_v21  ;;  %v1235_v37 = vadd.f32 %v5153_v61, %v1227_v51  ;;  %v5159_v45 = vpop.eup %5158  ;;  %v1507_v33 = vmul.f32 %v1496_v35, %v5535_v28 }
 0x1ec   : > { %v2119_v41 = vmax.f32 %v2103_v5, 0.0  ;;  %v2127_v15 = vmax.f32 %v2111_v20, 0.0  ;;  %v5161_v0 = vpop.eup %5160  ;;  %v1648_v17 = vrot.slane %v5159_v45, %v5508_v18  ;;  %v6393_v5 = vpop.permute.xlu1 %3984 }
 0x1ed   : > { %v1275_v62 = vmul.f32 %v1264_v3, %v1131_v42  ;;  %v1419_v30 = vmul.f32 %v5155_v4, %v1235_v37  ;;  %v1688_v22 = vrot.slane %v5161_v0, %v5508_v18 }
 0x1ee   : > { %v4774_v38 = vpack.c.bf16 %v2127_v15, %v2119_v41 }
 0x1ef   : > { %v1323_v53 = vadd.f32 %v1315_v23, %v1275_v62  ;;  %v1427_v2 = vadd.f32 %v5157_v54, %v1419_v30  ;;  %v5163_v14 = vpop.eup %5162  ;;  %v1699_v34 = vmul.f32 %v1688_v22, %v5500_v13 }
 0x1f0   : > { %4775 = vmatpush1.bf16.msra.mxu1 %v4774_v38  ;;  %v1840_v32 = vrot.slane %v5163_v14, %v5508_v18 }
 0x1f1   : > { %v1467_v52 = vmul.f32 %v1456_v29, %v1323_v53  ;;  %v1611_v26 = vmul.f32 %v5159_v45, %v1427_v2 }
 0x1f2   : > { %v5165_v25 = vpop.eup %5164 }
 0x1f3   : > { %v1515_v57 = vadd.f32 %v1507_v33, %v1467_v52  ;;  %v1619_v63 = vadd.f32 %v5161_v0, %v1611_v26  ;;  %4664 = vmatmul.mubr.msk.f32.vlgmr.msra.gmra.mrb[18].mxu1 %vm2224_vm0, %v5169_v19  ;;  %v1880_v56 = vrot.slane %v5165_v25, %v5508_v18 }
 0x1f4   : > { %3865 = vmatprep.mubr.f32.mxu1 %v6600_v6 }
 0x1f5   : > { %v1803_v28 = vmul.f32 %v5163_v14, %v1619_v63  ;;  %v1659_v16 = vmul.f32 %v1648_v17, %v1515_v57  ;;  %v1891_v13 = vmul.f32 %v1880_v56, %v5522_v24 }
 0x1f7   : > { %v1811_v7 = vadd.f32 %v5165_v25, %v1803_v28  ;;  %4665 = vmatmul.mubr.msk.f32.gmra.mrb[20].mxu1 %vm2224_vm0, %v6176_v46  ;;  %v1707_v55 = vadd.f32 %v1699_v34, %v1659_v16 }
 0x1f8   : > { %3871 = vmatprep.mubr.f32.mxu1 %v6600_v6 }
 0x1f9   : > { %5166 = vrcp.f32 %v1811_v7  ;;  %v1851_v8 = vmul.f32 %v1840_v32, %v1707_v55 }
 0x1fb   : > { %4666 = vmatmul.mubr.msk.f32.gmra.mrb[22].mxu1 %vm2224_vm0, %v6191_v50  ;;  %v1899_v43 = vadd.f32 %v1891_v13, %v1851_v8  ;;  %v6410_v13 = vpop.permute.xlu1 %3994 }
 0x1fc   : > { %3877 = vmatprep.mubr.f32.mxu1 %v6600_v6 }
 0x1ff   : > { %4667 = vmatmul.mubr.msk.f32.gmra.mrb[24].mxu1 %vm2224_vm0, %v6213_v60 }
 0x200   : > { %4220 = vmatprep.mubr.f32.mxu1 %v6600_v6 }
 0x203   : > { %v5167_v59 = vpop.eup %5166 }
 0x204   : > { %v1944_v39 = vrot.slane %v5167_v59, %v5508_v18 }
 0x206   : > { %v1955_v9 = vmul.f32 %v1944_v39, %v1899_v43 }
 0x208   : > { %v1994_v61 = vrot.slane %v1955_v9, %v5508_v18  ;;  %v2050_v47 = vrot.slane %v1955_v9, %v5531_v27 }
 0x20a   : > { %v2005_v10 = vmul.f32 %v1994_v61, %v5695_v11  ;;  %v2013_v12 = vmul.f32 %v1994_v61, %v5724_v49  ;;  %v2061_v24 = vmul.f32 %v2050_v47, %v5711_v36  ;;  %v2069_v4 = vmul.f32 %v2050_v47, %v5722_v40  ;;  %v6387_v40 = vpop.permute.xlu0 %3979 }
 0x20c   : > { %v2077_v1 = vadd.f32 %v2061_v24, %v2005_v10  ;;  %v2085_v58 = vadd.f32 %v2069_v4, %v2013_v12 }
 0x20e   : > { %v2105_v44 = vadd.f32 %v5743_v31, %v2077_v1  ;;  %v2113_v54 = vadd.f32 %v5741_v48, %v2085_v58  ;;  %v6401_v38 = vpop.permute.xlu0 %3989 }
 0x210   : > { %v2121_v21 = vmax.f32 %v2105_v44, 0.0  ;;  %v2129_v51 = vmax.f32 %v2113_v54, 0.0 }
 0x212   : > { %v4778_v3 = vpack.c.bf16 %v2129_v51, %v2121_v21 }
 0x214   : > { %4779 = vmatpush1.bf16.msra.mxu0 %v4778_v3 }
 0x217   : > { %4668 = vmatmul.mubr.msk.f32.vlgmr.msra.gmra.mrb[16].mxu0 %vm2224_vm0, %v5169_v19 }
 0x218   : > { %3954 = vmatprep.mubr.f32.mxu0 %v6600_v6 }
 0x21b   : > { %4669 = vmatmul.mubr.msk.f32.gmra.mrb[18].mxu0 %vm2224_vm0, %v6176_v46 }
 0x21c   : > { %3960 = vmatprep.mubr.f32.mxu0 %v6600_v6 }
 0x21f   : > { %4670 = vmatmul.mubr.msk.f32.gmra.mrb[20].mxu0 %vm2224_vm0, %v6191_v50 }
 0x220   : > { %3966 = vmatprep.mubr.f32.mxu0 %v6600_v6 }
 0x223   : > { %4671 = vmatmul.mubr.msk.f32.gmra.mrb[22].mxu0 %vm2224_vm0, %v6213_v60 }
 0x224   : > { %4303 = vmatprep.mubr.f32.mxu0 %v6600_v6 }
 0x22b   : > { %v3683_v18 = vpop.f32.mrb[10].mxu1 }
 0x22c   : > { %v3685_v27 = vpop.f32.mrb[11].mxu1  ;;  %v3997_v49 = vadd.f32 %v6387_v40, %v3683_v18 }
 0x22d   : > { %v3998_v48 = vadd.f32 %v6387_v40, %v3685_v27 }
 0x22e   : > { %v4061_v31 = vmul.f32 0.01, %v3997_v49  ;;  %vm4029_vm5 = vcmp.ge.f32.partialorder %v3997_v49, 0.0 }
 0x22f   : > { %vm4030_vm0 = vcmp.ge.f32.partialorder %v3998_v48, 0.0  ;;  %v4062_v60 = vmul.f32 0.01, %v3998_v48 }
 0x230   : > { %v6395_v37 = vsel %vm4029_vm5, %v3997_v49, %v4061_v31  ;;  %vm4146_vm5 = vcmask 261120  }
 0x231   : > { %v4094_v43 = vsel %vm4030_vm0, %v3998_v48, %v4062_v60 }
 0x252   : > { %v3772_v11 = vpop.f32.mrb[8].mxu0 }
 0x253   : > { %v3774_v36 = vpop.f32.mrb[9].mxu0  ;;  %v3999_v46 = vadd.f32 %v6387_v40, %v3772_v11 }
 0x254   : > { %v4000_v50 = vadd.f32 %v6387_v40, %v3774_v36 }
 0x255   : > { %v4063_v23 = vmul.f32 0.01, %v3999_v46  ;;  %vm4031_vm6 = vcmp.ge.f32.partialorder %v3999_v46, 0.0 }
 0x256   : > { %vm4032_vm7 = vcmp.ge.f32.partialorder %v4000_v50, 0.0  ;;  %v4064_v52 = vmul.f32 0.01, %v4000_v50 }
 0x257   : > { %v4095_v33 = vsel %vm4031_vm6, %v3999_v46, %v4063_v23  ;;  %v6423_v23 = vld [vmem:[%s6565_s2 + $0x88] sm:$0xff] }
 0x258   : > { %v4096_v59 = vsel %vm4032_vm7, %v4000_v50, %v4064_v52 }
 0x260   : > { %v3689_v20 = vpop.f32.mrb[12].mxu1  ;;  %v3778_v42 = vpop.f32.mrb[10].mxu0 }
 0x261   : > { %v4005_v35 = vadd.f32 %v6393_v5, %v3689_v20  ;;  %v4007_v45 = vadd.f32 %v6393_v5, %v3778_v42  ;;  %v3691_v41 = vpop.f32.mrb[13].mxu1  ;;  %v3780_v15 = vpop.f32.mrb[11].mxu0 }
 0x262   : > { %v4006_v0 = vadd.f32 %v6393_v5, %v3691_v41  ;;  %v4008_v62 = vadd.f32 %v6393_v5, %v3780_v15 }
 0x263   : > { %vm4037_vm8 = vcmp.ge.f32.partialorder %v4005_v35, 0.0  ;;  %v4069_v30 = vmul.f32 0.01, %v4005_v35  ;;  %vm4039_vm9 = vcmp.ge.f32.partialorder %v4007_v45, 0.0  ;;  %v4071_v29 = vmul.f32 0.01, %v4007_v45 }
 0x264   : > { %vm4038_vm10 = vcmp.ge.f32.partialorder %v4006_v0, 0.0  ;;  %v4070_v53 = vmul.f32 0.01, %v4006_v0  ;;  %vm4040_vm11 = vcmp.ge.f32.partialorder %v4008_v62, 0.0  ;;  %v4072_v2 = vmul.f32 0.01, %v4008_v62 }
 0x265   : > { %v4101_v26 = vsel %vm4037_vm8, %v4005_v35, %v4069_v30  ;;  %v4103_v14 = vsel %vm4039_vm9, %v4007_v45, %v4071_v29  ;;  %v3695_v17 = vpop.f32.mrb[14].mxu1  ;;  %v3784_v22 = vpop.f32.mrb[12].mxu0  ;;  %v6434_v35 = vld [vmem:[%s6565_s2 + $0x90] sm:$0xff]  ;;  %v6445_v45 = vld [vmem:[%s6565_s2 + $0x98] sm:$0xff] }
 0x266   : > { %v4782_v57 = vpack.c.bf16 %v4101_v26, %v6395_v37  ;;  %v4790_v63 = vpack.c.bf16 %v4103_v14, %v4095_v33  ;;  %v4013_v19 = vadd.f32 %v6401_v38, %v3695_v17  ;;  %v4015_v25 = vadd.f32 %v6401_v38, %v3784_v22  ;;  %v3697_v28 = vpop.f32.mrb[15].mxu1  ;;  %v3786_v16 = vpop.f32.mrb[13].mxu0 }
 0x267   : > { %v4014_v34 = vadd.f32 %v6401_v38, %v3697_v28  ;;  %v4016_v7 = vadd.f32 %v6401_v38, %v3786_v16  ;;  %v4102_v55 = vsel %vm4038_vm10, %v4006_v0, %v4070_v53  ;;  %v4104_v32 = vsel %vm4040_vm11, %v4008_v62, %v4072_v2 }
 0x268   : > { %vm4045_vm12 = vcmp.ge.f32.partialorder %v4013_v19, 0.0  ;;  %v4077_v56 = vmul.f32 0.01, %v4013_v19  ;;  %v4079_v8 = vmul.f32 0.01, %v4015_v25  ;;  %vm4047_vm13 = vcmp.ge.f32.partialorder %v4015_v25, 0.0 }
 0x269   : > { %vm4046_vm14 = vcmp.ge.f32.partialorder %v4014_v34, 0.0  ;;  %v4078_v39 = vmul.f32 0.01, %v4014_v34  ;;  %v3701_v9 = vpop.f32.mrb[16].mxu1  ;;  %v3790_v61 = vpop.f32.mrb[14].mxu0  ;;  %v4780_v47 = vpack.c.bf16 %v4102_v55, %v4094_v43  ;;  %v4788_v10 = vpack.c.bf16 %v4104_v32, %v4096_v59 }
 0x26a   : > { %v4109_v12 = vsel %vm4045_vm12, %v4013_v19, %v4077_v56  ;;  %v4080_v24 = vmul.f32 0.01, %v4016_v7  ;;  %v4021_v4 = vadd.f32 %v6410_v13, %v3701_v9  ;;  %v4023_v1 = vadd.f32 %v6410_v13, %v3790_v61  ;;  %v3703_v58 = vpop.f32.mrb[17].mxu1  ;;  %v3792_v44 = vpop.f32.mrb[15].mxu0 }
 0x26b   : > { %v4111_v54 = vsel %vm4047_vm13, %v4015_v25, %v4079_v8  ;;  %vm4048_vm15 = vcmp.ge.f32.partialorder %v4016_v7, 0.0  ;;  %v4022_v21 = vadd.f32 %v6410_v13, %v3703_v58  ;;  %v4024_v51 = vadd.f32 %v6410_v13, %v3792_v44  ;;  %4781 = vmatprep.subr.bf16.mxu1 %v4780_v47  ;;  %4789 = vmatprep.subr.bf16.mxu0 %v4788_v10 }
 0x26c   : > { %vm4053_vm1 = vcmp.ge.f32.partialorder %v4021_v4, 0.0  ;;  %v4085_v3 = vmul.f32 0.01, %v4021_v4  ;;  %vm4055_vm2 = vcmp.ge.f32.partialorder %v4023_v1, 0.0  ;;  %v4087_v18 = vmul.f32 0.01, %v4023_v1  ;;  %4783 = vmatpush1.bf16.msra.mxu1 %v4782_v57  ;;  %4791 = vmatpush1.bf16.msra.mxu0 %v4790_v63 }
 0x26d   : > { %vm4054_vm3 = vcmp.ge.f32.partialorder %v4022_v21, 0.0  ;;  %v4086_v27 = vmul.f32 0.01, %v4022_v21  ;;  %vm4056_vm4 = vcmp.ge.f32.partialorder %v4024_v51, 0.0  ;;  %v4088_v11 = vmul.f32 0.01, %v4024_v51 }
 0x26e   : > { %v4117_v36 = vsel %vm4053_vm1, %v4021_v4, %v4085_v3  ;;  %v4119_v49 = vsel %vm4055_vm2, %v4023_v1, %v4087_v18  ;;  %v4110_v48 = vsel %vm4046_vm14, %v4014_v34, %v4078_v39  ;;  %v4112_v31 = vsel %vm4048_vm15, %v4016_v7, %v4080_v24 }
 0x26f   : > { %v4786_v46 = vpack.c.bf16 %v4117_v36, %v4109_v12  ;;  %v4794_v50 = vpack.c.bf16 %v4119_v49, %v4111_v54  ;;  %v4118_v60 = vsel %vm4054_vm3, %v4022_v21, %v4086_v27  ;;  %v4120_v20 = vsel %vm4056_vm4, %v4024_v51, %v4088_v11 }
 0x270   : > { %v4784_v42 = vpack.c.bf16 %v4118_v60, %v4110_v48  ;;  %v4792_v37 = vpack.c.bf16 %v4120_v20, %v4112_v31 }
 0x272   : > { %4785 = vmatprep.subr.bf16.mxu1 %v4784_v42  ;;  %4793 = vmatprep.subr.bf16.mxu0 %v4792_v37 }
 0x273   : > { %4787 = vmatpush1.bf16.msra.mxu1 %v4786_v46  ;;  %4795 = vmatpush1.bf16.msra.mxu0 %v4794_v50 }
 0x276   : > { %4672 = vmatmul.mubr.msk.f32.vlgmr.msra.gmra.mrb[26].mxu1 %vm4146_vm5, %v6423_v23  ;;  %4675 = vmatmul.mubr.msk.f32.vlgmr.msra.gmra.mrb[24].mxu0 %vm4146_vm5, %v6423_v23 }
 0x277   : > { %4226 = vmatprep.mubr.f32.mxu1 %v6600_v6  ;;  %4309 = vmatprep.mubr.f32.mxu0 %v6600_v6 }
 0x27a   : > { %4673 = vmatmul.mubr.msk.f32.gmra.mrb[28].mxu1 %vm4146_vm5, %v6434_v35  ;;  %4676 = vmatmul.mubr.msk.f32.gmra.mrb[26].mxu0 %vm4146_vm5, %v6434_v35 }
 0x27b   : > { %4232 = vmatprep.mubr.f32.mxu1 %v6600_v6  ;;  %4315 = vmatprep.mubr.f32.mxu0 %v6600_v6 }
 0x27e   : > { %4674 = vmatmul.mubr.msk.f32.gmra.mrb[30].mxu1 %vm4146_vm5, %v6445_v45  ;;  %4677 = vmatmul.mubr.msk.f32.gmra.mrb[28].mxu0 %vm4146_vm5, %v6445_v45 }
 0x27f   : > { %4386 = vmatprep.mubr.f32.mxu1 %v6600_v6  ;;  %4469 = vmatprep.mubr.f32.mxu0 %v6600_v6 }
 0x2c6   : > { %v3861_v41 = vpop.f32.mrb[18].mxu1 }
 0x2c7   : > { %v4001_v15 = vadd.f32 %v6387_v40, %v3861_v41  ;;  %v3863_v0 = vpop.f32.mrb[19].mxu1 }
 0x2c8   : > { %v4002_v62 = vadd.f32 %v6387_v40, %v3863_v0 }
 0x2c9   : > { %v4065_v29 = vmul.f32 0.01, %v4001_v15  ;;  %vm4033_vm0 = vcmp.ge.f32.partialorder %v4001_v15, 0.0 }
 0x2ca   : > { %v3867_v30 = vpop.f32.mrb[20].mxu1  ;;  %v4066_v33 = vmul.f32 0.01, %v4002_v62  ;;  %vm4034_vm6 = vcmp.ge.f32.partialorder %v4002_v62, 0.0 }
 0x2cb   : > { %v4009_v53 = vadd.f32 %v6393_v5, %v3867_v30  ;;  %v3869_v2 = vpop.f32.mrb[21].mxu1  ;;  %v4097_v22 = vsel %vm4033_vm0, %v4001_v15, %v4065_v29 }
 0x2cc   : > { %v4010_v52 = vadd.f32 %v6393_v5, %v3869_v2  ;;  %v4098_v16 = vsel %vm4034_vm6, %v4002_v62, %v4066_v33 }
 0x2cd   : > { %vm4041_vm7 = vcmp.ge.f32.partialorder %v4009_v53, 0.0  ;;  %v4073_v26 = vmul.f32 0.01, %v4009_v53 }
 0x2ce   : > { %vm4042_vm8 = vcmp.ge.f32.partialorder %v4010_v52, 0.0  ;;  %v4074_v14 = vmul.f32 0.01, %v4010_v52  ;;  %v3873_v17 = vpop.f32.mrb[22].mxu1 }
 0x2cf   : > { %v4105_v57 = vsel %vm4041_vm7, %v4009_v53, %v4073_v26  ;;  %v4017_v63 = vadd.f32 %v6401_v38, %v3873_v17  ;;  %v3875_v19 = vpop.f32.mrb[23].mxu1 }
 0x2d0   : > { %v4798_v25 = vpack.c.bf16 %v4105_v57, %v4097_v22  ;;  %v4018_v28 = vadd.f32 %v6401_v38, %v3875_v19  ;;  %v4106_v34 = vsel %vm4042_vm8, %v4010_v52, %v4074_v14 }
 0x2d1   : > { %v4796_v7 = vpack.c.bf16 %v4106_v34, %v4098_v16  ;;  %v4081_v32 = vmul.f32 0.01, %v4017_v63  ;;  %vm4049_vm9 = vcmp.ge.f32.partialorder %v4017_v63, 0.0  ;;  %v4139_v34 = vpop.permute.xlu1 %4138 }
 0x2d2   : > { %v3879_v55 = vpop.f32.mrb[24].mxu1  ;;  %v4082_v43 = vmul.f32 0.01, %v4018_v28  ;;  %vm4050_vm10 = vcmp.ge.f32.partialorder %v4018_v28, 0.0 }
 0x2d3   : > { %v4025_v56 = vadd.f32 %v6410_v13, %v3879_v55  ;;  %v3881_v8 = vpop.f32.mrb[25].mxu1  ;;  %4797 = vmatprep.subr.bf16.mxu1 %v4796_v7  ;;  %v4113_v61 = vsel %vm4049_vm9, %v4017_v63, %v4081_v32 }
 0x2d4   : > { %v4026_v59 = vadd.f32 %v6410_v13, %v3881_v8  ;;  %4799 = vmatpush1.bf16.msra.mxu1 %v4798_v25  ;;  %v4114_v12 = vsel %vm4050_vm10, %v4018_v28, %v4082_v43 }
 0x2d5   : > { %vm4057_vm11 = vcmp.ge.f32.partialorder %v4025_v56, 0.0  ;;  %v4089_v39 = vmul.f32 0.01, %v4025_v56 }
 0x2d6   : > { %vm4058_vm12 = vcmp.ge.f32.partialorder %v4026_v59, 0.0  ;;  %v4090_v9 = vmul.f32 0.01, %v4026_v59 }
 0x2d7   : > { %v4121_v47 = vsel %vm4057_vm11, %v4025_v56, %v4089_v39 }
 0x2d8   : > { %v4802_v10 = vpack.c.bf16 %v4121_v47, %v4113_v61  ;;  %v4122_v24 = vsel %vm4058_vm12, %v4026_v59, %v4090_v9 }
 0x2d9   : > { %v4800_v4 = vpack.c.bf16 %v4122_v24, %v4114_v12 }
 0x2db   : > { %4801 = vmatprep.subr.bf16.mxu1 %v4800_v4 }
 0x2dc   : > { %4803 = vmatpush1.bf16.msra.mxu1 %v4802_v10 }
 0x2df   : > { %4678 = vmatmul.mubr.msk.f32.vlgmr.msra.gmra.mrb[32].mxu1 %vm4146_vm5, %v6423_v23 }
 0x2e0   : > { %4392 = vmatprep.mubr.f32.mxu1 %v6600_v6 }
 0x2e3   : > { %4679 = vmatmul.mubr.msk.f32.gmra.mrb[34].mxu1 %vm4146_vm5, %v6434_v35 }
 0x2e4   : > { %4398 = vmatprep.mubr.f32.mxu1 %v6600_v6 }
 0x2e7   : > { %4680 = vmatmul.mubr.msk.f32.gmra.mrb[36].mxu1 %vm4146_vm5, %v6445_v45 }
 0x2ea   : > { %v3950_v1 = vpop.f32.mrb[16].mxu0 }
 0x2eb   : > { %v4003_v58 = vadd.f32 %v6387_v40, %v3950_v1  ;;  %v3952_v44 = vpop.f32.mrb[17].mxu0 }
 0x2ec   : > { %v4004_v54 = vadd.f32 %v6387_v40, %v3952_v44 }
 0x2ed   : > { %v4067_v51 = vmul.f32 0.01, %v4003_v58  ;;  %vm4035_vm13 = vcmp.ge.f32.partialorder %v4003_v58, 0.0 }
 0x2ee   : > { %v3956_v21 = vpop.f32.mrb[18].mxu0  ;;  %v4068_v27 = vmul.f32 0.01, %v4004_v54  ;;  %vm4036_vm14 = vcmp.ge.f32.partialorder %v4004_v54, 0.0 }
 0x2ef   : > { %v4011_v3 = vadd.f32 %v6393_v5, %v3956_v21  ;;  %v3958_v18 = vpop.f32.mrb[19].mxu0  ;;  %v4099_v31 = vsel %vm4035_vm13, %v4003_v58, %v4067_v51 }
 0x2f0   : > { %v4012_v11 = vadd.f32 %v6393_v5, %v3958_v18  ;;  %v4100_v42 = vsel %vm4036_vm14, %v4004_v54, %v4068_v27 }
 0x2f1   : > { %vm4043_vm15 = vcmp.ge.f32.partialorder %v4011_v3, 0.0  ;;  %v4075_v36 = vmul.f32 0.01, %v4011_v3 }
 0x2f2   : > { %vm4044_vm1 = vcmp.ge.f32.partialorder %v4012_v11, 0.0  ;;  %v4076_v49 = vmul.f32 0.01, %v4012_v11  ;;  %v3962_v48 = vpop.f32.mrb[20].mxu0 }
 0x2f3   : > { %v4107_v46 = vsel %vm4043_vm15, %v4011_v3, %v4075_v36  ;;  %v4019_v50 = vadd.f32 %v6401_v38, %v3962_v48  ;;  %v3964_v40 = vpop.f32.mrb[21].mxu0 }
 0x2f4   : > { %v4806_v60 = vpack.c.bf16 %v4107_v46, %v4099_v31  ;;  %v4020_v20 = vadd.f32 %v6401_v38, %v3964_v40  ;;  %v4108_v37 = vsel %vm4044_vm1, %v4012_v11, %v4076_v49 }
 0x2f5   : > { %v4804_v41 = vpack.c.bf16 %v4108_v37, %v4100_v42  ;;  %v4083_v0 = vmul.f32 0.01, %v4019_v50  ;;  %vm4051_vm2 = vcmp.ge.f32.partialorder %v4019_v50, 0.0 }
 0x2f6   : > { %v3968_v15 = vpop.f32.mrb[22].mxu0  ;;  %v4084_v30 = vmul.f32 0.01, %v4020_v20  ;;  %vm4052_vm3 = vcmp.ge.f32.partialorder %v4020_v20, 0.0 }
 0x2f7   : > { %v4027_v5 = vadd.f32 %v6410_v13, %v3968_v15  ;;  %v3970_v62 = vpop.f32.mrb[23].mxu0  ;;  %4805 = vmatprep.subr.bf16.mxu0 %v4804_v41  ;;  %v4115_v2 = vsel %vm4051_vm2, %v4019_v50, %v4083_v0 }
 0x2f8   : > { %v4028_v29 = vadd.f32 %v6410_v13, %v3970_v62  ;;  %4807 = vmatpush1.bf16.msra.mxu0 %v4806_v60  ;;  %v4116_v26 = vsel %vm4052_vm3, %v4020_v20, %v4084_v30  ;;  %v4134_v13 = vpop.permute.xlu0 %4133 }
 0x2f9   : > { %vm4059_vm4 = vcmp.ge.f32.partialorder %v4027_v5, 0.0  ;;  %v4091_v53 = vmul.f32 0.01, %v4027_v5 }
 0x2fa   : > { %vm4060_vm0 = vcmp.ge.f32.partialorder %v4028_v29, 0.0  ;;  %v4092_v38 = vmul.f32 0.01, %v4028_v29 }
 0x2fb   : > { %v4123_v33 = vsel %vm4059_vm4, %v4027_v5, %v4091_v53 }
 0x2fc   : > { %v4810_v52 = vpack.c.bf16 %v4123_v33, %v4115_v2  ;;  %v4124_v14 = vsel %vm4060_vm0, %v4028_v29, %v4092_v38  ;;  %v4144_v43 = vpop.permute.xlu0 %4143 }
 0x2fd   : > { %v4808_v17 = vpack.c.bf16 %v4124_v14, %v4116_v26 }
 0x2ff   : > { %4809 = vmatprep.subr.bf16.mxu0 %v4808_v17 }
 0x300   : > { %4811 = vmatpush1.bf16.msra.mxu0 %v4810_v52 }
 0x303   : > { %4681 = vmatmul.mubr.msk.f32.vlgmr.msra.gmra.mrb[30].mxu0 %vm4146_vm5, %v6423_v23 }
 0x304   : > { %4475 = vmatprep.mubr.f32.mxu0 %v6600_v6 }
 0x307   : > { %4682 = vmatmul.mubr.msk.f32.gmra.mrb[32].mxu0 %vm4146_vm5, %v6434_v35 }
 0x308   : > { %4481 = vmatprep.mubr.f32.mxu0 %v6600_v6 }
 0x30b   : > { %4683 = vmatmul.mubr.msk.f32.gmra.mrb[34].mxu0 %vm4146_vm5, %v6445_v45 }
 0x349   : > { %v4222_v22 = vpop.f32.mrb[26].mxu1  ;;  %v4305_v57 = vpop.f32.mrb[24].mxu0 }
 0x34a   : > { %v4223_v63 = vadd.f32 %v4222_v22, %v4134_v13  ;;  %v4306_v19 = vadd.f32 %v4305_v57, %v4134_v13  ;;  %v4224_v25 = vpop.f32.mrb[27].mxu1  ;;  %v4307_v28 = vpop.f32.mrb[25].mxu0 }
 0x34b   : > { %v4225_v16 = vadd.f32 %v4224_v25, %v4134_v13  ;;  %v4308_v23 = vadd.f32 %v4307_v28, %v4134_v13 }
 0x34c   : > { %4488 = vst [vmem:[%s6486_s9] sm:$0xff] %v4223_v63  ;;  %4490 = vst [vmem:[%s6486_s9 + $0x10] sm:$0xff] %v4306_v19 }
 0x34d   : > { %4489 = vst [vmem:[%s6486_s9 + $0x8] sm:$0xff] %v4225_v16  ;;  %4491 = vst [vmem:[%s6486_s9 + $0x18] sm:$0xff] %v4308_v23  ;;  %v4228_v6 = vpop.f32.mrb[28].mxu1  ;;  %v4311_v35 = vpop.f32.mrb[26].mxu0 }
 0x34e   : > { %v4229_v45 = vadd.f32 %v4228_v6, %v4139_v34  ;;  %v4312_v7 = vadd.f32 %v4311_v35, %v4139_v34  ;;  %v4230_v55 = vpop.f32.mrb[29].mxu1  ;;  %v4313_v32 = vpop.f32.mrb[27].mxu0 }
 0x34f   : > { %v4231_v56 = vadd.f32 %v4230_v55, %v4139_v34  ;;  %v4314_v8 = vadd.f32 %v4313_v32, %v4139_v34 }
 0x350   : > { %4496 = vst [vmem:[%s6486_s9 + $0x40] sm:$0xff] %v4229_v45  ;;  %4498 = vst [vmem:[%s6486_s9 + $0x50] sm:$0xff] %v4312_v7 }
 0x351   : > { %4497 = vst [vmem:[%s6486_s9 + $0x48] sm:$0xff] %v4231_v56  ;;  %4499 = vst [vmem:[%s6486_s9 + $0x58] sm:$0xff] %v4314_v8  ;;  %v4234_v59 = vpop.f32.mrb[30].mxu1  ;;  %v4317_v39 = vpop.f32.mrb[28].mxu0 }
 0x352   : > { %v4235_v9 = vadd.f32 %v4234_v59, %v4144_v43  ;;  %v4318_v61 = vadd.f32 %v4317_v39, %v4144_v43  ;;  %v4236_v47 = vpop.f32.mrb[31].mxu1  ;;  %v4319_v10 = vpop.f32.mrb[29].mxu0 }
 0x353   : > { %v4237_v12 = vadd.f32 %v4236_v47, %v4144_v43  ;;  %v4320_v24 = vadd.f32 %v4319_v10, %v4144_v43 }
 0x354   : > { %4504 = vst [vmem:[%s6486_s9 + $0x80] sm:$0xff] %v4235_v9  ;;  %4506 = vst [vmem:[%s6486_s9 + $0x90] sm:$0xff] %v4318_v61 }
 0x355   : > { %4505 = vst [vmem:[%s6486_s9 + $0x88] sm:$0xff] %v4237_v12  ;;  %4507 = vst [vmem:[%s6486_s9 + $0x98] sm:$0xff] %v4320_v24 }
 0x3b2   : > { %v4388_v4 = vpop.f32.mrb[32].mxu1 }
 0x3b3   : > { %v4389_v1 = vadd.f32 %v4388_v4, %v4134_v13  ;;  %v4390_v58 = vpop.f32.mrb[33].mxu1 }
 0x3b4   : > { %v4391_v44 = vadd.f32 %v4390_v58, %v4134_v13 }
 0x3b5   : > { %4492 = vst [vmem:[%s6486_s9 + $0x20] sm:$0xff] %v4389_v1 }
 0x3b6   : > { %4493 = vst [vmem:[%s6486_s9 + $0x28] sm:$0xff] %v4391_v44  ;;  %v4394_v54 = vpop.f32.mrb[34].mxu1 }
 0x3b7   : > { %v4395_v21 = vadd.f32 %v4394_v54, %v4139_v34  ;;  %v4396_v51 = vpop.f32.mrb[35].mxu1 }
 0x3b8   : > { %v4397_v3 = vadd.f32 %v4396_v51, %v4139_v34 }
 0x3b9   : > { %4500 = vst [vmem:[%s6486_s9 + $0x60] sm:$0xff] %v4395_v21 }
 0x3ba   : > { %4501 = vst [vmem:[%s6486_s9 + $0x68] sm:$0xff] %v4397_v3  ;;  %v4400_v18 = vpop.f32.mrb[36].mxu1 }
 0x3bb   : > { %v4401_v27 = vadd.f32 %v4400_v18, %v4144_v43  ;;  %v4402_v11 = vpop.f32.mrb[37].mxu1 }
 0x3bc   : > { %v4403_v36 = vadd.f32 %v4402_v11, %v4144_v43 }
 0x3bd   : > { %4508 = vst [vmem:[%s6486_s9 + $0xa0] sm:$0xff] %v4401_v27 }
 0x3be   : > { %4509 = vst [vmem:[%s6486_s9 + $0xa8] sm:$0xff] %v4403_v36 }
 0x3d6   : > { %v4471_v49 = vpop.f32.mrb[30].mxu0 }
 0x3d7   : > { %v4472_v48 = vadd.f32 %v4471_v49, %v4134_v13  ;;  %v4473_v31 = vpop.f32.mrb[31].mxu0 }
 0x3d8   : > { %v4474_v46 = vadd.f32 %v4473_v31, %v4134_v13 }
 0x3d9   : > { %4494 = vst [vmem:[%s6486_s9 + $0x30] sm:$0xff] %v4472_v48 }
 0x3da   : > { %4495 = vst [vmem:[%s6486_s9 + $0x38] sm:$0xff] %v4474_v46  ;;  %v4477_v50 = vpop.f32.mrb[32].mxu0 }
 0x3db   : > { %v4478_v40 = vadd.f32 %v4477_v50, %v4139_v34  ;;  %v4479_v60 = vpop.f32.mrb[33].mxu0 }
 0x3dc   : > { %v4480_v20 = vadd.f32 %v4479_v60, %v4139_v34 }
 0x3dd   : > { %4502 = vst [vmem:[%s6486_s9 + $0x70] sm:$0xff] %v4478_v40 }
 0x3de   : > { %4503 = vst [vmem:[%s6486_s9 + $0x78] sm:$0xff] %v4480_v20  ;;  %v4483_v42 = vpop.f32.mrb[34].mxu0 }
 0x3df   : > { %v4484_v37 = vadd.f32 %v4483_v42, %v4144_v43  ;;  %v4485_v41 = vpop.f32.mrb[35].mxu0 }
 0x3e0   : > { %v4486_v15 = vadd.f32 %v4485_v41, %v4144_v43 }
 0x3e1   : > { %4510 = vst [vmem:[%s6486_s9 + $0xb0] sm:$0xff] %v4484_v37 }
 0x3e2   : > { %4511 = vst [vmem:[%s6486_s9 + $0xb8] sm:$0xff] %v4486_v15 }
 0x3e3   : > { %5183 = shalt.err (!%p5180_p7)
}
 0x3e4   : > { %s5184_s28 = scalar_lea.hbm %s6515_s20, 3072  ;;  %s5188_s5 = scalar_lea.hbm %s6566_s3, 6144 }
 0x3e5   : > { %p5185_p10 = scmp.ne.s32.totalorder %s6515_s20, %s5184_s28  ;;  %p5189_p13 = scmp.lt.u32.totalorder %s6515_s20, %s6566_s3 }
 0x3e6   : > { %p5190_p0 = scmp.lt.u32.totalorder %s5188_s5, %s5184_s28  ;;  %p5192_p2 = scmp.lt.u32.totalorder %s5184_s28, %s6515_s20 }
 0x3e7   : > { %p5186_p11 = pnand %p5185_p10, %p5302_p6 }
 0x3e8   : > { %p5191_p1 = por %p5190_p0, %p5189_p13 }
 0x3e9   : > { %p5187_p12 = pneg %p5186_p11 }
 0x3ea   : > { %p5193_p3 = por %p5192_p2, %p5191_p1 }
 0x3ec   : > { %p5194_p4 = pnand %p5193_p3, %p5187_p12 }
 0x3ee   : > { %5197 = shalt.err (!%p5194_p4)
}
 0x3ef   : > { %s5240_s8 = smov 1024   ;;  %s5241_s9 = smov 2048  }
 0x3f0   : > { %s5242_s10 = smov 64  }
 0x3f1   : > { %4873 = dma.vmem_to_hbm [thread:$0]  (%p5302_p6), %s6517_s11, 3072, %s6515_s20, %s4513_s16, %s5240_s8, %s5241_s9, %s5242_s10  }
 0x3f2 PF: > { %s4541_s17 = sand.u32 1, %s5220_s12   ;;  %p4876_p5 = pnand %p4608_p9, %p5306_p8 }
 0x3f3   : > { %s4542_s19 = scalar_lea.sflag [#allocation4], %s4541_s17 }
 0x3f4   : > { %5215 = dma.done.wait (!%p4876_p5), %s4542_s19, 3072  }
 0x3f5   : > { %5217 = vsyncadd (!%p4876_p5), %s4542_s19, 4294964224  ;;  %p13_p7 = scmp.ge.s32.totalorder %s5288_s18, 4   ;;  %s6616_s12 = smov %s5224_s13 }
 0x3f6   : > { %s6617_s13 = smov %s5228_s14  ;;  %s6618_s14 = smov %s5300_s21 }
 0x3f7   : > { %s6619_s15 = smov %s5288_s18  ;;  %15 = sbr.rel (!%p13_p7) target bundleno = 3 (0x3), region = 98 }
 0x3fe   :  { %4547 = vsyncpa [#allocation4], 1 }
 0x3ff   :  { %4549 = vsyncpa [#allocation4 + $0x1], 1 }

</bundles_post_ra>
